<compile_context>
chip_gen: v5e
topology: v5e:2x2
jax: 0.10.0
libtpu: 0.0.40
codegen_flags: <defaults>
</compile_context>

<pallas_src>
import math

import jax
import jax.numpy as jnp
from jax.experimental import pallas as pl
from jax.experimental.pallas import tpu as pltpu

# ----------------------- synthetic "ViT-tiny" configuration -----------------------
IMG = 16          # input spatial size
PATCH = 4         # patch size (conv kernel = stride = 4)
CIN = 3           # RGB channels
HIDDEN = 32       # hidden size of the backbone
HEADS = 4
HEAD_DIM = HIDDEN // HEADS
MLP = 64          # intermediate size
LAYERS = 2        # number of transformer encoder layers
NUM_CLASSES = 5
GRIDP = IMG // PATCH
NPATCH = GRIDP * GRIDP
SEQ = NPATCH + 1  # +1 CLS token
PATCH_DIM = CIN * PATCH * PATCH
CLS_PAD = 128     # lane-dense classifier width (host slices back to NUM_CLASSES)
LN_EPS = 1e-12    # HF ViT layer_norm_eps


# ----------------------------- in-kernel helpers ----------------------------------
def _gelu(x):
    # TODO(synk): HF ViT uses exact erf-GELU; tanh approximation (<1e-3 abs diff) is used
    # because tanh maps cleanly to the EUP transcendental slot.
    return 0.5 * x * (1.0 + jnp.tanh(0.7978845608028654 * (x + 0.044715 * x * x * x)))


def _layernorm(x, g, b):
    mu = jnp.mean(x, axis=-1, keepdims=True)
    var = jnp.mean((x - mu) ** 2, axis=-1, keepdims=True)
    return (x - mu) * jax.lax.rsqrt(var + LN_EPS) * g + b


# ------------------------------- fused kernel --------------------------------------
_LAYER_KEYS = ("ln1_g", "ln1_b", "w_qkv", "b_qkv", "wo", "bo",
               "ln2_g", "ln2_b", "w1", "b1", "w2", "b2")
_PER_LAYER_REFS = len(_LAYER_KEYS)  # 12


def fused_vit_kernel(xp_ref, pw_ref, pb_ref, pos_ref, *rest):
    """Whole ViT forward for one image per grid step; everything VMEM-resident.

    rest = [LAYERS * 12 layer refs] + [ln_f_g, ln_f_b, cls_w(pad), cls_b(pad)] + [o_ref]
    """
    o_ref = rest[-1]
    lnf_g, lnf_b, cw_ref, cb_ref = rest[LAYERS * _PER_LAYER_REFS:
                                        LAYERS * _PER_LAYER_REFS + 4]

    # Patch embedding (pixel normalization folded into pw/pb) + positional embedding.
    # Row 0 of xp is a zero "patch"; the CLS embedding is folded into pos_ref row 0.
    x = (
        jnp.dot(xp_ref[0], pw_ref[...], preferred_element_type=jnp.float32)
        + pb_ref[...]
        + pos_ref[...]
    )                                                             # (SEQ, HIDDEN)

    scale = 1.0 / math.sqrt(HEAD_DIM)
    for l in range(LAYERS):
        (ln1_g, ln1_b, w_qkv, b_qkv, wo, bo,
         ln2_g, ln2_b, w1, b1, w2, b2) = rest[l * _PER_LAYER_REFS:(l + 1) * _PER_LAYER_REFS]

        # --- self attention (pre-LN), matches HF ViTLayer ---
        h = _layernorm(x, ln1_g[...], ln1_b[...])
        qkv = jnp.dot(h, w_qkv[...], preferred_element_type=jnp.float32) + b_qkv[...]
        wo_full = wo[...]
        attn_out = jnp.zeros_like(x)
        for hh in range(HEADS):
            lo = hh * HEAD_DIM
            qh = qkv[:, lo:lo + HEAD_DIM]
            kh = qkv[:, HIDDEN + lo:HIDDEN + lo + HEAD_DIM]
            vh = qkv[:, 2 * HIDDEN + lo:2 * HIDDEN + lo + HEAD_DIM]
            s = jnp.dot(qh, kh.T, preferred_element_type=jnp.float32) * scale
            s = s - jnp.max(s, axis=-1, keepdims=True)
            p = jnp.exp(s)
            p = p * pl.reciprocal(jnp.sum(p, axis=-1, keepdims=True), approx=True)
            ctx = jnp.dot(p, vh, preferred_element_type=jnp.float32)      # (S, hd)
            # concat(ctx_h) @ Wo  ==  sum_h ctx_h @ Wo[h-rows]  (no in-kernel concat)
            attn_out = attn_out + jnp.dot(
                ctx, wo_full[lo:lo + HEAD_DIM, :], preferred_element_type=jnp.float32
            )
        x = x + attn_out + bo[...]

        # --- MLP (pre-LN) ---
        h2 = _layernorm(x, ln2_g[...], ln2_b[...])
        m = _gelu(jnp.dot(h2, w1[...], preferred_element_type=jnp.float32) + b1[...])
        x = x + jnp.dot(m, w2[...], preferred_element_type=jnp.float32) + b2[...]

    # --- ViTModel final LayerNorm -> last_hidden_state; classifier; softmax over dim=1 ---
    f = _layernorm(x, lnf_g[...], lnf_b[...])
    logits = jnp.dot(f, cw_ref[...], preferred_element_type=jnp.float32) + cb_ref[...]
    # torch.softmax(out, dim=1): dim=1 of (B, S, C) is the SEQUENCE axis -> axis 0 here.
    mx = jnp.max(logits, axis=0, keepdims=True)
    e = jnp.exp(logits - mx)
    # Exact divide for the model output so per-class probability columns sum to 1.
    o_ref[0, :, :] = e / jnp.sum(e, axis=0, keepdims=True)


# --------------------------------- wrapper ------------------------------------------
def vit_forward(x, pp):
    """x: (B, CIN, IMG, IMG) NCHW image batch.  pp: packed params (see pack_params)."""
    B = x.shape[0]

    # Patch extraction (pure layout; pixel normalization folded into patch weights).
    # TODO(synk): AutoFeatureExtractor bilinear resize is skipped; inputs are assumed to
    # already be at the model's expected resolution.
    xb = x.reshape(B, CIN, GRIDP, PATCH, GRIDP, PATCH)
    xb = xb.transpose(0, 2, 4, 1, 3, 5).reshape(B, NPATCH, PATCH_DIM)
    # Prepend a zero patch row for the CLS slot (CLS embedding folded into pos_eff).
    xp = jnp.concatenate([jnp.zeros((B, 1, PATCH_DIM), jnp.float32), xb], axis=1)

    flat_ws = [pp["patch_w"], pp["patch_b"], pp["pos_eff"]]
    for layer in pp["layers"]:
        flat_ws.extend(layer[k] for k in _LAYER_KEYS)
    flat_ws.extend([pp["ln_f_g"], pp["ln_f_b"], pp["cls_w"], pp["cls_b"]])

    in_specs = [pl.BlockSpec((1, SEQ, PATCH_DIM), lambda b: (b, 0, 0))]
    for w in flat_ws:
        in_specs.append(pl.BlockSpec(w.shape, lambda b, nd=w.ndim: (0,) * nd))

    out = pl.pallas_call(
        fused_vit_kernel,
        grid=(B,),
        out_shape=jax.ShapeDtypeStruct((B, SEQ, CLS_PAD), jnp.float32),
        in_specs=in_specs,
        out_specs=pl.BlockSpec((1, SEQ, CLS_PAD), lambda b: (b, 0, 0)),
        compiler_params=pltpu.CompilerParams(dimension_semantics=("parallel",)),
    )(xp, *flat_ws)

    # nn.Dropout(0.3) is identity in eval/inference mode.
    return out[:, :, :NUM_CLASSES]                               # (B, SEQ, NUM_CLASSES)


# -------------------------- parameter init (deterministic) -------------------------
def init_params(key):
    keys = jax.random.split(key, 64)
    kit = iter(keys)

    def nrm(shape, scale=0.02):
        return (scale * jax.random.normal(next(kit), shape)).astype(jnp.float32)

    p = {
        "patch_w": nrm((PATCH_DIM, HIDDEN)),   # Conv2d(k=stride=PATCH) as matmul
        "patch_b": jnp.zeros((1, HIDDEN), jnp.float32),
        "cls": nrm((1, 1, HIDDEN)),
        "pos": nrm((1, SEQ, HIDDEN)),
        "ln_f_g": jnp.ones((1, HIDDEN), jnp.float32),
        "ln_f_b": jnp.zeros((1, HIDDEN), jnp.float32),
        "cls_w": nrm((HIDDEN, NUM_CLASSES)),
        "cls_b": jnp.zeros((1, NUM_CLASSES), jnp.float32),
        "layers": [],
    }
    for _ in range(LAYERS):
        p["layers"].append(dict(
            ln1_g=jnp.ones((1, HIDDEN), jnp.float32),
            ln1_b=jnp.zeros((1, HIDDEN), jnp.float32),
            wq=nrm((HIDDEN, HIDDEN)), bq=jnp.zeros((1, HIDDEN), jnp.float32),
            wk=nrm((HIDDEN, HIDDEN)), bk=jnp.zeros((1, HIDDEN), jnp.float32),
            wv=nrm((HIDDEN, HIDDEN)), bv=jnp.zeros((1, HIDDEN), jnp.float32),
            wo=nrm((HIDDEN, HIDDEN)), bo=jnp.zeros((1, HIDDEN), jnp.float32),
            ln2_g=jnp.ones((1, HIDDEN), jnp.float32),
            ln2_b=jnp.zeros((1, HIDDEN), jnp.float32),
            w1=nrm((HIDDEN, MLP)), b1=jnp.zeros((1, MLP), jnp.float32),
            w2=nrm((MLP, HIDDEN)), b2=jnp.zeros((1, HIDDEN), jnp.float32),
        ))
    return p


def pack_params(p):
    """One-time algebraic repacking for the fused kernel (identical numerics)."""
    # Fold (x - 0.5)/0.5 = 2x - 1 into the patch embedding:  (2x-1)@W + b = x@(2W) + (b - 1ᵀW)
    patch_w = 2.0 * p["patch_w"]
    patch_b = p["patch_b"] - jnp.sum(p["patch_w"], axis=0, keepdims=True)

    # Fold CLS token into positional embedding row 0 (the kernel's row 0 input is a zero
    # patch, which contributes only patch_b):  tokens[0] = cls + pos[0].
    pos = p["pos"][0]                                      # (SEQ, HIDDEN)
    cls = p["cls"][0, 0]                                   # (HIDDEN,)
    pos_eff = pos.at[0].set(pos[0] + cls - patch_b[0])

    # Lane-dense classifier: pad to 128 output columns with zeros.
    cls_w = jnp.zeros((HIDDEN, CLS_PAD), jnp.float32).at[:, :NUM_CLASSES].set(p["cls_w"])
    cls_b = jnp.zeros((1, CLS_PAD), jnp.float32).at[:, :NUM_CLASSES].set(p["cls_b"])

    layers = []
    for l in p["layers"]:
        layers.append(dict(
            ln1_g=l["ln1_g"], ln1_b=l["ln1_b"],
            w_qkv=jnp.concatenate([l["wq"], l["wk"], l["wv"]], axis=1),   # (H, 3H)
            b_qkv=jnp.concatenate([l["bq"], l["bk"], l["bv"]], axis=1),   # (1, 3H)
            wo=l["wo"], bo=l["bo"],
            ln2_g=l["ln2_g"], ln2_b=l["ln2_b"],
            w1=l["w1"], b1=l["b1"], w2=l["w2"], b2=l["b2"],
        ))

    return {
        "patch_w": patch_w, "patch_b": patch_b, "pos_eff": pos_eff,
        "layers": layers,
        "ln_f_g": p["ln_f_g"], "ln_f_b": p["ln_f_b"],
        "cls_w": cls_w, "cls_b": cls_b,
    }


# ------------------------------------ main -------------------------------------------
if __name__ == "__main__":
    key = jax.random.PRNGKey(0)
    pkey, xkey = jax.random.split(key)
    params = init_params(pkey)
    packed = pack_params(params)
    x = jax.random.uniform(xkey, (2, CIN, IMG, IMG), dtype=jnp.float32)

    out = jax.jit(lambda xx: vit_forward(xx, packed))(x)
    out = jax.block_until_ready(out)

    assert out.shape == (2, SEQ, NUM_CLASSES)
    # softmax over dim=1 (sequence axis), exactly like torch.softmax(out, dim=1)
    assert bool(jnp.allclose(jnp.sum(out, axis=1), 1.0, atol=1e-4))
    print("KERNEL_OK")
</pallas_src>

<mosaic_0001>
module attributes {stable_mosaic.version = 11 : i64} {
  func.func @fused_vit_kernel(%arg0: i32, %arg1: memref<1x17x48xf32, #tpu.memory_space<vmem>>, %arg2: memref<48x32xf32, #tpu.memory_space<vmem>>, %arg3: memref<1x32xf32, #tpu.memory_space<vmem>>, %arg4: memref<17x32xf32, #tpu.memory_space<vmem>>, %arg5: memref<1x32xf32, #tpu.memory_space<vmem>>, %arg6: memref<1x32xf32, #tpu.memory_space<vmem>>, %arg7: memref<32x96xf32, #tpu.memory_space<vmem>>, %arg8: memref<1x96xf32, #tpu.memory_space<vmem>>, %arg9: memref<32x32xf32, #tpu.memory_space<vmem>>, %arg10: memref<1x32xf32, #tpu.memory_space<vmem>>, %arg11: memref<1x32xf32, #tpu.memory_space<vmem>>, %arg12: memref<1x32xf32, #tpu.memory_space<vmem>>, %arg13: memref<32x64xf32, #tpu.memory_space<vmem>>, %arg14: memref<1x64xf32, #tpu.memory_space<vmem>>, %arg15: memref<64x32xf32, #tpu.memory_space<vmem>>, %arg16: memref<1x32xf32, #tpu.memory_space<vmem>>, %arg17: memref<1x32xf32, #tpu.memory_space<vmem>>, %arg18: memref<1x32xf32, #tpu.memory_space<vmem>>, %arg19: memref<32x96xf32, #tpu.memory_space<vmem>>, %arg20: memref<1x96xf32, #tpu.memory_space<vmem>>, %arg21: memref<32x32xf32, #tpu.memory_space<vmem>>, %arg22: memref<1x32xf32, #tpu.memory_space<vmem>>, %arg23: memref<1x32xf32, #tpu.memory_space<vmem>>, %arg24: memref<1x32xf32, #tpu.memory_space<vmem>>, %arg25: memref<32x64xf32, #tpu.memory_space<vmem>>, %arg26: memref<1x64xf32, #tpu.memory_space<vmem>>, %arg27: memref<64x32xf32, #tpu.memory_space<vmem>>, %arg28: memref<1x32xf32, #tpu.memory_space<vmem>>, %arg29: memref<1x32xf32, #tpu.memory_space<vmem>>, %arg30: memref<1x32xf32, #tpu.memory_space<vmem>>, %arg31: memref<32x128xf32, #tpu.memory_space<vmem>>, %arg32: memref<1x128xf32, #tpu.memory_space<vmem>>, %arg33: memref<1x17x128xf32, #tpu.memory_space<vmem>>) attributes {dimension_semantics = [#tpu.dimension_semantics<parallel>], iteration_bounds = array<i64: 2>, scalar_prefetch = 0 : i64, scratch_operands = 0 : i64, tpu.core_type = #tpu.core_type<tc>, window_params = [{transform_indices = @transform_0, window_bounds = array<i64: 1, 17, 48>}, {pipeline_mode = #tpu.pipeline_mode<synchronous>, transform_indices = @transform_1, window_bounds = array<i64: 48, 32>}, {pipeline_mode = #tpu.pipeline_mode<synchronous>, transform_indices = @transform_2, window_bounds = array<i64: 1, 32>}, {pipeline_mode = #tpu.pipeline_mode<synchronous>, transform_indices = @transform_3, window_bounds = array<i64: 17, 32>}, {pipeline_mode = #tpu.pipeline_mode<synchronous>, transform_indices = @transform_4, window_bounds = array<i64: 1, 32>}, {pipeline_mode = #tpu.pipeline_mode<synchronous>, transform_indices = @transform_5, window_bounds = array<i64: 1, 32>}, {pipeline_mode = #tpu.pipeline_mode<synchronous>, transform_indices = @transform_6, window_bounds = array<i64: 32, 96>}, {pipeline_mode = #tpu.pipeline_mode<synchronous>, transform_indices = @transform_7, window_bounds = array<i64: 1, 96>}, {pipeline_mode = #tpu.pipeline_mode<synchronous>, transform_indices = @transform_8, window_bounds = array<i64: 32, 32>}, {pipeline_mode = #tpu.pipeline_mode<synchronous>, transform_indices = @transform_9, window_bounds = array<i64: 1, 32>}, {pipeline_mode = #tpu.pipeline_mode<synchronous>, transform_indices = @transform_10, window_bounds = array<i64: 1, 32>}, {pipeline_mode = #tpu.pipeline_mode<synchronous>, transform_indices = @transform_11, window_bounds = array<i64: 1, 32>}, {pipeline_mode = #tpu.pipeline_mode<synchronous>, transform_indices = @transform_12, window_bounds = array<i64: 32, 64>}, {pipeline_mode = #tpu.pipeline_mode<synchronous>, transform_indices = @transform_13, window_bounds = array<i64: 1, 64>}, {pipeline_mode = #tpu.pipeline_mode<synchronous>, transform_indices = @transform_14, window_bounds = array<i64: 64, 32>}, {pipeline_mode = #tpu.pipeline_mode<synchronous>, transform_indices = @transform_15, window_bounds = array<i64: 1, 32>}, {pipeline_mode = #tpu.pipeline_mode<synchronous>, transform_indices = @transform_16, window_bounds = array<i64: 1, 32>}, {pipeline_mode = #tpu.pipeline_mode<synchronous>, transform_indices = @transform_17, window_bounds = array<i64: 1, 32>}, {pipeline_mode = #tpu.pipeline_mode<synchronous>, transform_indices = @transform_18, window_bounds = array<i64: 32, 96>}, {pipeline_mode = #tpu.pipeline_mode<synchronous>, transform_indices = @transform_19, window_bounds = array<i64: 1, 96>}, {pipeline_mode = #tpu.pipeline_mode<synchronous>, transform_indices = @transform_20, window_bounds = array<i64: 32, 32>}, {pipeline_mode = #tpu.pipeline_mode<synchronous>, transform_indices = @transform_21, window_bounds = array<i64: 1, 32>}, {pipeline_mode = #tpu.pipeline_mode<synchronous>, transform_indices = @transform_22, window_bounds = array<i64: 1, 32>}, {pipeline_mode = #tpu.pipeline_mode<synchronous>, transform_indices = @transform_23, window_bounds = array<i64: 1, 32>}, {pipeline_mode = #tpu.pipeline_mode<synchronous>, transform_indices = @transform_24, window_bounds = array<i64: 32, 64>}, {pipeline_mode = #tpu.pipeline_mode<synchronous>, transform_indices = @transform_25, window_bounds = array<i64: 1, 64>}, {pipeline_mode = #tpu.pipeline_mode<synchronous>, transform_indices = @transform_26, window_bounds = array<i64: 64, 32>}, {pipeline_mode = #tpu.pipeline_mode<synchronous>, transform_indices = @transform_27, window_bounds = array<i64: 1, 32>}, {pipeline_mode = #tpu.pipeline_mode<synchronous>, transform_indices = @transform_28, window_bounds = array<i64: 1, 32>}, {pipeline_mode = #tpu.pipeline_mode<synchronous>, transform_indices = @transform_29, window_bounds = array<i64: 1, 32>}, {pipeline_mode = #tpu.pipeline_mode<synchronous>, transform_indices = @transform_30, window_bounds = array<i64: 32, 128>}, {pipeline_mode = #tpu.pipeline_mode<synchronous>, transform_indices = @transform_31, window_bounds = array<i64: 1, 128>}, {transform_indices = @transform_32, window_bounds = array<i64: 1, 17, 128>}]} {
    %c0 = arith.constant 0 : index
    %c0_0 = arith.constant 0 : index
    %c0_1 = arith.constant 0 : index
    %0 = vector.load %arg1[%c0, %c0_0, %c0_1] : memref<1x17x48xf32, #tpu.memory_space<vmem>>, vector<1x17x48xf32>
    %1 = vector.shape_cast %0 : vector<1x17x48xf32> to vector<17x48xf32>
    %c0_2 = arith.constant 0 : index
    %c0_3 = arith.constant 0 : index
    %2 = vector.load %arg2[%c0_2, %c0_3] : memref<48x32xf32, #tpu.memory_space<vmem>>, vector<48x32xf32>
    %cst = arith.constant dense<0.000000e+00> : vector<17x32xf32>
    %3 = tpu.matmul %1, %2, %cst {dimension_numbers = #tpu.dot_dimension_numbers<[1], [0], [0], [1], [0, 0, 1, 1], [], []>} : vector<17x48xf32>, vector<48x32xf32>, vector<17x32xf32> -> vector<17x32xf32>
    %c0_4 = arith.constant 0 : index
    %c0_5 = arith.constant 0 : index
    %4 = vector.load %arg3[%c0_4, %c0_5] : memref<1x32xf32, #tpu.memory_space<vmem>>, vector<1x32xf32>
    %5 = vector.broadcast %4 : vector<1x32xf32> to vector<17x32xf32>
    %6 = arith.addf %3, %5 : vector<17x32xf32>
    %c0_6 = arith.constant 0 : index
    %c0_7 = arith.constant 0 : index
    %7 = vector.load %arg4[%c0_6, %c0_7] : memref<17x32xf32, #tpu.memory_space<vmem>>, vector<17x32xf32>
    %8 = arith.addf %6, %7 : vector<17x32xf32>
    %c0_8 = arith.constant 0 : index
    %c0_9 = arith.constant 0 : index
    %9 = vector.load %arg5[%c0_8, %c0_9] : memref<1x32xf32, #tpu.memory_space<vmem>>, vector<1x32xf32>
    %c0_10 = arith.constant 0 : index
    %c0_11 = arith.constant 0 : index
    %10 = vector.load %arg6[%c0_10, %c0_11] : memref<1x32xf32, #tpu.memory_space<vmem>>, vector<1x32xf32>
    %cst_12 = arith.constant dense<0.000000e+00> : vector<17xf32>
    %11 = vector.multi_reduction <add>, %8, %cst_12 [1] : vector<17x32xf32> to vector<17xf32>
    %12 = vector.shape_cast %11 : vector<17xf32> to vector<17x1xf32>
    %cst_13 = arith.constant 3.200000e+01 : f32
    %13 = vector.broadcast %cst_13 : f32 to vector<17x1xf32>
    %14 = arith.divf %12, %13 : vector<17x1xf32>
    %15 = vector.broadcast %14 : vector<17x1xf32> to vector<17x32xf32>
    %16 = arith.subf %8, %15 : vector<17x32xf32>
    %17 = arith.mulf %16, %16 : vector<17x32xf32>
    %cst_14 = arith.constant dense<0.000000e+00> : vector<17xf32>
    %18 = vector.multi_reduction <add>, %17, %cst_14 [1] : vector<17x32xf32> to vector<17xf32>
    %19 = vector.shape_cast %18 : vector<17xf32> to vector<17x1xf32>
    %cst_15 = arith.constant 3.200000e+01 : f32
    %20 = vector.broadcast %cst_15 : f32 to vector<17x1xf32>
    %21 = arith.divf %19, %20 : vector<17x1xf32>
    %22 = vector.broadcast %14 : vector<17x1xf32> to vector<17x32xf32>
    %23 = arith.subf %8, %22 : vector<17x32xf32>
    %cst_16 = arith.constant 9.99999996E-13 : f32
    %24 = vector.broadcast %cst_16 : f32 to vector<17x1xf32>
    %25 = arith.addf %21, %24 : vector<17x1xf32>
    %26 = math.rsqrt %25 : vector<17x1xf32>
    %27 = vector.broadcast %26 : vector<17x1xf32> to vector<17x32xf32>
    %28 = arith.mulf %23, %27 : vector<17x32xf32>
    %29 = vector.broadcast %9 : vector<1x32xf32> to vector<17x32xf32>
    %30 = arith.mulf %28, %29 : vector<17x32xf32>
    %31 = vector.broadcast %10 : vector<1x32xf32> to vector<17x32xf32>
    %32 = arith.addf %30, %31 : vector<17x32xf32>
    %c0_17 = arith.constant 0 : index
    %c0_18 = arith.constant 0 : index
    %33 = vector.load %arg7[%c0_17, %c0_18] : memref<32x96xf32, #tpu.memory_space<vmem>>, vector<32x96xf32>
    %cst_19 = arith.constant dense<0.000000e+00> : vector<17x96xf32>
    %34 = tpu.matmul %32, %33, %cst_19 {dimension_numbers = #tpu.dot_dimension_numbers<[1], [0], [0], [1], [0, 0, 1, 1], [], []>} : vector<17x32xf32>, vector<32x96xf32>, vector<17x96xf32> -> vector<17x96xf32>
    %c0_20 = arith.constant 0 : index
    %c0_21 = arith.constant 0 : index
    %35 = vector.load %arg8[%c0_20, %c0_21] : memref<1x96xf32, #tpu.memory_space<vmem>>, vector<1x96xf32>
    %36 = vector.broadcast %35 : vector<1x96xf32> to vector<17x96xf32>
    %37 = arith.addf %34, %36 : vector<17x96xf32>
    %c0_22 = arith.constant 0 : index
    %c0_23 = arith.constant 0 : index
    %38 = vector.load %arg9[%c0_22, %c0_23] : memref<32x32xf32, #tpu.memory_space<vmem>>, vector<32x32xf32>
    %cst_24 = arith.constant 0.000000e+00 : f32
    %39 = vector.broadcast %cst_24 : f32 to vector<17x32xf32>
    %40 = vector.extract_strided_slice %37 {offsets = [0, 0], sizes = [17, 8], strides = [1, 1]} : vector<17x96xf32> to vector<17x8xf32>
    %41 = vector.extract_strided_slice %37 {offsets = [0, 32], sizes = [17, 8], strides = [1, 1]} : vector<17x96xf32> to vector<17x8xf32>
    %42 = vector.extract_strided_slice %37 {offsets = [0, 64], sizes = [17, 8], strides = [1, 1]} : vector<17x96xf32> to vector<17x8xf32>
    %43 = tpu.transpose %41, [1, 0] : vector<17x8xf32> -> vector<8x17xf32>
    %cst_25 = arith.constant dense<0.000000e+00> : vector<17x17xf32>
    %44 = tpu.matmul %40, %43, %cst_25 {dimension_numbers = #tpu.dot_dimension_numbers<[1], [0], [0], [1], [0, 0, 1, 1], [], []>} : vector<17x8xf32>, vector<8x17xf32>, vector<17x17xf32> -> vector<17x17xf32>
    %cst_26 = arith.constant 0.353553385 : f32
    %45 = vector.broadcast %cst_26 : f32 to vector<17x17xf32>
    %46 = arith.mulf %44, %45 : vector<17x17xf32>
    %cst_27 = arith.constant dense<0xFF800000> : vector<17xf32>
    %47 = vector.multi_reduction <maximumf>, %46, %cst_27 [1] : vector<17x17xf32> to vector<17xf32>
    %48 = vector.shape_cast %47 : vector<17xf32> to vector<17x1xf32>
    %49 = vector.broadcast %48 : vector<17x1xf32> to vector<17x17xf32>
    %50 = arith.subf %46, %49 : vector<17x17xf32>
    %51 = math.exp %50 : vector<17x17xf32>
    %cst_28 = arith.constant dense<0.000000e+00> : vector<17xf32>
    %52 = vector.multi_reduction <add>, %51, %cst_28 [1] : vector<17x17xf32> to vector<17xf32>
    %53 = vector.shape_cast %52 : vector<17xf32> to vector<17x1xf32>
    %54 = tpu.reciprocal %53 {approx = true} : vector<17x1xf32> -> vector<17x1xf32>
    %55 = vector.broadcast %54 : vector<17x1xf32> to vector<17x17xf32>
    %56 = arith.mulf %51, %55 : vector<17x17xf32>
    %cst_29 = arith.constant dense<0.000000e+00> : vector<17x8xf32>
    %57 = tpu.matmul %56, %42, %cst_29 {dimension_numbers = #tpu.dot_dimension_numbers<[1], [0], [0], [1], [0, 0, 1, 1], [], []>} : vector<17x17xf32>, vector<17x8xf32>, vector<17x8xf32> -> vector<17x8xf32>
    %58 = vector.extract_strided_slice %38 {offsets = [0, 0], sizes = [8, 32], strides = [1, 1]} : vector<32x32xf32> to vector<8x32xf32>
    %cst_30 = arith.constant dense<0.000000e+00> : vector<17x32xf32>
    %59 = tpu.matmul %57, %58, %cst_30 {dimension_numbers = #tpu.dot_dimension_numbers<[1], [0], [0], [1], [0, 0, 1, 1], [], []>} : vector<17x8xf32>, vector<8x32xf32>, vector<17x32xf32> -> vector<17x32xf32>
    %60 = arith.addf %39, %59 : vector<17x32xf32>
    %61 = vector.extract_strided_slice %37 {offsets = [0, 8], sizes = [17, 8], strides = [1, 1]} : vector<17x96xf32> to vector<17x8xf32>
    %62 = vector.extract_strided_slice %37 {offsets = [0, 40], sizes = [17, 8], strides = [1, 1]} : vector<17x96xf32> to vector<17x8xf32>
    %63 = vector.extract_strided_slice %37 {offsets = [0, 72], sizes = [17, 8], strides = [1, 1]} : vector<17x96xf32> to vector<17x8xf32>
    %64 = tpu.transpose %62, [1, 0] : vector<17x8xf32> -> vector<8x17xf32>
    %cst_31 = arith.constant dense<0.000000e+00> : vector<17x17xf32>
    %65 = tpu.matmul %61, %64, %cst_31 {dimension_numbers = #tpu.dot_dimension_numbers<[1], [0], [0], [1], [0, 0, 1, 1], [], []>} : vector<17x8xf32>, vector<8x17xf32>, vector<17x17xf32> -> vector<17x17xf32>
    %cst_32 = arith.constant 0.353553385 : f32
    %66 = vector.broadcast %cst_32 : f32 to vector<17x17xf32>
    %67 = arith.mulf %65, %66 : vector<17x17xf32>
    %cst_33 = arith.constant dense<0xFF800000> : vector<17xf32>
    %68 = vector.multi_reduction <maximumf>, %67, %cst_33 [1] : vector<17x17xf32> to vector<17xf32>
    %69 = vector.shape_cast %68 : vector<17xf32> to vector<17x1xf32>
    %70 = vector.broadcast %69 : vector<17x1xf32> to vector<17x17xf32>
    %71 = arith.subf %67, %70 : vector<17x17xf32>
    %72 = math.exp %71 : vector<17x17xf32>
    %cst_34 = arith.constant dense<0.000000e+00> : vector<17xf32>
    %73 = vector.multi_reduction <add>, %72, %cst_34 [1] : vector<17x17xf32> to vector<17xf32>
    %74 = vector.shape_cast %73 : vector<17xf32> to vector<17x1xf32>
    %75 = tpu.reciprocal %74 {approx = true} : vector<17x1xf32> -> vector<17x1xf32>
    %76 = vector.broadcast %75 : vector<17x1xf32> to vector<17x17xf32>
    %77 = arith.mulf %72, %76 : vector<17x17xf32>
    %cst_35 = arith.constant dense<0.000000e+00> : vector<17x8xf32>
    %78 = tpu.matmul %77, %63, %cst_35 {dimension_numbers = #tpu.dot_dimension_numbers<[1], [0], [0], [1], [0, 0, 1, 1], [], []>} : vector<17x17xf32>, vector<17x8xf32>, vector<17x8xf32> -> vector<17x8xf32>
    %79 = vector.extract_strided_slice %38 {offsets = [8, 0], sizes = [8, 32], strides = [1, 1]} : vector<32x32xf32> to vector<8x32xf32>
    %cst_36 = arith.constant dense<0.000000e+00> : vector<17x32xf32>
    %80 = tpu.matmul %78, %79, %cst_36 {dimension_numbers = #tpu.dot_dimension_numbers<[1], [0], [0], [1], [0, 0, 1, 1], [], []>} : vector<17x8xf32>, vector<8x32xf32>, vector<17x32xf32> -> vector<17x32xf32>
    %81 = arith.addf %60, %80 : vector<17x32xf32>
    %82 = vector.extract_strided_slice %37 {offsets = [0, 16], sizes = [17, 8], strides = [1, 1]} : vector<17x96xf32> to vector<17x8xf32>
    %83 = vector.extract_strided_slice %37 {offsets = [0, 48], sizes = [17, 8], strides = [1, 1]} : vector<17x96xf32> to vector<17x8xf32>
    %84 = vector.extract_strided_slice %37 {offsets = [0, 80], sizes = [17, 8], strides = [1, 1]} : vector<17x96xf32> to vector<17x8xf32>
    %85 = tpu.transpose %83, [1, 0] : vector<17x8xf32> -> vector<8x17xf32>
    %cst_37 = arith.constant dense<0.000000e+00> : vector<17x17xf32>
    %86 = tpu.matmul %82, %85, %cst_37 {dimension_numbers = #tpu.dot_dimension_numbers<[1], [0], [0], [1], [0, 0, 1, 1], [], []>} : vector<17x8xf32>, vector<8x17xf32>, vector<17x17xf32> -> vector<17x17xf32>
    %cst_38 = arith.constant 0.353553385 : f32
    %87 = vector.broadcast %cst_38 : f32 to vector<17x17xf32>
    %88 = arith.mulf %86, %87 : vector<17x17xf32>
    %cst_39 = arith.constant dense<0xFF800000> : vector<17xf32>
    %89 = vector.multi_reduction <maximumf>, %88, %cst_39 [1] : vector<17x17xf32> to vector<17xf32>
    %90 = vector.shape_cast %89 : vector<17xf32> to vector<17x1xf32>
    %91 = vector.broadcast %90 : vector<17x1xf32> to vector<17x17xf32>
    %92 = arith.subf %88, %91 : vector<17x17xf32>
    %93 = math.exp %92 : vector<17x17xf32>
    %cst_40 = arith.constant dense<0.000000e+00> : vector<17xf32>
    %94 = vector.multi_reduction <add>, %93, %cst_40 [1] : vector<17x17xf32> to vector<17xf32>
    %95 = vector.shape_cast %94 : vector<17xf32> to vector<17x1xf32>
    %96 = tpu.reciprocal %95 {approx = true} : vector<17x1xf32> -> vector<17x1xf32>
    %97 = vector.broadcast %96 : vector<17x1xf32> to vector<17x17xf32>
    %98 = arith.mulf %93, %97 : vector<17x17xf32>
    %cst_41 = arith.constant dense<0.000000e+00> : vector<17x8xf32>
    %99 = tpu.matmul %98, %84, %cst_41 {dimension_numbers = #tpu.dot_dimension_numbers<[1], [0], [0], [1], [0, 0, 1, 1], [], []>} : vector<17x17xf32>, vector<17x8xf32>, vector<17x8xf32> -> vector<17x8xf32>
    %100 = vector.extract_strided_slice %38 {offsets = [16, 0], sizes = [8, 32], strides = [1, 1]} : vector<32x32xf32> to vector<8x32xf32>
    %cst_42 = arith.constant dense<0.000000e+00> : vector<17x32xf32>
    %101 = tpu.matmul %99, %100, %cst_42 {dimension_numbers = #tpu.dot_dimension_numbers<[1], [0], [0], [1], [0, 0, 1, 1], [], []>} : vector<17x8xf32>, vector<8x32xf32>, vector<17x32xf32> -> vector<17x32xf32>
    %102 = arith.addf %81, %101 : vector<17x32xf32>
    %103 = vector.extract_strided_slice %37 {offsets = [0, 24], sizes = [17, 8], strides = [1, 1]} : vector<17x96xf32> to vector<17x8xf32>
    %104 = vector.extract_strided_slice %37 {offsets = [0, 56], sizes = [17, 8], strides = [1, 1]} : vector<17x96xf32> to vector<17x8xf32>
    %105 = vector.extract_strided_slice %37 {offsets = [0, 88], sizes = [17, 8], strides = [1, 1]} : vector<17x96xf32> to vector<17x8xf32>
    %106 = tpu.transpose %104, [1, 0] : vector<17x8xf32> -> vector<8x17xf32>
    %cst_43 = arith.constant dense<0.000000e+00> : vector<17x17xf32>
    %107 = tpu.matmul %103, %106, %cst_43 {dimension_numbers = #tpu.dot_dimension_numbers<[1], [0], [0], [1], [0, 0, 1, 1], [], []>} : vector<17x8xf32>, vector<8x17xf32>, vector<17x17xf32> -> vector<17x17xf32>
    %cst_44 = arith.constant 0.353553385 : f32
    %108 = vector.broadcast %cst_44 : f32 to vector<17x17xf32>
    %109 = arith.mulf %107, %108 : vector<17x17xf32>
    %cst_45 = arith.constant dense<0xFF800000> : vector<17xf32>
    %110 = vector.multi_reduction <maximumf>, %109, %cst_45 [1] : vector<17x17xf32> to vector<17xf32>
    %111 = vector.shape_cast %110 : vector<17xf32> to vector<17x1xf32>
    %112 = vector.broadcast %111 : vector<17x1xf32> to vector<17x17xf32>
    %113 = arith.subf %109, %112 : vector<17x17xf32>
    %114 = math.exp %113 : vector<17x17xf32>
    %cst_46 = arith.constant dense<0.000000e+00> : vector<17xf32>
    %115 = vector.multi_reduction <add>, %114, %cst_46 [1] : vector<17x17xf32> to vector<17xf32>
    %116 = vector.shape_cast %115 : vector<17xf32> to vector<17x1xf32>
    %117 = tpu.reciprocal %116 {approx = true} : vector<17x1xf32> -> vector<17x1xf32>
    %118 = vector.broadcast %117 : vector<17x1xf32> to vector<17x17xf32>
    %119 = arith.mulf %114, %118 : vector<17x17xf32>
    %cst_47 = arith.constant dense<0.000000e+00> : vector<17x8xf32>
    %120 = tpu.matmul %119, %105, %cst_47 {dimension_numbers = #tpu.dot_dimension_numbers<[1], [0], [0], [1], [0, 0, 1, 1], [], []>} : vector<17x17xf32>, vector<17x8xf32>, vector<17x8xf32> -> vector<17x8xf32>
    %121 = vector.extract_strided_slice %38 {offsets = [24, 0], sizes = [8, 32], strides = [1, 1]} : vector<32x32xf32> to vector<8x32xf32>
    %cst_48 = arith.constant dense<0.000000e+00> : vector<17x32xf32>
    %122 = tpu.matmul %120, %121, %cst_48 {dimension_numbers = #tpu.dot_dimension_numbers<[1], [0], [0], [1], [0, 0, 1, 1], [], []>} : vector<17x8xf32>, vector<8x32xf32>, vector<17x32xf32> -> vector<17x32xf32>
    %123 = arith.addf %102, %122 : vector<17x32xf32>
    %124 = arith.addf %8, %123 : vector<17x32xf32>
    %c0_49 = arith.constant 0 : index
    %c0_50 = arith.constant 0 : index
    %125 = vector.load %arg10[%c0_49, %c0_50] : memref<1x32xf32, #tpu.memory_space<vmem>>, vector<1x32xf32>
    %126 = vector.broadcast %125 : vector<1x32xf32> to vector<17x32xf32>
    %127 = arith.addf %124, %126 : vector<17x32xf32>
    %c0_51 = arith.constant 0 : index
    %c0_52 = arith.constant 0 : index
    %128 = vector.load %arg11[%c0_51, %c0_52] : memref<1x32xf32, #tpu.memory_space<vmem>>, vector<1x32xf32>
    %c0_53 = arith.constant 0 : index
    %c0_54 = arith.constant 0 : index
    %129 = vector.load %arg12[%c0_53, %c0_54] : memref<1x32xf32, #tpu.memory_space<vmem>>, vector<1x32xf32>
    %cst_55 = arith.constant dense<0.000000e+00> : vector<17xf32>
    %130 = vector.multi_reduction <add>, %127, %cst_55 [1] : vector<17x32xf32> to vector<17xf32>
    %131 = vector.shape_cast %130 : vector<17xf32> to vector<17x1xf32>
    %cst_56 = arith.constant 3.200000e+01 : f32
    %132 = vector.broadcast %cst_56 : f32 to vector<17x1xf32>
    %133 = arith.divf %131, %132 : vector<17x1xf32>
    %134 = vector.broadcast %133 : vector<17x1xf32> to vector<17x32xf32>
    %135 = arith.subf %127, %134 : vector<17x32xf32>
    %136 = arith.mulf %135, %135 : vector<17x32xf32>
    %cst_57 = arith.constant dense<0.000000e+00> : vector<17xf32>
    %137 = vector.multi_reduction <add>, %136, %cst_57 [1] : vector<17x32xf32> to vector<17xf32>
    %138 = vector.shape_cast %137 : vector<17xf32> to vector<17x1xf32>
    %cst_58 = arith.constant 3.200000e+01 : f32
    %139 = vector.broadcast %cst_58 : f32 to vector<17x1xf32>
    %140 = arith.divf %138, %139 : vector<17x1xf32>
    %141 = vector.broadcast %133 : vector<17x1xf32> to vector<17x32xf32>
    %142 = arith.subf %127, %141 : vector<17x32xf32>
    %cst_59 = arith.constant 9.99999996E-13 : f32
    %143 = vector.broadcast %cst_59 : f32 to vector<17x1xf32>
    %144 = arith.addf %140, %143 : vector<17x1xf32>
    %145 = math.rsqrt %144 : vector<17x1xf32>
    %146 = vector.broadcast %145 : vector<17x1xf32> to vector<17x32xf32>
    %147 = arith.mulf %142, %146 : vector<17x32xf32>
    %148 = vector.broadcast %128 : vector<1x32xf32> to vector<17x32xf32>
    %149 = arith.mulf %147, %148 : vector<17x32xf32>
    %150 = vector.broadcast %129 : vector<1x32xf32> to vector<17x32xf32>
    %151 = arith.addf %149, %150 : vector<17x32xf32>
    %c0_60 = arith.constant 0 : index
    %c0_61 = arith.constant 0 : index
    %152 = vector.load %arg13[%c0_60, %c0_61] : memref<32x64xf32, #tpu.memory_space<vmem>>, vector<32x64xf32>
    %cst_62 = arith.constant dense<0.000000e+00> : vector<17x64xf32>
    %153 = tpu.matmul %151, %152, %cst_62 {dimension_numbers = #tpu.dot_dimension_numbers<[1], [0], [0], [1], [0, 0, 1, 1], [], []>} : vector<17x32xf32>, vector<32x64xf32>, vector<17x64xf32> -> vector<17x64xf32>
    %c0_63 = arith.constant 0 : index
    %c0_64 = arith.constant 0 : index
    %154 = vector.load %arg14[%c0_63, %c0_64] : memref<1x64xf32, #tpu.memory_space<vmem>>, vector<1x64xf32>
    %155 = vector.broadcast %154 : vector<1x64xf32> to vector<17x64xf32>
    %156 = arith.addf %153, %155 : vector<17x64xf32>
    %cst_65 = arith.constant 5.000000e-01 : f32
    %157 = vector.broadcast %cst_65 : f32 to vector<17x64xf32>
    %158 = arith.mulf %157, %156 : vector<17x64xf32>
    %cst_66 = arith.constant 4.471500e-02 : f32
    %159 = vector.broadcast %cst_66 : f32 to vector<17x64xf32>
    %160 = arith.mulf %159, %156 : vector<17x64xf32>
    %161 = arith.mulf %160, %156 : vector<17x64xf32>
    %162 = arith.mulf %161, %156 : vector<17x64xf32>
    %163 = arith.addf %156, %162 : vector<17x64xf32>
    %cst_67 = arith.constant 0.797884583 : f32
    %164 = vector.broadcast %cst_67 : f32 to vector<17x64xf32>
    %165 = arith.mulf %164, %163 : vector<17x64xf32>
    %166 = math.tanh %165 : vector<17x64xf32>
    %cst_68 = arith.constant 1.000000e+00 : f32
    %167 = vector.broadcast %cst_68 : f32 to vector<17x64xf32>
    %168 = arith.addf %167, %166 : vector<17x64xf32>
    %169 = arith.mulf %158, %168 : vector<17x64xf32>
    %c0_69 = arith.constant 0 : index
    %c0_70 = arith.constant 0 : index
    %170 = vector.load %arg15[%c0_69, %c0_70] : memref<64x32xf32, #tpu.memory_space<vmem>>, vector<64x32xf32>
    %cst_71 = arith.constant dense<0.000000e+00> : vector<17x32xf32>
    %171 = tpu.matmul %169, %170, %cst_71 {dimension_numbers = #tpu.dot_dimension_numbers<[1], [0], [0], [1], [0, 0, 1, 1], [], []>} : vector<17x64xf32>, vector<64x32xf32>, vector<17x32xf32> -> vector<17x32xf32>
    %172 = arith.addf %127, %171 : vector<17x32xf32>
    %c0_72 = arith.constant 0 : index
    %c0_73 = arith.constant 0 : index
    %173 = vector.load %arg16[%c0_72, %c0_73] : memref<1x32xf32, #tpu.memory_space<vmem>>, vector<1x32xf32>
    %174 = vector.broadcast %173 : vector<1x32xf32> to vector<17x32xf32>
    %175 = arith.addf %172, %174 : vector<17x32xf32>
    %c0_74 = arith.constant 0 : index
    %c0_75 = arith.constant 0 : index
    %176 = vector.load %arg17[%c0_74, %c0_75] : memref<1x32xf32, #tpu.memory_space<vmem>>, vector<1x32xf32>
    %c0_76 = arith.constant 0 : index
    %c0_77 = arith.constant 0 : index
    %177 = vector.load %arg18[%c0_76, %c0_77] : memref<1x32xf32, #tpu.memory_space<vmem>>, vector<1x32xf32>
    %cst_78 = arith.constant dense<0.000000e+00> : vector<17xf32>
    %178 = vector.multi_reduction <add>, %175, %cst_78 [1] : vector<17x32xf32> to vector<17xf32>
    %179 = vector.shape_cast %178 : vector<17xf32> to vector<17x1xf32>
    %cst_79 = arith.constant 3.200000e+01 : f32
    %180 = vector.broadcast %cst_79 : f32 to vector<17x1xf32>
    %181 = arith.divf %179, %180 : vector<17x1xf32>
    %182 = vector.broadcast %181 : vector<17x1xf32> to vector<17x32xf32>
    %183 = arith.subf %175, %182 : vector<17x32xf32>
    %184 = arith.mulf %183, %183 : vector<17x32xf32>
    %cst_80 = arith.constant dense<0.000000e+00> : vector<17xf32>
    %185 = vector.multi_reduction <add>, %184, %cst_80 [1] : vector<17x32xf32> to vector<17xf32>
    %186 = vector.shape_cast %185 : vector<17xf32> to vector<17x1xf32>
    %cst_81 = arith.constant 3.200000e+01 : f32
    %187 = vector.broadcast %cst_81 : f32 to vector<17x1xf32>
    %188 = arith.divf %186, %187 : vector<17x1xf32>
    %189 = vector.broadcast %181 : vector<17x1xf32> to vector<17x32xf32>
    %190 = arith.subf %175, %189 : vector<17x32xf32>
    %cst_82 = arith.constant 9.99999996E-13 : f32
    %191 = vector.broadcast %cst_82 : f32 to vector<17x1xf32>
    %192 = arith.addf %188, %191 : vector<17x1xf32>
    %193 = math.rsqrt %192 : vector<17x1xf32>
    %194 = vector.broadcast %193 : vector<17x1xf32> to vector<17x32xf32>
    %195 = arith.mulf %190, %194 : vector<17x32xf32>
    %196 = vector.broadcast %176 : vector<1x32xf32> to vector<17x32xf32>
    %197 = arith.mulf %195, %196 : vector<17x32xf32>
    %198 = vector.broadcast %177 : vector<1x32xf32> to vector<17x32xf32>
    %199 = arith.addf %197, %198 : vector<17x32xf32>
    %c0_83 = arith.constant 0 : index
    %c0_84 = arith.constant 0 : index
    %200 = vector.load %arg19[%c0_83, %c0_84] : memref<32x96xf32, #tpu.memory_space<vmem>>, vector<32x96xf32>
    %cst_85 = arith.constant dense<0.000000e+00> : vector<17x96xf32>
    %201 = tpu.matmul %199, %200, %cst_85 {dimension_numbers = #tpu.dot_dimension_numbers<[1], [0], [0], [1], [0, 0, 1, 1], [], []>} : vector<17x32xf32>, vector<32x96xf32>, vector<17x96xf32> -> vector<17x96xf32>
    %c0_86 = arith.constant 0 : index
    %c0_87 = arith.constant 0 : index
    %202 = vector.load %arg20[%c0_86, %c0_87] : memref<1x96xf32, #tpu.memory_space<vmem>>, vector<1x96xf32>
    %203 = vector.broadcast %202 : vector<1x96xf32> to vector<17x96xf32>
    %204 = arith.addf %201, %203 : vector<17x96xf32>
    %c0_88 = arith.constant 0 : index
    %c0_89 = arith.constant 0 : index
    %205 = vector.load %arg21[%c0_88, %c0_89] : memref<32x32xf32, #tpu.memory_space<vmem>>, vector<32x32xf32>
    %cst_90 = arith.constant 0.000000e+00 : f32
    %206 = vector.broadcast %cst_90 : f32 to vector<17x32xf32>
    %207 = vector.extract_strided_slice %204 {offsets = [0, 0], sizes = [17, 8], strides = [1, 1]} : vector<17x96xf32> to vector<17x8xf32>
    %208 = vector.extract_strided_slice %204 {offsets = [0, 32], sizes = [17, 8], strides = [1, 1]} : vector<17x96xf32> to vector<17x8xf32>
    %209 = vector.extract_strided_slice %204 {offsets = [0, 64], sizes = [17, 8], strides = [1, 1]} : vector<17x96xf32> to vector<17x8xf32>
    %210 = tpu.transpose %208, [1, 0] : vector<17x8xf32> -> vector<8x17xf32>
    %cst_91 = arith.constant dense<0.000000e+00> : vector<17x17xf32>
    %211 = tpu.matmul %207, %210, %cst_91 {dimension_numbers = #tpu.dot_dimension_numbers<[1], [0], [0], [1], [0, 0, 1, 1], [], []>} : vector<17x8xf32>, vector<8x17xf32>, vector<17x17xf32> -> vector<17x17xf32>
    %cst_92 = arith.constant 0.353553385 : f32
    %212 = vector.broadcast %cst_92 : f32 to vector<17x17xf32>
    %213 = arith.mulf %211, %212 : vector<17x17xf32>
    %cst_93 = arith.constant dense<0xFF800000> : vector<17xf32>
    %214 = vector.multi_reduction <maximumf>, %213, %cst_93 [1] : vector<17x17xf32> to vector<17xf32>
    %215 = vector.shape_cast %214 : vector<17xf32> to vector<17x1xf32>
    %216 = vector.broadcast %215 : vector<17x1xf32> to vector<17x17xf32>
    %217 = arith.subf %213, %216 : vector<17x17xf32>
    %218 = math.exp %217 : vector<17x17xf32>
    %cst_94 = arith.constant dense<0.000000e+00> : vector<17xf32>
    %219 = vector.multi_reduction <add>, %218, %cst_94 [1] : vector<17x17xf32> to vector<17xf32>
    %220 = vector.shape_cast %219 : vector<17xf32> to vector<17x1xf32>
    %221 = tpu.reciprocal %220 {approx = true} : vector<17x1xf32> -> vector<17x1xf32>
    %222 = vector.broadcast %221 : vector<17x1xf32> to vector<17x17xf32>
    %223 = arith.mulf %218, %222 : vector<17x17xf32>
    %cst_95 = arith.constant dense<0.000000e+00> : vector<17x8xf32>
    %224 = tpu.matmul %223, %209, %cst_95 {dimension_numbers = #tpu.dot_dimension_numbers<[1], [0], [0], [1], [0, 0, 1, 1], [], []>} : vector<17x17xf32>, vector<17x8xf32>, vector<17x8xf32> -> vector<17x8xf32>
    %225 = vector.extract_strided_slice %205 {offsets = [0, 0], sizes = [8, 32], strides = [1, 1]} : vector<32x32xf32> to vector<8x32xf32>
    %cst_96 = arith.constant dense<0.000000e+00> : vector<17x32xf32>
    %226 = tpu.matmul %224, %225, %cst_96 {dimension_numbers = #tpu.dot_dimension_numbers<[1], [0], [0], [1], [0, 0, 1, 1], [], []>} : vector<17x8xf32>, vector<8x32xf32>, vector<17x32xf32> -> vector<17x32xf32>
    %227 = arith.addf %206, %226 : vector<17x32xf32>
    %228 = vector.extract_strided_slice %204 {offsets = [0, 8], sizes = [17, 8], strides = [1, 1]} : vector<17x96xf32> to vector<17x8xf32>
    %229 = vector.extract_strided_slice %204 {offsets = [0, 40], sizes = [17, 8], strides = [1, 1]} : vector<17x96xf32> to vector<17x8xf32>
    %230 = vector.extract_strided_slice %204 {offsets = [0, 72], sizes = [17, 8], strides = [1, 1]} : vector<17x96xf32> to vector<17x8xf32>
    %231 = tpu.transpose %229, [1, 0] : vector<17x8xf32> -> vector<8x17xf32>
    %cst_97 = arith.constant dense<0.000000e+00> : vector<17x17xf32>
    %232 = tpu.matmul %228, %231, %cst_97 {dimension_numbers = #tpu.dot_dimension_numbers<[1], [0], [0], [1], [0, 0, 1, 1], [], []>} : vector<17x8xf32>, vector<8x17xf32>, vector<17x17xf32> -> vector<17x17xf32>
    %cst_98 = arith.constant 0.353553385 : f32
    %233 = vector.broadcast %cst_98 : f32 to vector<17x17xf32>
    %234 = arith.mulf %232, %233 : vector<17x17xf32>
    %cst_99 = arith.constant dense<0xFF800000> : vector<17xf32>
    %235 = vector.multi_reduction <maximumf>, %234, %cst_99 [1] : vector<17x17xf32> to vector<17xf32>
    %236 = vector.shape_cast %235 : vector<17xf32> to vector<17x1xf32>
    %237 = vector.broadcast %236 : vector<17x1xf32> to vector<17x17xf32>
    %238 = arith.subf %234, %237 : vector<17x17xf32>
    %239 = math.exp %238 : vector<17x17xf32>
    %cst_100 = arith.constant dense<0.000000e+00> : vector<17xf32>
    %240 = vector.multi_reduction <add>, %239, %cst_100 [1] : vector<17x17xf32> to vector<17xf32>
    %241 = vector.shape_cast %240 : vector<17xf32> to vector<17x1xf32>
    %242 = tpu.reciprocal %241 {approx = true} : vector<17x1xf32> -> vector<17x1xf32>
    %243 = vector.broadcast %242 : vector<17x1xf32> to vector<17x17xf32>
    %244 = arith.mulf %239, %243 : vector<17x17xf32>
    %cst_101 = arith.constant dense<0.000000e+00> : vector<17x8xf32>
    %245 = tpu.matmul %244, %230, %cst_101 {dimension_numbers = #tpu.dot_dimension_numbers<[1], [0], [0], [1], [0, 0, 1, 1], [], []>} : vector<17x17xf32>, vector<17x8xf32>, vector<17x8xf32> -> vector<17x8xf32>
    %246 = vector.extract_strided_slice %205 {offsets = [8, 0], sizes = [8, 32], strides = [1, 1]} : vector<32x32xf32> to vector<8x32xf32>
    %cst_102 = arith.constant dense<0.000000e+00> : vector<17x32xf32>
    %247 = tpu.matmul %245, %246, %cst_102 {dimension_numbers = #tpu.dot_dimension_numbers<[1], [0], [0], [1], [0, 0, 1, 1], [], []>} : vector<17x8xf32>, vector<8x32xf32>, vector<17x32xf32> -> vector<17x32xf32>
    %248 = arith.addf %227, %247 : vector<17x32xf32>
    %249 = vector.extract_strided_slice %204 {offsets = [0, 16], sizes = [17, 8], strides = [1, 1]} : vector<17x96xf32> to vector<17x8xf32>
    %250 = vector.extract_strided_slice %204 {offsets = [0, 48], sizes = [17, 8], strides = [1, 1]} : vector<17x96xf32> to vector<17x8xf32>
    %251 = vector.extract_strided_slice %204 {offsets = [0, 80], sizes = [17, 8], strides = [1, 1]} : vector<17x96xf32> to vector<17x8xf32>
    %252 = tpu.transpose %250, [1, 0] : vector<17x8xf32> -> vector<8x17xf32>
    %cst_103 = arith.constant dense<0.000000e+00> : vector<17x17xf32>
    %253 = tpu.matmul %249, %252, %cst_103 {dimension_numbers = #tpu.dot_dimension_numbers<[1], [0], [0], [1], [0, 0, 1, 1], [], []>} : vector<17x8xf32>, vector<8x17xf32>, vector<17x17xf32> -> vector<17x17xf32>
    %cst_104 = arith.constant 0.353553385 : f32
    %254 = vector.broadcast %cst_104 : f32 to vector<17x17xf32>
    %255 = arith.mulf %253, %254 : vector<17x17xf32>
    %cst_105 = arith.constant dense<0xFF800000> : vector<17xf32>
    %256 = vector.multi_reduction <maximumf>, %255, %cst_105 [1] : vector<17x17xf32> to vector<17xf32>
    %257 = vector.shape_cast %256 : vector<17xf32> to vector<17x1xf32>
    %258 = vector.broadcast %257 : vector<17x1xf32> to vector<17x17xf32>
    %259 = arith.subf %255, %258 : vector<17x17xf32>
    %260 = math.exp %259 : vector<17x17xf32>
    %cst_106 = arith.constant dense<0.000000e+00> : vector<17xf32>
    %261 = vector.multi_reduction <add>, %260, %cst_106 [1] : vector<17x17xf32> to vector<17xf32>
    %262 = vector.shape_cast %261 : vector<17xf32> to vector<17x1xf32>
    %263 = tpu.reciprocal %262 {approx = true} : vector<17x1xf32> -> vector<17x1xf32>
    %264 = vector.broadcast %263 : vector<17x1xf32> to vector<17x17xf32>
    %265 = arith.mulf %260, %264 : vector<17x17xf32>
    %cst_107 = arith.constant dense<0.000000e+00> : vector<17x8xf32>
    %266 = tpu.matmul %265, %251, %cst_107 {dimension_numbers = #tpu.dot_dimension_numbers<[1], [0], [0], [1], [0, 0, 1, 1], [], []>} : vector<17x17xf32>, vector<17x8xf32>, vector<17x8xf32> -> vector<17x8xf32>
    %267 = vector.extract_strided_slice %205 {offsets = [16, 0], sizes = [8, 32], strides = [1, 1]} : vector<32x32xf32> to vector<8x32xf32>
    %cst_108 = arith.constant dense<0.000000e+00> : vector<17x32xf32>
    %268 = tpu.matmul %266, %267, %cst_108 {dimension_numbers = #tpu.dot_dimension_numbers<[1], [0], [0], [1], [0, 0, 1, 1], [], []>} : vector<17x8xf32>, vector<8x32xf32>, vector<17x32xf32> -> vector<17x32xf32>
    %269 = arith.addf %248, %268 : vector<17x32xf32>
    %270 = vector.extract_strided_slice %204 {offsets = [0, 24], sizes = [17, 8], strides = [1, 1]} : vector<17x96xf32> to vector<17x8xf32>
    %271 = vector.extract_strided_slice %204 {offsets = [0, 56], sizes = [17, 8], strides = [1, 1]} : vector<17x96xf32> to vector<17x8xf32>
    %272 = vector.extract_strided_slice %204 {offsets = [0, 88], sizes = [17, 8], strides = [1, 1]} : vector<17x96xf32> to vector<17x8xf32>
    %273 = tpu.transpose %271, [1, 0] : vector<17x8xf32> -> vector<8x17xf32>
    %cst_109 = arith.constant dense<0.000000e+00> : vector<17x17xf32>
    %274 = tpu.matmul %270, %273, %cst_109 {dimension_numbers = #tpu.dot_dimension_numbers<[1], [0], [0], [1], [0, 0, 1, 1], [], []>} : vector<17x8xf32>, vector<8x17xf32>, vector<17x17xf32> -> vector<17x17xf32>
    %cst_110 = arith.constant 0.353553385 : f32
    %275 = vector.broadcast %cst_110 : f32 to vector<17x17xf32>
    %276 = arith.mulf %274, %275 : vector<17x17xf32>
    %cst_111 = arith.constant dense<0xFF800000> : vector<17xf32>
    %277 = vector.multi_reduction <maximumf>, %276, %cst_111 [1] : vector<17x17xf32> to vector<17xf32>
    %278 = vector.shape_cast %277 : vector<17xf32> to vector<17x1xf32>
    %279 = vector.broadcast %278 : vector<17x1xf32> to vector<17x17xf32>
    %280 = arith.subf %276, %279 : vector<17x17xf32>
    %281 = math.exp %280 : vector<17x17xf32>
    %cst_112 = arith.constant dense<0.000000e+00> : vector<17xf32>
    %282 = vector.multi_reduction <add>, %281, %cst_112 [1] : vector<17x17xf32> to vector<17xf32>
    %283 = vector.shape_cast %282 : vector<17xf32> to vector<17x1xf32>
    %284 = tpu.reciprocal %283 {approx = true} : vector<17x1xf32> -> vector<17x1xf32>
    %285 = vector.broadcast %284 : vector<17x1xf32> to vector<17x17xf32>
    %286 = arith.mulf %281, %285 : vector<17x17xf32>
    %cst_113 = arith.constant dense<0.000000e+00> : vector<17x8xf32>
    %287 = tpu.matmul %286, %272, %cst_113 {dimension_numbers = #tpu.dot_dimension_numbers<[1], [0], [0], [1], [0, 0, 1, 1], [], []>} : vector<17x17xf32>, vector<17x8xf32>, vector<17x8xf32> -> vector<17x8xf32>
    %288 = vector.extract_strided_slice %205 {offsets = [24, 0], sizes = [8, 32], strides = [1, 1]} : vector<32x32xf32> to vector<8x32xf32>
    %cst_114 = arith.constant dense<0.000000e+00> : vector<17x32xf32>
    %289 = tpu.matmul %287, %288, %cst_114 {dimension_numbers = #tpu.dot_dimension_numbers<[1], [0], [0], [1], [0, 0, 1, 1], [], []>} : vector<17x8xf32>, vector<8x32xf32>, vector<17x32xf32> -> vector<17x32xf32>
    %290 = arith.addf %269, %289 : vector<17x32xf32>
    %291 = arith.addf %175, %290 : vector<17x32xf32>
    %c0_115 = arith.constant 0 : index
    %c0_116 = arith.constant 0 : index
    %292 = vector.load %arg22[%c0_115, %c0_116] : memref<1x32xf32, #tpu.memory_space<vmem>>, vector<1x32xf32>
    %293 = vector.broadcast %292 : vector<1x32xf32> to vector<17x32xf32>
    %294 = arith.addf %291, %293 : vector<17x32xf32>
    %c0_117 = arith.constant 0 : index
    %c0_118 = arith.constant 0 : index
    %295 = vector.load %arg23[%c0_117, %c0_118] : memref<1x32xf32, #tpu.memory_space<vmem>>, vector<1x32xf32>
    %c0_119 = arith.constant 0 : index
    %c0_120 = arith.constant 0 : index
    %296 = vector.load %arg24[%c0_119, %c0_120] : memref<1x32xf32, #tpu.memory_space<vmem>>, vector<1x32xf32>
    %cst_121 = arith.constant dense<0.000000e+00> : vector<17xf32>
    %297 = vector.multi_reduction <add>, %294, %cst_121 [1] : vector<17x32xf32> to vector<17xf32>
    %298 = vector.shape_cast %297 : vector<17xf32> to vector<17x1xf32>
    %cst_122 = arith.constant 3.200000e+01 : f32
    %299 = vector.broadcast %cst_122 : f32 to vector<17x1xf32>
    %300 = arith.divf %298, %299 : vector<17x1xf32>
    %301 = vector.broadcast %300 : vector<17x1xf32> to vector<17x32xf32>
    %302 = arith.subf %294, %301 : vector<17x32xf32>
    %303 = arith.mulf %302, %302 : vector<17x32xf32>
    %cst_123 = arith.constant dense<0.000000e+00> : vector<17xf32>
    %304 = vector.multi_reduction <add>, %303, %cst_123 [1] : vector<17x32xf32> to vector<17xf32>
    %305 = vector.shape_cast %304 : vector<17xf32> to vector<17x1xf32>
    %cst_124 = arith.constant 3.200000e+01 : f32
    %306 = vector.broadcast %cst_124 : f32 to vector<17x1xf32>
    %307 = arith.divf %305, %306 : vector<17x1xf32>
    %308 = vector.broadcast %300 : vector<17x1xf32> to vector<17x32xf32>
    %309 = arith.subf %294, %308 : vector<17x32xf32>
    %cst_125 = arith.constant 9.99999996E-13 : f32
    %310 = vector.broadcast %cst_125 : f32 to vector<17x1xf32>
    %311 = arith.addf %307, %310 : vector<17x1xf32>
    %312 = math.rsqrt %311 : vector<17x1xf32>
    %313 = vector.broadcast %312 : vector<17x1xf32> to vector<17x32xf32>
    %314 = arith.mulf %309, %313 : vector<17x32xf32>
    %315 = vector.broadcast %295 : vector<1x32xf32> to vector<17x32xf32>
    %316 = arith.mulf %314, %315 : vector<17x32xf32>
    %317 = vector.broadcast %296 : vector<1x32xf32> to vector<17x32xf32>
    %318 = arith.addf %316, %317 : vector<17x32xf32>
    %c0_126 = arith.constant 0 : index
    %c0_127 = arith.constant 0 : index
    %319 = vector.load %arg25[%c0_126, %c0_127] : memref<32x64xf32, #tpu.memory_space<vmem>>, vector<32x64xf32>
    %cst_128 = arith.constant dense<0.000000e+00> : vector<17x64xf32>
    %320 = tpu.matmul %318, %319, %cst_128 {dimension_numbers = #tpu.dot_dimension_numbers<[1], [0], [0], [1], [0, 0, 1, 1], [], []>} : vector<17x32xf32>, vector<32x64xf32>, vector<17x64xf32> -> vector<17x64xf32>
    %c0_129 = arith.constant 0 : index
    %c0_130 = arith.constant 0 : index
    %321 = vector.load %arg26[%c0_129, %c0_130] : memref<1x64xf32, #tpu.memory_space<vmem>>, vector<1x64xf32>
    %322 = vector.broadcast %321 : vector<1x64xf32> to vector<17x64xf32>
    %323 = arith.addf %320, %322 : vector<17x64xf32>
    %cst_131 = arith.constant 5.000000e-01 : f32
    %324 = vector.broadcast %cst_131 : f32 to vector<17x64xf32>
    %325 = arith.mulf %324, %323 : vector<17x64xf32>
    %cst_132 = arith.constant 4.471500e-02 : f32
    %326 = vector.broadcast %cst_132 : f32 to vector<17x64xf32>
    %327 = arith.mulf %326, %323 : vector<17x64xf32>
    %328 = arith.mulf %327, %323 : vector<17x64xf32>
    %329 = arith.mulf %328, %323 : vector<17x64xf32>
    %330 = arith.addf %323, %329 : vector<17x64xf32>
    %cst_133 = arith.constant 0.797884583 : f32
    %331 = vector.broadcast %cst_133 : f32 to vector<17x64xf32>
    %332 = arith.mulf %331, %330 : vector<17x64xf32>
    %333 = math.tanh %332 : vector<17x64xf32>
    %cst_134 = arith.constant 1.000000e+00 : f32
    %334 = vector.broadcast %cst_134 : f32 to vector<17x64xf32>
    %335 = arith.addf %334, %333 : vector<17x64xf32>
    %336 = arith.mulf %325, %335 : vector<17x64xf32>
    %c0_135 = arith.constant 0 : index
    %c0_136 = arith.constant 0 : index
    %337 = vector.load %arg27[%c0_135, %c0_136] : memref<64x32xf32, #tpu.memory_space<vmem>>, vector<64x32xf32>
    %cst_137 = arith.constant dense<0.000000e+00> : vector<17x32xf32>
    %338 = tpu.matmul %336, %337, %cst_137 {dimension_numbers = #tpu.dot_dimension_numbers<[1], [0], [0], [1], [0, 0, 1, 1], [], []>} : vector<17x64xf32>, vector<64x32xf32>, vector<17x32xf32> -> vector<17x32xf32>
    %339 = arith.addf %294, %338 : vector<17x32xf32>
    %c0_138 = arith.constant 0 : index
    %c0_139 = arith.constant 0 : index
    %340 = vector.load %arg28[%c0_138, %c0_139] : memref<1x32xf32, #tpu.memory_space<vmem>>, vector<1x32xf32>
    %341 = vector.broadcast %340 : vector<1x32xf32> to vector<17x32xf32>
    %342 = arith.addf %339, %341 : vector<17x32xf32>
    %c0_140 = arith.constant 0 : index
    %c0_141 = arith.constant 0 : index
    %343 = vector.load %arg29[%c0_140, %c0_141] : memref<1x32xf32, #tpu.memory_space<vmem>>, vector<1x32xf32>
    %c0_142 = arith.constant 0 : index
    %c0_143 = arith.constant 0 : index
    %344 = vector.load %arg30[%c0_142, %c0_143] : memref<1x32xf32, #tpu.memory_space<vmem>>, vector<1x32xf32>
    %cst_144 = arith.constant dense<0.000000e+00> : vector<17xf32>
    %345 = vector.multi_reduction <add>, %342, %cst_144 [1] : vector<17x32xf32> to vector<17xf32>
    %346 = vector.shape_cast %345 : vector<17xf32> to vector<17x1xf32>
    %cst_145 = arith.constant 3.200000e+01 : f32
    %347 = vector.broadcast %cst_145 : f32 to vector<17x1xf32>
    %348 = arith.divf %346, %347 : vector<17x1xf32>
    %349 = vector.broadcast %348 : vector<17x1xf32> to vector<17x32xf32>
    %350 = arith.subf %342, %349 : vector<17x32xf32>
    %351 = arith.mulf %350, %350 : vector<17x32xf32>
    %cst_146 = arith.constant dense<0.000000e+00> : vector<17xf32>
    %352 = vector.multi_reduction <add>, %351, %cst_146 [1] : vector<17x32xf32> to vector<17xf32>
    %353 = vector.shape_cast %352 : vector<17xf32> to vector<17x1xf32>
    %cst_147 = arith.constant 3.200000e+01 : f32
    %354 = vector.broadcast %cst_147 : f32 to vector<17x1xf32>
    %355 = arith.divf %353, %354 : vector<17x1xf32>
    %356 = vector.broadcast %348 : vector<17x1xf32> to vector<17x32xf32>
    %357 = arith.subf %342, %356 : vector<17x32xf32>
    %cst_148 = arith.constant 9.99999996E-13 : f32
    %358 = vector.broadcast %cst_148 : f32 to vector<17x1xf32>
    %359 = arith.addf %355, %358 : vector<17x1xf32>
    %360 = math.rsqrt %359 : vector<17x1xf32>
    %361 = vector.broadcast %360 : vector<17x1xf32> to vector<17x32xf32>
    %362 = arith.mulf %357, %361 : vector<17x32xf32>
    %363 = vector.broadcast %343 : vector<1x32xf32> to vector<17x32xf32>
    %364 = arith.mulf %362, %363 : vector<17x32xf32>
    %365 = vector.broadcast %344 : vector<1x32xf32> to vector<17x32xf32>
    %366 = arith.addf %364, %365 : vector<17x32xf32>
    %c0_149 = arith.constant 0 : index
    %c0_150 = arith.constant 0 : index
    %367 = vector.load %arg31[%c0_149, %c0_150] : memref<32x128xf32, #tpu.memory_space<vmem>>, vector<32x128xf32>
    %cst_151 = arith.constant dense<0.000000e+00> : vector<17x128xf32>
    %368 = tpu.matmul %366, %367, %cst_151 {dimension_numbers = #tpu.dot_dimension_numbers<[1], [0], [0], [1], [0, 0, 1, 1], [], []>} : vector<17x32xf32>, vector<32x128xf32>, vector<17x128xf32> -> vector<17x128xf32>
    %c0_152 = arith.constant 0 : index
    %c0_153 = arith.constant 0 : index
    %369 = vector.load %arg32[%c0_152, %c0_153] : memref<1x128xf32, #tpu.memory_space<vmem>>, vector<1x128xf32>
    %370 = vector.broadcast %369 : vector<1x128xf32> to vector<17x128xf32>
    %371 = arith.addf %368, %370 : vector<17x128xf32>
    %cst_154 = arith.constant dense<0xFF800000> : vector<128xf32>
    %372 = vector.multi_reduction <maximumf>, %371, %cst_154 [0] : vector<17x128xf32> to vector<128xf32>
    %373 = vector.shape_cast %372 : vector<128xf32> to vector<1x128xf32>
    %374 = vector.broadcast %373 : vector<1x128xf32> to vector<17x128xf32>
    %375 = arith.subf %371, %374 : vector<17x128xf32>
    %376 = math.exp %375 : vector<17x128xf32>
    %cst_155 = arith.constant dense<0.000000e+00> : vector<128xf32>
    %377 = vector.multi_reduction <add>, %376, %cst_155 [0] : vector<17x128xf32> to vector<128xf32>
    %378 = vector.shape_cast %377 : vector<128xf32> to vector<1x128xf32>
    %379 = vector.broadcast %378 : vector<1x128xf32> to vector<17x128xf32>
    %380 = arith.divf %376, %379 : vector<17x128xf32>
    %c0_156 = arith.constant 0 : index
    %c0_157 = arith.constant 0 : index
    %c0_158 = arith.constant 0 : index
    %381 = vector.load %arg33[%c0_156, %c0_157, %c0_158] : memref<1x17x128xf32, #tpu.memory_space<vmem>>, vector<1x17x128xf32>
    %382 = vector.shape_cast %381 : vector<1x17x128xf32> to vector<17x128xf32>
    %383 = vector.shape_cast %380 : vector<17x128xf32> to vector<1x17x128xf32>
    tpu.vector_store %arg33[%c0_156, %c0_157, %c0_158], %383 {strides = array<i32>} : memref<1x17x128xf32, #tpu.memory_space<vmem>>, vector<1x17x128xf32>,
    return
  }
  func.func @transform_0(%arg0: i32) -> (i32, i32, i32) {
    %c0_i32 = arith.constant 0 : i32
    %c0_i32_0 = arith.constant 0 : i32
    %c0_i32_1 = arith.constant 0 : i32
    return %arg0, %c0_i32, %c0_i32_0 : i32, i32, i32
  }
  func.func @transform_1(%arg0: i32) -> (i32, i32) {
    %c0_i32 = arith.constant 0 : i32
    %c0_i32_0 = arith.constant 0 : i32
    %c0_i32_1 = arith.constant 0 : i32
    return %c0_i32, %c0_i32_0 : i32, i32
  }
  func.func @transform_2(%arg0: i32) -> (i32, i32) {
    %c0_i32 = arith.constant 0 : i32
    %c0_i32_0 = arith.constant 0 : i32
    %c0_i32_1 = arith.constant 0 : i32
    return %c0_i32, %c0_i32_0 : i32, i32
  }
  func.func @transform_3(%arg0: i32) -> (i32, i32) {
    %c0_i32 = arith.constant 0 : i32
    %c0_i32_0 = arith.constant 0 : i32
    %c0_i32_1 = arith.constant 0 : i32
    return %c0_i32, %c0_i32_0 : i32, i32
  }
  func.func @transform_4(%arg0: i32) -> (i32, i32) {
    %c0_i32 = arith.constant 0 : i32
    %c0_i32_0 = arith.constant 0 : i32
    %c0_i32_1 = arith.constant 0 : i32
    return %c0_i32, %c0_i32_0 : i32, i32
  }
  func.func @transform_5(%arg0: i32) -> (i32, i32) {
    %c0_i32 = arith.constant 0 : i32
    %c0_i32_0 = arith.constant 0 : i32
    %c0_i32_1 = arith.constant 0 : i32
    return %c0_i32, %c0_i32_0 : i32, i32
  }
  func.func @transform_6(%arg0: i32) -> (i32, i32) {
    %c0_i32 = arith.constant 0 : i32
    %c0_i32_0 = arith.constant 0 : i32
    %c0_i32_1 = arith.constant 0 : i32
    return %c0_i32, %c0_i32_0 : i32, i32
  }
  func.func @transform_7(%arg0: i32) -> (i32, i32) {
    %c0_i32 = arith.constant 0 : i32
    %c0_i32_0 = arith.constant 0 : i32
    %c0_i32_1 = arith.constant 0 : i32
    return %c0_i32, %c0_i32_0 : i32, i32
  }
  func.func @transform_8(%arg0: i32) -> (i32, i32) {
    %c0_i32 = arith.constant 0 : i32
    %c0_i32_0 = arith.constant 0 : i32
    %c0_i32_1 = arith.constant 0 : i32
    return %c0_i32, %c0_i32_0 : i32, i32
  }
  func.func @transform_9(%arg0: i32) -> (i32, i32) {
    %c0_i32 = arith.constant 0 : i32
    %c0_i32_0 = arith.constant 0 : i32
    %c0_i32_1 = arith.constant 0 : i32
    return %c0_i32, %c0_i32_0 : i32, i32
  }
  func.func @transform_10(%arg0: i32) -> (i32, i32) {
    %c0_i32 = arith.constant 0 : i32
    %c0_i32_0 = arith.constant 0 : i32
    %c0_i32_1 = arith.constant 0 : i32
    return %c0_i32, %c0_i32_0 : i32, i32
  }
  func.func @transform_11(%arg0: i32) -> (i32, i32) {
    %c0_i32 = arith.constant 0 : i32
    %c0_i32_0 = arith.constant 0 : i32
    %c0_i32_1 = arith.constant 0 : i32
    return %c0_i32, %c0_i32_0 : i32, i32
  }
  func.func @transform_12(%arg0: i32) -> (i32, i32) {
    %c0_i32 = arith.constant 0 : i32
    %c0_i32_0 = arith.constant 0 : i32
    %c0_i32_1 = arith.constant 0 : i32
    return %c0_i32, %c0_i32_0 : i32, i32
  }
  func.func @transform_13(%arg0: i32) -> (i32, i32) {
    %c0_i32 = arith.constant 0 : i32
    %c0_i32_0 = arith.constant 0 : i32
    %c0_i32_1 = arith.constant 0 : i32
    return %c0_i32, %c0_i32_0 : i32, i32
  }
  func.func @transform_14(%arg0: i32) -> (i32, i32) {
    %c0_i32 = arith.constant 0 : i32
    %c0_i32_0 = arith.constant 0 : i32
    %c0_i32_1 = arith.constant 0 : i32
    return %c0_i32, %c0_i32_0 : i32, i32
  }
  func.func @transform_15(%arg0: i32) -> (i32, i32) {
    %c0_i32 = arith.constant 0 : i32
    %c0_i32_0 = arith.constant 0 : i32
    %c0_i32_1 = arith.constant 0 : i32
    return %c0_i32, %c0_i32_0 : i32, i32
  }
  func.func @transform_16(%arg0: i32) -> (i32, i32) {
    %c0_i32 = arith.constant 0 : i32
    %c0_i32_0 = arith.constant 0 : i32
    %c0_i32_1 = arith.constant 0 : i32
    return %c0_i32, %c0_i32_0 : i32, i32
  }
  func.func @transform_17(%arg0: i32) -> (i32, i32) {
    %c0_i32 = arith.constant 0 : i32
    %c0_i32_0 = arith.constant 0 : i32
    %c0_i32_1 = arith.constant 0 : i32
    return %c0_i32, %c0_i32_0 : i32, i32
  }
  func.func @transform_18(%arg0: i32) -> (i32, i32) {
    %c0_i32 = arith.constant 0 : i32
    %c0_i32_0 = arith.constant 0 : i32
    %c0_i32_1 = arith.constant 0 : i32
    return %c0_i32, %c0_i32_0 : i32, i32
  }
  func.func @transform_19(%arg0: i32) -> (i32, i32) {
    %c0_i32 = arith.constant 0 : i32
    %c0_i32_0 = arith.constant 0 : i32
    %c0_i32_1 = arith.constant 0 : i32
    return %c0_i32, %c0_i32_0 : i32, i32
  }
  func.func @transform_20(%arg0: i32) -> (i32, i32) {
    %c0_i32 = arith.constant 0 : i32
    %c0_i32_0 = arith.constant 0 : i32
    %c0_i32_1 = arith.constant 0 : i32
    return %c0_i32, %c0_i32_0 : i32, i32
  }
  func.func @transform_21(%arg0: i32) -> (i32, i32) {
    %c0_i32 = arith.constant 0 : i32
    %c0_i32_0 = arith.constant 0 : i32
    %c0_i32_1 = arith.constant 0 : i32
    return %c0_i32, %c0_i32_0 : i32, i32
  }
  func.func @transform_22(%arg0: i32) -> (i32, i32) {
    %c0_i32 = arith.constant 0 : i32
    %c0_i32_0 = arith.constant 0 : i32
    %c0_i32_1 = arith.constant 0 : i32
    return %c0_i32, %c0_i32_0 : i32, i32
  }
  func.func @transform_23(%arg0: i32) -> (i32, i32) {
    %c0_i32 = arith.constant 0 : i32
    %c0_i32_0 = arith.constant 0 : i32
    %c0_i32_1 = arith.constant 0 : i32
    return %c0_i32, %c0_i32_0 : i32, i32
  }
  func.func @transform_24(%arg0: i32) -> (i32, i32) {
    %c0_i32 = arith.constant 0 : i32
    %c0_i32_0 = arith.constant 0 : i32
    %c0_i32_1 = arith.constant 0 : i32
    return %c0_i32, %c0_i32_0 : i32, i32
  }
  func.func @transform_25(%arg0: i32) -> (i32, i32) {
    %c0_i32 = arith.constant 0 : i32
    %c0_i32_0 = arith.constant 0 : i32
    %c0_i32_1 = arith.constant 0 : i32
    return %c0_i32, %c0_i32_0 : i32, i32
  }
  func.func @transform_26(%arg0: i32) -> (i32, i32) {
    %c0_i32 = arith.constant 0 : i32
    %c0_i32_0 = arith.constant 0 : i32
    %c0_i32_1 = arith.constant 0 : i32
    return %c0_i32, %c0_i32_0 : i32, i32
  }
  func.func @transform_27(%arg0: i32) -> (i32, i32) {
    %c0_i32 = arith.constant 0 : i32
    %c0_i32_0 = arith.constant 0 : i32
    %c0_i32_1 = arith.constant 0 : i32
    return %c0_i32, %c0_i32_0 : i32, i32
  }
  func.func @transform_28(%arg0: i32) -> (i32, i32) {
    %c0_i32 = arith.constant 0 : i32
    %c0_i32_0 = arith.constant 0 : i32
    %c0_i32_1 = arith.constant 0 : i32
    return %c0_i32, %c0_i32_0 : i32, i32
  }
  func.func @transform_29(%arg0: i32) -> (i32, i32) {
    %c0_i32 = arith.constant 0 : i32
    %c0_i32_0 = arith.constant 0 : i32
    %c0_i32_1 = arith.constant 0 : i32
    return %c0_i32, %c0_i32_0 : i32, i32
  }
  func.func @transform_30(%arg0: i32) -> (i32, i32) {
    %c0_i32 = arith.constant 0 : i32
    %c0_i32_0 = arith.constant 0 : i32
    %c0_i32_1 = arith.constant 0 : i32
    return %c0_i32, %c0_i32_0 : i32, i32
  }
  func.func @transform_31(%arg0: i32) -> (i32, i32) {
    %c0_i32 = arith.constant 0 : i32
    %c0_i32_0 = arith.constant 0 : i32
    %c0_i32_1 = arith.constant 0 : i32
    return %c0_i32, %c0_i32_0 : i32, i32
  }
  func.func @transform_32(%arg0: i32) -> (i32, i32, i32) {
    %c0_i32 = arith.constant 0 : i32
    %c0_i32_0 = arith.constant 0 : i32
    %c0_i32_1 = arith.constant 0 : i32
    return %arg0, %c0_i32, %c0_i32_0 : i32, i32, i32
  }
}

</mosaic_0001>

<bundles_post_ra>
// kernel: _lambda_.1
= control target key start
LH: loop header
LB: loop body
LE: loop exit
PB: predicated region body
PF: predicated region fallthrough
CT: control target
= control target key end

     0   :  { %s3733_s6 = smov 1   ;;  %s3734_s10 = smov 2   ;;  %s4577_s0 = inlined_call_operand.smem [shape: u32[33], index: -1, kind: input, shape index: {}] }
   0x1   :  { %s3785_s5 = sld [smem:[%s4577_s0]]   ;;  %s3735_s14 = smov 3  }
   0x2   :  { %s3790_s9 = sld [smem:[%s4577_s0 + %s3733_s6]]   ;;  %s3736_s18 = smov 4  }
   0x3   :  { %s3795_s13 = sld [smem:[%s4577_s0 + %s3734_s10]]   ;;  %s3737_s22 = smov 5  }
   0x4   :  { %s3800_s17 = sld [smem:[%s4577_s0 + %s3735_s14]]   ;;  %s3738_s26 = smov 6  }
   0x5   :  { %s3805_s21 = sld [smem:[%s4577_s0 + %s3736_s18]]   ;;  %s3739_s30 = smov 7  }
   0x6   :  { %s3810_s25 = sld [smem:[%s4577_s0 + %s3737_s22]]   ;;  %s3740_s4 = smov 8  }
   0x7   :  { %s3815_s29 = sld [smem:[%s4577_s0 + %s3738_s26]]   ;;  %s3741_s10 = smov 9  }
   0x8   :  { %s3820_s3 = sld [smem:[%s4577_s0 + %s3739_s30]]   ;;  %s3742_s15 = smov 10  }
   0x9   :  { %s3825_s8 = sld [smem:[%s4577_s0 + %s3740_s4]]   ;;  %s3743_s20 = smov 11  }
   0xa   :  { %s3830_s14 = sld [smem:[%s4577_s0 + %s3741_s10]]   ;;  %s3744_s26 = smov 12  }
   0xb   :  { %s3835_s19 = sld [smem:[%s4577_s0 + %s3742_s15]]   ;;  %s3745_s1 = smov 13  }
   0xc   :  { %s3840_s24 = sld [smem:[%s4577_s0 + %s3743_s20]]   ;;  %s3746_s7 = smov 14  }
   0xd   :  { %s3845_s30 = sld [smem:[%s4577_s0 + %s3744_s26]]   ;;  %s3747_s15 = smov 15  }
   0xe   :  { %s3850_s6 = sld [smem:[%s4577_s0 + %s3745_s1]]   ;;  %s3748_s22 = smov 16  }
   0xf   :  { %s3855_s12 = sld [smem:[%s4577_s0 + %s3746_s7]]   ;;  %s3749_s28 = smov 17  }
  0x10   :  { %s3860_s20 = sld [smem:[%s4577_s0 + %s3747_s15]]   ;;  %s3750_s7 = smov 18  }
  0x11   :  { %s3865_s27 = sld [smem:[%s4577_s0 + %s3748_s22]]   ;;  %s3751_s15 = smov 19  }
  0x12   :  { %s3870_s4 = sld [smem:[%s4577_s0 + %s3749_s28]]   ;;  %s3752_s22 = smov 20  }
  0x13   :  { %s3753_s28 = smov 21  }
  0x14   :  { %4589 = sst [smem:[#allocation2_spill]] %s3850_s6 }
  0x15   :  { %s3875_s6 = sld [smem:[%s4577_s0 + %s3750_s7]]   ;;  %s3754_s7 = smov 22  }
  0x16   :  { %4590 = sst [smem:[#allocation3_spill]] %s3860_s20 }
  0x17   :  { %4591 = sst [smem:[#allocation4_spill]] %s3865_s27 }
  0x18   :  { %4592 = sst [smem:[#allocation5_spill]] %s3870_s4 }
  0x19   :  { %s3880_s20 = sld [smem:[%s4577_s0 + %s3751_s15]]   ;;  %s3755_s15 = smov 23  }
  0x1a   :  { %s3885_s27 = sld [smem:[%s4577_s0 + %s3752_s22]]   ;;  %s3756_s22 = smov 24  }
  0x1b   :  { %4593 = sst [smem:[#allocation6_spill]] %s3875_s6 }
  0x1c   :  { %s3890_s4 = sld [smem:[%s4577_s0 + %s3753_s28]]   ;;  %s3757_s28 = smov 25  }
  0x1d   :  { %s3895_s6 = sld [smem:[%s4577_s0 + %s3754_s7]]   ;;  %s3758_s7 = smov 26  }
  0x1f   :  { %4594 = sst [smem:[#allocation7_spill]] %s3880_s20 }
  0x20   :  { %4595 = sst [smem:[#allocation8_spill]] %s3885_s27 }
  0x21   :  { %s3900_s20 = sld [smem:[%s4577_s0 + %s3755_s15]]   ;;  %s3759_s15 = smov 27  }
  0x22   :  { %4596 = sst [smem:[#allocation9_spill]] %s3890_s4 }
  0x23   :  { %4597 = sst [smem:[#allocation10_spill]] %s3895_s6 }
  0x24   :  { %s3905_s27 = sld [smem:[%s4577_s0 + %s3756_s22]]   ;;  %s3760_s22 = smov 28  }
  0x25   :  { %s3910_s4 = sld [smem:[%s4577_s0 + %s3757_s28]]   ;;  %s3761_s28 = smov 29  }
  0x26   :  { %s3915_s6 = sld [smem:[%s4577_s0 + %s3758_s7]]   ;;  %s3762_s7 = smov 30  }
  0x27   :  { %4598 = sst [smem:[#allocation11_spill]] %s3900_s20 }
  0x28   :  { %s3920_s20 = sld [smem:[%s4577_s0 + %s3759_s15]]   ;;  %s3763_s15 = smov 31  }
  0x2a   :  { %4599 = sst [smem:[#allocation12_spill]] %s3905_s27 }
  0x2b   :  { %4600 = sst [smem:[#allocation13_spill]] %s3910_s4 }
  0x2c   :  { %4601 = sst [smem:[#allocation14_spill]] %s3915_s6 }
  0x2d   :  { %s3925_s27 = sld [smem:[%s4577_s0 + %s3760_s22]]   ;;  %s3764_s22 = smov 32  }
  0x2e   :  { %4602 = sst [smem:[#allocation15_spill]] %s3920_s20 }
  0x2f   :  { %s3930_s4 = sld [smem:[%s4577_s0 + %s3761_s28]]   ;;  %s3947_s28 = smov 0  }
  0x30   :  { %s3935_s6 = sld [smem:[%s4577_s0 + %s3762_s7]]  }
  0x31   :  { %s3940_s20 = sld [smem:[%s4577_s0 + %s3763_s15]]  }
  0x33   :  { %4603 = sst [smem:[#allocation16_spill]] %s3925_s27 }
  0x34   :  { %s3945_s27 = sld [smem:[%s4577_s0 + %s3764_s22]]  }
  0x35 LB: > { %s3327_s1 = sadd.s32 4294967295, %s3731_s28   ;;  %p3331_p0 = scmp.ge.s32.totalorder %s3731_s28, 1  ;;  %s3731_s28 = sphi %s3947_s28, %s75_s28  }
  0x36   : > { %p895_p1 = scmp.lt.s32.totalorder %s3731_s28, 3 }
  0x38   : > { %p896_p2 = pnand %p3331_p0, %p895_p1 }
  0x39   : > { %p977_p3 = scmp.lt.s32.totalorder (!%p896_p2), %s3327_s1, 1  ;;  %s3766_s7 = smov (!%p896_p2), 96  }
  0x3a   : > { %899 = sbr.rel (%p896_p2) target bundleno = 5393 (0x1511), region = 148  ;;  %s3767_s10 = smov (!%p896_p2), 64  }
  0x3b   : > { %s3768_s11 = smov (!%p896_p2), 88   ;;  %s3769_s15 = smov (!%p896_p2), 120  }
  0x3c   : > { %s3770_s16 = smov (!%p896_p2), 72   ;;  %s3771_s18 = smov (!%p896_p2), 104  }
  0x3d   : > { %s3772_s22 = smov (!%p896_p2), 112   ;;  %s3773_s23 = smov (!%p896_p2), 80  }
  0x3e   : > { %s4587_s26 = smov (!%p896_p2), 56  }
  0x3f   : > { %v995_v0 = vld [vmem:[%s3790_s9 + $0x28] sm:$0xff]  ;;  %v994_v1 = vld [vmem:[%s3790_s9 + $0x20] sm:$0xff]  ;;  %v993_v2 = vld [vmem:[%s3790_s9 + $0x18] sm:$0xff]  ;;  %s4624_s1 = smov (!%p977_p3, %s3327_s1), 1  ;;  %vm1000_vm0 = vcmask 392192   ;;  %vm1044_vm1 = vcmask 261120  }
  0x40   : > { %1020 = vmatpush.msra.mxu0 %v995_v0  ;;  %v992_v3 = vld [vmem:[%s3790_s9 + $0x10] sm:$0xff]  ;;  %v991_v4 = vld [vmem:[%s3790_s9 + $0x8] sm:$0xff]  ;;  %s4582_s0 = smul.u32 24, %s4624_s1  ;;  %v990_v5 = vld [vmem:[%s3790_s9] sm:$0xff]  ;;  %vm1051_vm2 = vcmask 253952   ;;  %v3765_v25 = vmov 32.0  }
  0x41   : > { %v3557_v9 = vld [vmem:[%s3795_s13] ss:$0 sm:$0xff]  ;;  %v1037_v16 = vld [vmem:[%s3800_s17 + $0x8] sm:$0xff]  ;;  %v1038_v21 = vld [vmem:[%s3800_s17 + $0x10] sm:$0x1]  ;;  %3577 = vrcp.f32 %v3765_v25  ;;  %vm1187_vm13 = vcmask 64512  }
  0x42   : > { %1021 = vmatpush.msra.mxu0 %v994_v1  ;;  %s981_s2 = scalar_lea.vmem %s3785_s5, %s4582_s0  ;;  %v1036_v11 = vld [vmem:[%s3800_s17] sm:$0xff]  ;;  %v1134_v47 = vld [vmem:[%s3815_s29 + $0x18] sm:$0xff]  ;;  %v1133_v48 = vld [vmem:[%s3815_s29 + $0x10] sm:$0xff]  ;;  %vm1229_vm14 = vcmask 138240   ;;  %vm1236_vm15 = vcmask 131072   ;;  %s4583_s0 = smov 48  }
  0x43   : > { %v987_v6 = vld [vmem:[%s981_s2] sm:$0xff]  ;;  %v988_v7 = vld [vmem:[%s981_s2 + $0x8] sm:$0xff]  ;;  %v989_v8 = vld [vmem:[%s981_s2 + $0x10] sm:$0x1]  ;;  %1160 = vmatpush.msra.mxu1 %v1134_v47  ;;  %s4585_s2 = smov 40  }
  0x44   : > { %1022 = vmatpush.msra.mxu0 %v993_v2  ;;  %v1132_v49 = vld [vmem:[%s3815_s29 + $0x8] sm:$0xff]  ;;  %v1131_v50 = vld [vmem:[%s3815_s29] sm:$0xff] }
  0x45   : > { %1161 = vmatpush.msra.mxu1 %v1133_v48 }
  0x46   : > { %1023 = vmatpush.msra.mxu0 %v992_v3 }
  0x47   : > { %v3578_v26 = vpop.eup %3577  ;;  %1162 = vmatpush.msra.mxu1 %v1132_v49 }
  0x48   : > { %1024 = vmatpush.msra.mxu0 %v991_v4  ;;  %v1056_v27 = vmul.f32 32.0, %v3578_v26  ;;  %vm1060_vm3 = vweird.f32 %v3578_v26  ;;  %v3558_v4 = vld [vmem:[%s3805_s21] ss:$0 sm:$0xff] }
  0x49   : > { %1163 = vmatpush.msra.mxu1 %v1131_v50 }
  0x4a   : > { %1025 = vmatpush.msra.mxu0 %v990_v5  ;;  %v1057_v28 = vsub.f32 1.0, %v1056_v27 }
  0x4b   : > { %3334 = vmatmul.msk.f32.vlgmr.msra.gmra.mxu0 %vm1000_vm0, %v987_v6 }
  0x4c   : > { %v1058_v29 = vmul.f32 %v3578_v26, %v1057_v28 }
  0x4e   : > { %v1059_v30 = vadd.f32 %v3578_v26, %v1058_v29 }
  0x50   : > { %v3983_v31 = vsel %vm1060_vm3, %v3578_v26, %v1059_v30 }
  0x53   : > { %3335 = vmatmul.msk.f32.gmra.mxu0 %vm1000_vm0, %v988_v7 }
  0x5b   : > { %3336 = vmatmul.msk.f32.gmra.mxu0 %vm1000_vm0, %v989_v8  ;;  %v3559_v8 = vld [vmem:[%s3810_s25] ss:$0 sm:$0xff]  ;;  %vm1281_vm0 = vcmask 1040384  }
  0xc8   : > { %v1027_v10 = vpop.f32.mrf.mxu0 }
  0xc9   : > { %v1028_v12 = vadd.f32 %v3557_v9, %v1027_v10 }
  0xcb   : > { %v3969_v13 = vadd.f32 %v1036_v11, %v1028_v12 }
  0xcd   : > { %v1045_v14 = vsel %vm1044_vm1, %v3969_v13, 0.0 }
  0xce   : > { %1046 = vadd.xlane.f32.xlu0 %v1045_v14 }
  0xd0   : > { %v1030_v15 = vpop.f32.mrf.mxu0 }
  0xd1   : > { %v1031_v17 = vadd.f32 %v3557_v9, %v1030_v15 }
  0xd3   : > { %v3974_v18 = vadd.f32 %v1037_v16, %v1031_v17 }
  0xd5   : > { %v1048_v19 = vsel %vm1044_vm1, %v3974_v18, 0.0 }
  0xd6   : > { %1049 = vadd.xlane.f32.xlu0 %v1048_v19 }
  0xd8   : > { %v1033_v20 = vpop.f32.mrf.mxu0 }
  0xd9   : > { %v1034_v22 = vadd.f32 %v3557_v9, %v1033_v20 }
  0xdb   : > { %v3979_v23 = vadd.f32 %v1038_v21, %v1034_v22 }
  0xdd   : > { %v1052_v24 = vsel %vm1051_vm2, %v3979_v23, 0.0 }
  0xde   : > { %1053 = vadd.xlane.f32.xlu1 %v1052_v24 }
 0x141   : > { %v1047_v32 = vpop.xlane.xlu0 %1046 }
 0x142   : > { %v1062_v33 = vmul.f32 %v3983_v31, %v1047_v32  ;;  %v3560_v32 = vld [vmem:[%s3820_s3] ss:$0 sm:$0xff] }
 0x144   : > { %v1065_v34 = vsub.f32 %v3969_v13, %v1062_v33 }
 0x146   : > { %v1068_v35 = vmul.f32 %v1065_v34, %v1065_v34 }
 0x148   : > { %v1071_v36 = vsel %vm1044_vm1, %v1068_v35, 0.0 }
 0x149   : > { %1072 = vadd.xlane.f32.xlu1 %v1071_v36  ;;  %v1050_v37 = vpop.xlane.xlu0 %1049 }
 0x14a   : > { %v1063_v38 = vmul.f32 %v3983_v31, %v1050_v37 }
 0x14c   : > { %v1066_v39 = vsub.f32 %v3974_v18, %v1063_v38 }
 0x14e   : > { %v1069_v40 = vmul.f32 %v1066_v39, %v1066_v39 }
 0x150   : > { %v1074_v41 = vsel %vm1044_vm1, %v1069_v40, 0.0 }
 0x151   : > { %v1054_v42 = vpop.xlane.xlu1 %1053  ;;  %1075 = vadd.xlane.f32.xlu2 %v1074_v41 }
 0x152   : > { %v1064_v43 = vmul.f32 %v3983_v31, %v1054_v42 }
 0x154   : > { %v3993_v44 = vsub.f32 %v3979_v23, %v1064_v43 }
 0x156   : > { %v1070_v45 = vmul.f32 %v3993_v44, %v3993_v44 }
 0x158   : > { %v1077_v46 = vsel %vm1051_vm2, %v1070_v45, 0.0 }
 0x159   : > { %1078 = vadd.xlane.f32.xlu2 %v1077_v46 }
 0x1bc   : > { %v1073_v51 = vpop.xlane.xlu1 %1072 }
 0x1bd   : > { %v1080_v52 = vmul.f32 %v1073_v51, %v3983_v31 }
 0x1bf   : > { %v1083_v53 = vadd.f32 1e-12, %v1080_v52 }
 0x1c1   : > { %3579 = vrsqrt.f32 %v1083_v53  ;;  %vm1092_vm5 = vweird.f32 %v1083_v53 }
 0x1c4   : > { %v1076_v54 = vpop.xlane.xlu2 %1075 }
 0x1c5   : > { %v1081_v55 = vmul.f32 %v1076_v54, %v3983_v31 }
 0x1c7   : > { %v3580_v56 = vpop.eup %3579  ;;  %v1084_v57 = vadd.f32 1e-12, %v1081_v55 }
 0x1c8   : > { %v1087_v58 = vmul.f32 %v3580_v56, %v1083_v53  ;;  %vm1093_vm4 = vweird.f32 %v3580_v56  ;;  %v1174_v53 = vld [vmem:[%s3825_s8] sm:$0xff] }
 0x1c9   : > { %3581 = vrsqrt.f32 %v1084_v57  ;;  %vm1094_vm6 = vmor %vm1092_vm5, %vm1093_vm4  ;;  %vm1102_vm8 = vweird.f32 %v1084_v57 }
 0x1ca   : > { %v1088_v59 = vmul.f32 %v3580_v56, %v1087_v58 }
 0x1cc   : > { %v1089_v60 = vmul.f32 0.5, %v1088_v59  ;;  %v1079_v61 = vpop.xlane.xlu2 %1078 }
 0x1cd   : > { %v1082_v62 = vmul.f32 %v1079_v61, %v3983_v31 }
 0x1ce   : > { %v1090_v63 = vsub.f32 1.5, %v1089_v60 }
 0x1cf   : > { %v3582_v0 = vpop.eup %3581  ;;  %v1085_v1 = vadd.f32 1e-12, %v1082_v62 }
 0x1d0   : > { %v1091_v2 = vmul.f32 %v3580_v56, %v1090_v63  ;;  %v1097_v3 = vmul.f32 %v3582_v0, %v1084_v57  ;;  %vm1103_vm7 = vweird.f32 %v3582_v0 }
 0x1d1   : > { %3583 = vrsqrt.f32 %v1085_v1  ;;  %vm1104_vm9 = vmor %vm1102_vm8, %vm1103_vm7  ;;  %vm1112_vm11 = vweird.f32 %v1085_v1 }
 0x1d2   : > { %v1095_v5 = vsel %vm1094_vm6, %v3580_v56, %v1091_v2  ;;  %v1098_v6 = vmul.f32 %v3582_v0, %v1097_v3 }
 0x1d3   : > { %v1116_v7 = vmul.f32 %v1095_v5, %v1065_v34 }
 0x1d4   : > { %v1099_v9 = vmul.f32 0.5, %v1098_v6 }
 0x1d5   : > { %v1122_v10 = vmul.f32 %v3558_v4, %v1116_v7 }
 0x1d6   : > { %v1100_v11 = vsub.f32 1.5, %v1099_v9 }
 0x1d7   : > { %v3584_v12 = vpop.eup %3583  ;;  %v1128_v14 = vadd.f32 %v3559_v8, %v1122_v10 }
 0x1d8   : > { %v1101_v15 = vmul.f32 %v3582_v0, %v1100_v11  ;;  %v1107_v16 = vmul.f32 %v3584_v12, %v1085_v1  ;;  %vm1113_vm10 = vweird.f32 %v3584_v12 }
 0x1d9   : > { %3337 = vmatmul.msk.f32.vlgmr.msra.gmra.mxu1 %vm1044_vm1, %v1128_v14  ;;  %vm1114_vm12 = vmor %vm1112_vm11, %vm1113_vm10 }
 0x1da   : > { %v1105_v17 = vsel %vm1104_vm9, %v3582_v0, %v1101_v15  ;;  %v1108_v19 = vmul.f32 %v3584_v12, %v1107_v16 }
 0x1db   : > { %v1117_v20 = vmul.f32 %v1105_v17, %v1066_v39 }
 0x1dc   : > { %v1109_v21 = vmul.f32 0.5, %v1108_v19 }
 0x1dd   : > { %v1123_v22 = vmul.f32 %v3558_v4, %v1117_v20 }
 0x1de   : > { %v1110_v24 = vsub.f32 1.5, %v1109_v21 }
 0x1df   : > { %v1129_v25 = vadd.f32 %v3559_v8, %v1123_v22 }
 0x1e0   : > { %v1111_v26 = vmul.f32 %v3584_v12, %v1110_v24 }
 0x1e1   : > { %3338 = vmatmul.msk.f32.gmra.mxu1 %vm1044_vm1, %v1129_v25 }
 0x1e2   : > { %v1115_v27 = vsel %vm1114_vm12, %v3584_v12, %v1111_v26  ;;  %vm2017_vm12 = vcmask 523264  }
 0x1e3   : > { %v1118_v28 = vmul.f32 %v1115_v27, %v3993_v44 }
 0x1e5   : > { %v1124_v29 = vmul.f32 %v3558_v4, %v1118_v28 }
 0x1e7   : > { %v1130_v30 = vadd.f32 %v3559_v8, %v1124_v29 }
 0x1e9   : > { %3339 = vmatmul.msk.f32.gmra.mxu1 %vm1044_vm1, %v1130_v30 }
 0x256   : > { %v1165_v33 = vpop.f32.mrf.mxu1 }
 0x257   : > { %v4012_v34 = vadd.f32 %v3560_v32, %v1165_v33 }
 0x259   : > { %1181 = vrot.lane.b32.xlu2 %v4012_v34, %s3766_s7 }
 0x25e   : > { %v1168_v35 = vpop.f32.mrf.mxu1 }
 0x25f   : > { %v4016_v36 = vadd.f32 %v3560_v32, %v1168_v35 }
 0x261   : > { %1183 = vrot.lane.b32.xlu1 %v4016_v36, %s3766_s7  ;;  %v4040_v51 = vpack.i.bf16 %v4012_v34, %v4016_v36 }
 0x266   : > { %v1171_v37 = vpop.f32.mrf.mxu1 }
 0x267   : > { %v4020_v38 = vadd.f32 %v3560_v32, %v1171_v37 }
 0x269   : > { %1185 = vrot.lane.b32.xlu0 %v4020_v38, %s3766_s7 }
 0x2b3   : > { %v1182_v41 = vpop.permute.xlu2 %1181 }
 0x2d3   : > { %v1184_v40 = vpop.permute.xlu1 %1183 }
 0x2db   : > { %v1186_v39 = vpop.permute.xlu0 %1185 }
 0x2dc   : > { %3340 = vmatpush.xpose.msk.msra.mxu2 %vm1187_vm13, %v1186_v39 }
 0x2e0   : > { %3341 = vmatpush.xpose.msk.msra.mxu2 %vm1187_vm13, %v1184_v40 }
 0x2e4   : > { %3342 = vmatpush.xpose.msk.msra.mxu2 %vm1187_vm13, %v1182_v41 }
 0x2e7   : > { %3343 = vmatmul.msk.f32.vlgmr.msra.gmra.mxu2 %vm1187_vm13, %v4012_v34 }
 0x2e8   : > { %1500 = vmatpush.msrb.mxu2 %v1174_v53 }
 0x2ef   : > { %3344 = vmatmul.msk.f32.gmra.mxu2 %vm1187_vm13, %v4016_v36 }
 0x2f7   : > { %3345 = vmatmul.msk.f32.gmra.mxu2 %vm1187_vm13, %v4020_v38 }
 0x36a   : > { %v1217_v42 = vpop.f32.mrf.mxu2 }
 0x36b   : > { %v1226_v43 = vmul.f32 0.35355338, %v1217_v42 }
 0x36d   : > { %v1230_v44 = vsel %vm1229_vm14, %v1226_v43, -inf }
 0x36e   : > { %1231 = vmax.xlane.f32.xlu0 %v1230_v44 }
 0x372   : > { %v1220_v45 = vpop.f32.mrf.mxu2 }
 0x373   : > { %v1227_v46 = vmul.f32 0.35355338, %v1220_v45 }
 0x375   : > { %v1233_v47 = vsel %vm1229_vm14, %v1227_v46, -inf }
 0x376   : > { %1234 = vmax.xlane.f32.xlu2 %v1233_v47 }
 0x37a   : > { %v1223_v48 = vpop.f32.mrf.mxu2 }
 0x37b   : > { %v1228_v49 = vmul.f32 0.35355338, %v1223_v48 }
 0x37d   : > { %v1237_v50 = vsel %vm1236_vm15, %v1228_v49, -inf }
 0x37e   : > { %1238 = vmax.xlane.f32.xlu1 %v1237_v50 }
 0x38e   : > { %1268 = vrot.lane.b32.xlu2 %v4020_v38, %s3767_s10 }
 0x396   : > { %1318 = vrot.lane.b32.xlu2 %v4016_v36, %s3768_s11 }
 0x397   : > { %3518 = vrot.lane.b32.xlu1 %v4040_v51, %s3767_s10 }
 0x39e   : > { %1310 = vrot.lane.b32.xlu2 %v4012_v34, %s3769_s15 }
 0x39f   : > { %1316 = vrot.lane.b32.xlu1 %v4012_v34, %s3768_s11 }
 0x3a6   : > { %1690 = vrot.lane.b32.xlu2 %v4020_v38, %s3770_s16 }
 0x3a7   : > { %1312 = vrot.lane.b32.xlu1 %v4016_v36, %s3769_s15 }
 0x3ae   : > { %1314 = vrot.lane.b32.xlu2 %v4020_v38, %s3769_s15 }
 0x3af   : > { %1688 = vrot.lane.b32.xlu1 %v4016_v36, %s3770_s16 }
 0x3b6   : > { %1680 = vrot.lane.b32.xlu2 %v4012_v34, %s3771_s18 }
 0x3b7   : > { %1686 = vrot.lane.b32.xlu1 %v4012_v34, %s3770_s16 }
 0x3be   : > { %1682 = vrot.lane.b32.xlu2 %v4016_v36, %s3771_s18 }
 0x3bf   : > { %1511 = vrot.lane.b32.xlu1 %v4012_v34, %s3772_s22 }
 0x3c6   : > { %1515 = vrot.lane.b32.xlu2 %v4020_v38, %s3772_s22 }
 0x3c7   : > { %1684 = vrot.lane.b32.xlu1 %v4020_v38, %s3771_s18 }
 0x3e1   : > { %v1232_v52 = vpop.xlane.xlu0 %1231 }
 0x3e2   : > { %v1240_v54 = vsub.f32 %v1226_v43, %v1232_v52 }
 0x3e4   : > { %v1243_v55 = vmul.f32 1.442695, %v1240_v54 }
 0x3e6   : > { %3585 = vpow2.f32 %v1243_v55 }
 0x3e9   : > { %v1235_v56 = vpop.xlane.xlu2 %1234 }
 0x3ea   : > { %v1241_v57 = vsub.f32 %v1227_v46, %v1235_v56 }
 0x3ec   : > { %v3586_v58 = vpop.eup %3585  ;;  %v1245_v59 = vmul.f32 1.442695, %v1241_v57 }
 0x3ed   : > { %v1249_v60 = vsel %vm1229_vm14, %v3586_v58, 0.0 }
 0x3ee   : > { %3587 = vpow2.f32 %v1245_v59  ;;  %1250 = vadd.xlane.f32.xlu0 %v1249_v60 }
 0x3f1   : > { %v1269_v61 = vpop.permute.xlu2 %1268  ;;  %v1239_v62 = vpop.xlane.xlu1 %1238 }
 0x3f2   : > { %v1242_v63 = vsub.f32 %v1228_v49, %v1239_v62  ;;  %3346 = vmatpush.msk.msra.mxu3 %vm1281_vm0, %v1269_v61 }
 0x3f4   : > { %v3588_v0 = vpop.eup %3587  ;;  %v1247_v1 = vmul.f32 1.442695, %v1242_v63 }
 0x3f5   : > { %v1252_v2 = vsel %vm1229_vm14, %v3588_v0, 0.0 }
 0x3f6   : > { %3589 = vpow2.f32 %v1247_v1  ;;  %1253 = vadd.xlane.f32.xlu0 %v1252_v2 }
 0x3f9   : > { %v1319_v3 = vpop.permute.xlu2 %1318 }
 0x3fc   : > { %v3590_v4 = vpop.eup %3589 }
 0x3fd   : > { %v1255_v5 = vsel %vm1236_vm15, %v3590_v4, 0.0 }
 0x3fe   : > { %1256 = vadd.xlane.f32.xlu0 %v1255_v5 }
 0x401   : > { %v1311_v6 = vpop.permute.xlu2 %1310 }
 0x409   : > { %v1691_v7 = vpop.permute.xlu2 %1690  ;;  %v3519_v8 = vpop.permute.xlu1 %3518 }
 0x40a   : > { %3379 = vmatpush.xpose.msk.msra.mxu2 %vm1187_vm13, %v1691_v7  ;;  %v3520_v9 = vunpack.i.l.bf16 %v3519_v8  ;;  %v3521_v10 = vunpack.i.h.bf16 %v3519_v8 }
 0x40c   : > { %1298 = vmatpush.msra.mxu3 %v3520_v9 }
 0x40e   : > { %1299 = vmatpush.msra.mxu3 %v3521_v10 }
 0x411   : > { %v1317_v11 = vpop.permute.xlu1 %1316  ;;  %v1315_v30 = vpop.permute.xlu2 %1314 }
 0x412   : > { %1320 = vrot.lane.b32.xlu0 %v4020_v38, %s3768_s11 }
 0x419   : > { %v1313_v12 = vpop.permute.xlu1 %1312  ;;  %v1681_v33 = vpop.permute.xlu2 %1680 }
 0x41a   : > { %1521 = vrot.lane.b32.xlu0 %v4020_v38, %s3773_s23 }
 0x421   : > { %v1689_v14 = vpop.permute.xlu1 %1688  ;;  %v1683_v35 = vpop.permute.xlu2 %1682 }
 0x422   : > { %1519 = vrot.lane.b32.xlu0 %v4016_v36, %s3773_s23  ;;  %3380 = vmatpush.xpose.msk.msra.mxu2 %vm1187_vm13, %v1689_v14 }
 0x429   : > { %v1687_v15 = vpop.permute.xlu1 %1686  ;;  %v1516_v37 = vpop.permute.xlu2 %1515 }
 0x42a   : > { %1517 = vrot.lane.b32.xlu0 %v4012_v34, %s3773_s23  ;;  %3381 = vmatpush.xpose.msk.msra.mxu2 %vm1187_vm13, %v1687_v15 }
 0x431   : > { %v1512_v34 = vpop.permute.xlu1 %1511 }
 0x432   : > { %1513 = vrot.lane.b32.xlu0 %v4016_v36, %s3772_s22 }
 0x439   : > { %v1685_v44 = vpop.permute.xlu1 %1684 }
 0x461   : > { %v1251_v16 = vpop.xlane.xlu0 %1250 }
 0x462   : > { %3591 = vrcp.f32 %v1251_v16 }
 0x468   : > { %v3592_v17 = vpop.eup %3591 }
 0x469   : > { %v1254_v19 = vpop.xlane.xlu0 %1253  ;;  %v1261_v20 = vmul.f32 %v3592_v17, %v3586_v58 }
 0x46a   : > { %3593 = vrcp.f32 %v1254_v19 }
 0x46b   : > { %3347 = vmatmul.msk.f32.vlgmr.msra.gmra.mxu3 %vm1229_vm14, %v1261_v20 }
 0x470   : > { %v3594_v21 = vpop.eup %3593 }
 0x471   : > { %v1257_v22 = vpop.xlane.xlu0 %1256  ;;  %v1262_v24 = vmul.f32 %v3594_v21, %v3588_v0 }
 0x472   : > { %3595 = vrcp.f32 %v1257_v22 }
 0x473   : > { %3348 = vmatmul.msk.f32.gmra.mxu3 %vm1229_vm14, %v1262_v24 }
 0x478   : > { %v3596_v25 = vpop.eup %3595 }
 0x479   : > { %v1263_v26 = vmul.f32 %v3596_v25, %v3590_v4 }
 0x47b   : > { %3349 = vmatmul.msk.f32.gmra.mxu3 %vm1229_vm14, %v1263_v26 }
 0x484   : > { %v1321_v27 = vpop.permute.xlu0 %1320 }
 0x485   : > { %3350 = vmatpush.xpose.msk.msrb.mxu3 %vm1187_vm13, %v1321_v27 }
 0x489   : > { %3351 = vmatpush.xpose.msk.msrb.mxu3 %vm1187_vm13, %v1319_v3 }
 0x48c   : > { %v1522_v28 = vpop.permute.xlu0 %1521 }
 0x48d   : > { %3352 = vmatpush.xpose.msk.msrb.mxu3 %vm1187_vm13, %v1317_v11 }
 0x490   : > { %3353 = vmatmul.msk.f32.vlgmr.msrb.gmra.mxu3 %vm1187_vm13, %v1311_v6 }
 0x491   : > { %3366 = vmatpush.xpose.msk.msra.mxu3 %vm1187_vm13, %v1522_v28 }
 0x494   : > { %v1520_v29 = vpop.permute.xlu0 %1519 }
 0x495   : > { %3367 = vmatpush.xpose.msk.msra.mxu3 %vm1187_vm13, %v1520_v29 }
 0x498   : > { %3354 = vmatmul.msk.f32.gmra.mxu3 %vm1187_vm13, %v1313_v12 }
 0x49c   : > { %v1518_v32 = vpop.permute.xlu0 %1517 }
 0x49d   : > { %3368 = vmatpush.xpose.msk.msra.mxu3 %vm1187_vm13, %v1518_v32 }
 0x4a0   : > { %3355 = vmatmul.msk.f32.gmra.mxu3 %vm1187_vm13, %v1315_v30 }
 0x4a4   : > { %v1514_v36 = vpop.permute.xlu0 %1513 }
 0x4a8   : > { %3369 = vmatmul.msk.f32.vlgmr.msra.gmra.mxu3 %vm1187_vm13, %v1512_v34 }
 0x4b0   : > { %3370 = vmatmul.msk.f32.gmra.mxu3 %vm1187_vm13, %v1514_v36 }
 0x4b8   : > { %3371 = vmatmul.msk.f32.gmra.mxu3 %vm1187_vm13, %v1516_v37 }
 0x4ee   : > { %v1301_v39 = vpop.f32.mrf.mxu3 }
 0x4ef   : > { %3363 = vmatmul.msk.f32.vlgmr.msrb.gmra.mxu2 %vm1187_vm13, %v1301_v39 }
 0x4f6   : > { %v1304_v40 = vpop.f32.mrf.mxu3 }
 0x4f7   : > { %3364 = vmatmul.msk.f32.gmra.mxu2 %vm1187_vm13, %v1304_v40 }
 0x4fe   : > { %v1307_v41 = vpop.f32.mrf.mxu3 }
 0x4ff   : > { %3365 = vmatmul.msk.f32.gmra.mxu2 %vm1187_vm13, %v1307_v41 }
 0x507   : > { %3382 = vmatmul.msk.f32.vlgmr.msra.gmra.mxu2 %vm1187_vm13, %v1681_v33 }
 0x50f   : > { %3383 = vmatmul.msk.f32.gmra.mxu2 %vm1187_vm13, %v1683_v35 }
 0x513   : > { %v1351_v42 = vpop.f32.mrf.mxu3 }
 0x514   : > { %v1360_v43 = vmul.f32 0.35355338, %v1351_v42 }
 0x516   : > { %v1363_v45 = vsel %vm1229_vm14, %v1360_v43, -inf }
 0x517   : > { %3384 = vmatmul.msk.f32.gmra.mxu2 %vm1187_vm13, %v1685_v44  ;;  %1364 = vmax.xlane.f32.xlu0 %v1363_v45 }
 0x51b   : > { %v1354_v46 = vpop.f32.mrf.mxu3 }
 0x51c   : > { %v1361_v47 = vmul.f32 0.35355338, %v1354_v46 }
 0x51e   : > { %v1366_v48 = vsel %vm1229_vm14, %v1361_v47, -inf }
 0x51f   : > { %1367 = vmax.xlane.f32.xlu1 %v1366_v48 }
 0x523   : > { %v1357_v49 = vpop.f32.mrf.mxu3 }
 0x524   : > { %v1362_v50 = vmul.f32 0.35355338, %v1357_v49 }
 0x526   : > { %v1369_v52 = vsel %vm1236_vm15, %v1362_v50, -inf }
 0x527   : > { %1370 = vmax.xlane.f32.xlu2 %v1369_v52 }
 0x52b   : > { %v1552_v53 = vpop.f32.mrf.mxu3 }
 0x52c   : > { %v1561_v54 = vmul.f32 0.35355338, %v1552_v53 }
 0x52e   : > { %v1564_v55 = vsel %vm1229_vm14, %v1561_v54, -inf }
 0x52f   : > { %1565 = vmax.xlane.f32.xlu1 %v1564_v55 }
 0x533   : > { %v1555_v56 = vpop.f32.mrf.mxu3 }
 0x534   : > { %v4113_v57 = vmul.f32 0.35355338, %v1555_v56 }
 0x536   : > { %v1567_v58 = vsel %vm1229_vm14, %v4113_v57, -inf }
 0x537   : > { %1568 = vmax.xlane.f32.xlu0 %v1567_v58 }
 0x53b   : > { %v1558_v59 = vpop.f32.mrf.mxu3 }
 0x53c   : > { %v4117_v60 = vmul.f32 0.35355338, %v1558_v59 }
 0x53e   : > { %v1570_v61 = vsel %vm1236_vm15, %v4117_v60, -inf }
 0x53f   : > { %1571 = vmax.xlane.f32.xlu2 %v1570_v61 }
 0x572   : > { %v4121_v62 = vpop.f32.mrf.mxu2 }
 0x57a   : > { %v4123_v63 = vpop.f32.mrf.mxu2 }
 0x582   : > { %v4125_v0 = vpop.f32.mrf.mxu2 }
 0x58a   : > { %v1721_v1 = vpop.f32.mrf.mxu2  ;;  %v1365_v2 = vpop.xlane.xlu0 %1364 }
 0x58b   : > { %v1372_v3 = vsub.f32 %v1360_v43, %v1365_v2  ;;  %v1730_v14 = vmul.f32 0.35355338, %v1721_v1 }
 0x58d   : > { %v1375_v4 = vmul.f32 1.442695, %v1372_v3  ;;  %v1733_v21 = vsel %vm1229_vm14, %v1730_v14, -inf }
 0x58f   : > { %3597 = vpow2.f32 %v1375_v4 }
 0x592   : > { %v1724_v5 = vpop.f32.mrf.mxu2  ;;  %v1368_v6 = vpop.xlane.xlu1 %1367 }
 0x593   : > { %v1731_v7 = vmul.f32 0.35355338, %v1724_v5  ;;  %v1373_v9 = vsub.f32 %v1361_v47, %v1368_v6 }
 0x595   : > { %v4127_v8 = vpop.eup %3597  ;;  %v1736_v10 = vsel %vm1229_vm14, %v1731_v7, -inf  ;;  %v1377_v12 = vmul.f32 1.442695, %v1373_v9 }
 0x596   : > { %1737 = vmax.xlane.f32.xlu2 %v1736_v10  ;;  %v1381_v11 = vsel %vm1229_vm14, %v4127_v8, 0.0 }
 0x597   : > { %1382 = vadd.xlane.f32.xlu0 %v1381_v11  ;;  %3599 = vpow2.f32 %v1377_v12 }
 0x59a   : > { %v1727_v15 = vpop.f32.mrf.mxu2  ;;  %v1371_v16 = vpop.xlane.xlu2 %1370 }
 0x59b   : > { %v1732_v17 = vmul.f32 0.35355338, %v1727_v15  ;;  %v1374_v19 = vsub.f32 %v1362_v50, %v1371_v16 }
 0x59d   : > { %v1739_v20 = vsel %vm1236_vm15, %v1732_v17, -inf  ;;  %v1379_v22 = vmul.f32 1.442695, %v1374_v19  ;;  %v4134_v24 = vpop.eup %3599  ;;  %v1175_v19 = vld [vmem:[%s3825_s8 + $0x8] sm:$0xff] }
 0x59e   : > { %1740 = vmax.xlane.f32.xlu1 %v1739_v20  ;;  %v1384_v25 = vsel %vm1229_vm14, %v4134_v24, 0.0  ;;  %1465 = vmatpush.msrb.mxu0 %v1175_v19 }
 0x59f   : > { %1734 = vmax.xlane.f32.xlu0 %v1733_v21  ;;  %3601 = vpow2.f32 %v1379_v22 }
 0x5a2   : > { %v1566_v28 = vpop.xlane.xlu1 %1565 }
 0x5a3   : > { %v1573_v29 = vsub.f32 %v1561_v54, %v1566_v28 }
 0x5a5   : > { %v4138_v26 = vpop.eup %3601  ;;  %v1576_v30 = vmul.f32 1.442695, %v1573_v29 }
 0x5a6   : > { %v1387_v27 = vsel %vm1236_vm15, %v4138_v26, 0.0 }
 0x5a7   : > { %1385 = vadd.xlane.f32.xlu0 %v1384_v25  ;;  %3603 = vpow2.f32 %v1576_v30 }
 0x5aa   : > { %v1569_v35 = vpop.xlane.xlu0 %1568 }
 0x5ad   : > { %v4150_v32 = vpop.eup %3603 }
 0x5ae   : > { %3523 = vrot.lane.b32.xlu2 %v4040_v51, %s4587_s26  ;;  %v1582_v33 = vsel %vm1229_vm14, %v4150_v32, 0.0 }
 0x5af   : > { %1388 = vadd.xlane.f32.xlu0 %v1387_v27 }
 0x5b2   : > { %v1572_v34 = vpop.xlane.xlu2 %1571 }
 0x5b3   : > { %v1575_v47 = vsub.f32 %v4117_v60, %v1572_v34 }
 0x5b5   : > { %v1580_v52 = vmul.f32 1.442695, %v1575_v47  ;;  %v1176_v47 = vld [vmem:[%s3825_s8 + $0x10] sm:$0xff] }
 0x5b6   : > { %1770 = vrot.lane.b32.xlu2 %v4020_v38, %s4585_s2  ;;  %1666 = vmatpush.msra.mxu0 %v1176_v47  ;;  %v3562_v47 = vld [vmem:[%s3835_s19] ss:$0 sm:$0xff] }
 0x5b7   : > { %1400 = vrot.lane.b32.xlu1 %v4020_v38, %s4587_s26  ;;  %s4608_s26 = sld [smem:[#allocation5_spill]] }
 0x5c3   : > { %3528 = vrot.lane.b32.xlu0 %v4040_v51, %s4585_s2  ;;  %s4607_s2 = sld [smem:[#allocation4_spill]] }
 0x5e1   : > { %1583 = vadd.xlane.f32.xlu1 %v1582_v33 }
 0x609   : > { %v1738_v36 = vpop.xlane.xlu2 %1737 }
 0x60a   : > { %v1743_v37 = vsub.f32 %v1731_v7, %v1738_v36  ;;  %v1383_v39 = vpop.xlane.xlu0 %1382 }
 0x60c   : > { %v1747_v40 = vmul.f32 1.442695, %v1743_v37 }
 0x60e   : > { %3605 = vpow2.f32 %v1747_v40 }
 0x611   : > { %v1741_v41 = vpop.xlane.xlu1 %1740  ;;  %v3524_v42 = vpop.permute.xlu2 %3523 }
 0x612   : > { %v1744_v43 = vsub.f32 %v1732_v17, %v1741_v41  ;;  %v1735_v44 = vpop.xlane.xlu0 %1734  ;;  %v3525_v3 = vunpack.i.l.bf16 %v3524_v42  ;;  %v3526_v4 = vunpack.i.h.bf16 %v3524_v42 }
 0x613   : > { %v1742_v45 = vsub.f32 %v1730_v14, %v1735_v44 }
 0x614   : > { %v4154_v46 = vpop.eup %3605  ;;  %v1749_v48 = vmul.f32 1.442695, %v1744_v43 }
 0x615   : > { %v1745_v49 = vmul.f32 1.442695, %v1742_v45  ;;  %v1754_v50 = vsel %vm1229_vm14, %v4154_v46, 0.0 }
 0x616   : > { %3607 = vpow2.f32 %v1749_v48  ;;  %1755 = vadd.xlane.f32.xlu2 %v1754_v50 }
 0x617   : > { %3609 = vpow2.f32 %v1745_v49 }
 0x618   : > { %3611 = vpow2.f32 %v1580_v52 }
 0x619   : > { %v1771_v53 = vpop.permute.xlu2 %1770  ;;  %3613 = vrcp.f32 %v1383_v39 }
 0x61a   : > { %3385 = vmatpush.msk.msrb.mxu3 %vm1281_vm0, %v1771_v53  ;;  %v1386_v60 = vpop.xlane.xlu0 %1385 }
 0x61b   : > { %3615 = vrcp.f32 %v1386_v60 }
 0x61c   : > { %v4160_v54 = vpop.eup %3607 }
 0x61d   : > { %v3610_v55 = vpop.eup %3609  ;;  %v1757_v56 = vsel %vm1236_vm15, %v4160_v54, 0.0 }
 0x61e   : > { %1758 = vadd.xlane.f32.xlu1 %v1757_v56  ;;  %v1751_v58 = vsel %vm1229_vm14, %v3610_v55, 0.0  ;;  %v4165_v59 = vpop.eup %3611 }
 0x61f   : > { %1752 = vadd.xlane.f32.xlu0 %v1751_v58  ;;  %v1588_v61 = vsel %vm1236_vm15, %v4165_v59, 0.0  ;;  %v3614_v2 = vpop.eup %3613 }
 0x620   : > { %v1393_v6 = vmul.f32 %v3614_v2, %v4127_v8 }
 0x621   : > { %v3616_v7 = vpop.eup %3615 }
 0x622   : > { %v1389_v5 = vpop.xlane.xlu0 %1388  ;;  %v1394_v10 = vmul.f32 %v3616_v7, %v4134_v24 }
 0x623   : > { %3617 = vrcp.f32 %v1389_v5 }
 0x626   : > { %1589 = vadd.xlane.f32.xlu1 %v1588_v61 }
 0x629   : > { %v1401_v1 = vpop.permute.xlu1 %1400  ;;  %v3618_v14 = vpop.eup %3617 }
 0x62a   : > { %3356 = vmatpush.msk.msrb.mxu1 %vm1281_vm0, %v1401_v1  ;;  %v1395_v8 = vmul.f32 %v3618_v14, %v4138_v26 }
 0x62c   : > { %1429 = vmatpush.msrb.mxu1 %v3525_v3  ;;  %v3561_v3 = vld [vmem:[%s3830_s14] ss:$0 sm:$0xff] }
 0x62e   : > { %1430 = vmatpush.msrb.mxu1 %v3526_v4 }
 0x62f   : > { %3357 = vmatmul.msk.f32.vlgmr.msrb.gmra.mxu1 %vm1229_vm14, %v1393_v6 }
 0x633   : > { %1601 = vrot.lane.b32.xlu0 %v4020_v38, %s4583_s0  ;;  %v1574_v38 = vsub.f32 %v4113_v57, %v1569_v35 }
 0x635   : > { %v3529_v9 = vpop.permute.xlu0 %3528  ;;  %v1578_v15 = vmul.f32 1.442695, %v1574_v38 }
 0x636   : > { %v3530_v11 = vunpack.i.l.bf16 %v3529_v9  ;;  %v3531_v12 = vunpack.i.h.bf16 %v3529_v9 }
 0x637   : > { %3358 = vmatmul.msk.f32.gmra.mxu1 %vm1229_vm14, %v1394_v10  ;;  %3619 = vpow2.f32 %v1578_v15 }
 0x638   : > { %1799 = vmatpush.msrb.mxu3 %v3530_v11 }
 0x63a   : > { %1800 = vmatpush.msrb.mxu3 %v3531_v12 }
 0x63b   : > { %3533 = vrot.lane.b32.xlu0 %v4040_v51, %s4583_s0  ;;  %s4604_s0 = sld [smem:[#allocation2_spill]] }
 0x63d   : > { %v3620_v16 = vpop.eup %3619 }
 0x63e   : > { %v1585_v17 = vsel %vm1229_vm14, %v3620_v16, 0.0 }
 0x63f   : > { %3359 = vmatmul.msk.f32.gmra.mxu1 %vm1229_vm14, %v1395_v8 }
 0x654   : > { %v1584_v21 = vpop.xlane.xlu1 %1583 }
 0x665   : > { %1586 = vadd.xlane.f32.xlu0 %v1585_v17 }
 0x689   : > { %v1756_v22 = vpop.xlane.xlu2 %1755 }
 0x691   : > { %v1759_v25 = vpop.xlane.xlu1 %1758 }
 0x692   : > { %v1753_v20 = vpop.xlane.xlu0 %1752 }
 0x693   : > { %3621 = vrcp.f32 %v1753_v20 }
 0x694   : > { %3623 = vrcp.f32 %v1756_v22 }
 0x695   : > { %3625 = vrcp.f32 %v1759_v25 }
 0x696   : > { %3627 = vrcp.f32 %v1584_v21 }
 0x699   : > { %v3622_v24 = vpop.eup %3621  ;;  %v1590_v42 = vpop.xlane.xlu1 %1589 }
 0x69a   : > { %v1763_v51 = vmul.f32 %v3622_v24, %v3610_v55  ;;  %v3624_v26 = vpop.eup %3623 }
 0x69b   : > { %v1764_v57 = vmul.f32 %v3624_v26, %v4154_v46  ;;  %v3626_v28 = vpop.eup %3625  ;;  %v1177_v46 = vld [vmem:[%s3825_s8 + $0x18] sm:$0xff] }
 0x69c   : > { %3386 = vmatmul.msk.f32.vlgmr.msrb.gmra.mxu3 %vm1229_vm14, %v1763_v51  ;;  %v1765_v29 = vmul.f32 %v3626_v28, %v4160_v54  ;;  %v3628_v34 = vpop.eup %3627 }
 0x69d   : > { %v1594_v37 = vmul.f32 %v3628_v34, %v4150_v32  ;;  %v1942_v34 = vld [vmem:[%s3845_s30 + $0x18] sm:$0xff] }
 0x6a4   : > { %3387 = vmatmul.msk.f32.gmra.mxu3 %vm1229_vm14, %v1764_v57 }
 0x6a5   : > { %v1602_v27 = vpop.permute.xlu0 %1601 }
 0x6a6   : > { %3372 = vmatpush.msk.msra.mxu1 %vm1281_vm0, %v1602_v27 }
 0x6ac   : > { %v1432_v30 = vpop.f32.mrf.mxu1  ;;  %3388 = vmatmul.msk.f32.gmra.mxu3 %vm1229_vm14, %v1765_v29 }
 0x6ad   : > { %v3534_v33 = vpop.permute.xlu0 %3533  ;;  %3360 = vmatmul.msk.f32.vlgmr.msrb.gmra.mxu0 %vm1187_vm13, %v1432_v30 }
 0x6ae   : > { %v3535_v35 = vunpack.i.l.bf16 %v3534_v33  ;;  %v3536_v36 = vunpack.i.h.bf16 %v3534_v33  ;;  %1968 = vmatpush.msrb.mxu0 %v1942_v34 }
 0x6b0   : > { %1630 = vmatpush.msra.mxu1 %v3535_v35  ;;  %v1941_v35 = vld [vmem:[%s3845_s30 + $0x10] sm:$0xff] }
 0x6b1   : > { %1969 = vmatpush.msrb.mxu0 %v1941_v35 }
 0x6b2   : > { %1631 = vmatpush.msra.mxu1 %v3536_v36  ;;  %v1940_v36 = vld [vmem:[%s3845_s30 + $0x8] sm:$0xff] }
 0x6b3   : > { %3373 = vmatmul.msk.f32.vlgmr.msra.gmra.mxu1 %vm1229_vm14, %v1594_v37  ;;  %v1939_v37 = vld [vmem:[%s3845_s30] sm:$0xff]  ;;  %1970 = vmatpush.msrb.mxu0 %v1940_v36 }
 0x6b4   : > { %v1435_v39 = vpop.f32.mrf.mxu1  ;;  %1835 = vmatpush.msrb.mxu1 %v1177_v46 }
 0x6b5   : > { %3361 = vmatmul.msk.f32.gmra.mxu0 %vm1187_vm13, %v1435_v39 }
 0x6b6   : > { %1971 = vmatpush.msrb.mxu0 %v1939_v37 }
 0x6bc   : > { %v1438_v40 = vpop.f32.mrf.mxu1 }
 0x6bd   : > { %3362 = vmatmul.msk.f32.gmra.mxu0 %vm1187_vm13, %v1438_v40 }
 0x6d8   : > { %v1587_v41 = vpop.xlane.xlu0 %1586 }
 0x6d9   : > { %3629 = vrcp.f32 %v1587_v41 }
 0x6da   : > { %3631 = vrcp.f32 %v1590_v42 }
 0x6df   : > { %v3630_v43 = vpop.eup %3629 }
 0x6e0   : > { %v1595_v44 = vmul.f32 %v3630_v43, %v3620_v16  ;;  %v3632_v32 = vpop.eup %3631 }
 0x6e1   : > { %v1596_v45 = vmul.f32 %v3632_v32, %v4165_v59 }
 0x6e2   : > { %3374 = vmatmul.msk.f32.gmra.mxu1 %vm1229_vm14, %v1595_v44 }
 0x6ea   : > { %3375 = vmatmul.msk.f32.gmra.mxu1 %vm1229_vm14, %v1596_v45 }
 0x71f   : > { %v1802_v48 = vpop.f32.mrf.mxu3 }
 0x720   : > { %3389 = vmatmul.msk.f32.vlgmr.msrb.gmra.mxu1 %vm1187_vm13, %v1802_v48 }
 0x727   : > { %v1805_v49 = vpop.f32.mrf.mxu3 }
 0x728   : > { %3390 = vmatmul.msk.f32.gmra.mxu1 %vm1187_vm13, %v1805_v49 }
 0x72a   : > { %v1467_v55 = vpop.f32.mrf.mxu0 }
 0x72b   : > { %v1503_v59 = vadd.f32 %v4121_v62, %v1467_v55 }
 0x72f   : > { %v1808_v50 = vpop.f32.mrf.mxu3 }
 0x730   : > { %v1633_v52 = vpop.f32.mrf.mxu1  ;;  %3391 = vmatmul.msk.f32.gmra.mxu1 %vm1187_vm13, %v1808_v50  ;;  %v3563_v50 = vld [vmem:[%s3840_s24] ss:$0 sm:$0xff] }
 0x731   : > { %3376 = vmatmul.msk.f32.vlgmr.msra.gmra.mxu0 %vm1187_vm13, %v1633_v52 }
 0x732   : > { %v1470_v56 = vpop.f32.mrf.mxu0 }
 0x733   : > { %v1506_v7 = vadd.f32 %v4123_v63, %v1470_v56 }
 0x73a   : > { %v1473_v58 = vpop.f32.mrf.mxu0 }
 0x73b   : > { %v1509_v14 = vadd.f32 %v4125_v0, %v1473_v58 }
 0x75f   : > { %v1636_v53 = vpop.f32.mrf.mxu1 }
 0x760   : > { %3377 = vmatmul.msk.f32.gmra.mxu0 %vm1187_vm13, %v1636_v53 }
 0x767   : > { %v1639_v54 = vpop.f32.mrf.mxu1 }
 0x768   : > { %3378 = vmatmul.msk.f32.gmra.mxu0 %vm1187_vm13, %v1639_v54 }
 0x79d   : > { %v1837_v1 = vpop.f32.mrf.mxu1 }
 0x7a5   : > { %v1840_v9 = vpop.f32.mrf.mxu1 }
 0x7ad   : > { %v1843_v16 = vpop.f32.mrf.mxu1 }
 0x7ae   : > { %v1668_v60 = vpop.f32.mrf.mxu0 }
 0x7af   : > { %v1677_v61 = vadd.f32 %v1668_v60, %v1503_v59 }
 0x7b1   : > { %v1846_v2 = vadd.f32 %v1837_v1, %v1677_v61 }
 0x7b3   : > { %v1849_v4 = vadd.f32 %v1846_v2, %v3969_v13 }
 0x7b5   : > { %v4208_v5 = vadd.f32 %v3561_v3, %v1849_v4 }
 0x7b7   : > { %v1861_v6 = vsel %vm1044_vm1, %v4208_v5, 0.0 }
 0x7b8   : > { %1862 = vadd.xlane.f32.xlu2 %v1861_v6 }
 0x7dd   : > { %v1671_v10 = vpop.f32.mrf.mxu0 }
 0x7de   : > { %v1678_v11 = vadd.f32 %v1671_v10, %v1506_v7 }
 0x7e0   : > { %v1847_v12 = vadd.f32 %v1840_v9, %v1678_v11 }
 0x7e2   : > { %v1850_v62 = vadd.f32 %v1847_v12, %v3974_v18 }
 0x7e4   : > { %v4215_v8 = vadd.f32 %v3561_v3, %v1850_v62 }
 0x7e5   : > { %v1674_v38 = vpop.f32.mrf.mxu0 }
 0x7e6   : > { %v1679_v13 = vadd.f32 %v1674_v38, %v1509_v14  ;;  %v1864_v15 = vsel %vm1044_vm1, %v4215_v8, 0.0 }
 0x7e7   : > { %1865 = vadd.xlane.f32.xlu1 %v1864_v15 }
 0x7e8   : > { %v1848_v17 = vadd.f32 %v1843_v16, %v1679_v13 }
 0x7ea   : > { %v1851_v63 = vadd.f32 %v1848_v17, %v3979_v23 }
 0x7ec   : > { %v4220_v19 = vadd.f32 %v3561_v3, %v1851_v63 }
 0x7ee   : > { %v1867_v20 = vsel %vm1051_vm2, %v4220_v19, 0.0 }
 0x7ef   : > { %1868 = vadd.xlane.f32.xlu2 %v1867_v20 }
 0x82b   : > { %v1863_v18 = vpop.xlane.xlu2 %1862 }
 0x82c   : > { %v1870_v0 = vmul.f32 %v1863_v18, %v3983_v31  ;;  %v2016_v18 = vld [vmem:[%s3855_s12 + $0x38] sm:$0xff] }
 0x82d   : > { %2035 = vmatpush.msrb.mxu2 %v2016_v18 }
 0x82e   : > { %v1873_v21 = vsub.f32 %v4208_v5, %v1870_v0  ;;  %v2015_v0 = vld [vmem:[%s3855_s12 + $0x30] sm:$0xff] }
 0x82f   : > { %2036 = vmatpush.msrb.mxu2 %v2015_v0 }
 0x830   : > { %v1876_v22 = vmul.f32 %v1873_v21, %v1873_v21 }
 0x832   : > { %v1879_v24 = vsel %vm1044_vm1, %v1876_v22, 0.0  ;;  %v2013_v22 = vld [vmem:[%s3855_s12 + $0x20] sm:$0xff] }
 0x833   : > { %1880 = vadd.xlane.f32.xlu1 %v1879_v24  ;;  %v2012_v24 = vld [vmem:[%s3855_s12 + $0x18] sm:$0xff] }
 0x85a   : > { %v1866_v51 = vpop.xlane.xlu1 %1865 }
 0x85b   : > { %v1871_v23 = vmul.f32 %v1866_v51, %v3983_v31  ;;  %v2011_v51 = vld [vmem:[%s3855_s12 + $0x10] sm:$0xff] }
 0x85d   : > { %v1874_v25 = vsub.f32 %v4215_v8, %v1871_v23  ;;  %v2010_v23 = vld [vmem:[%s3855_s12 + $0x8] sm:$0xff] }
 0x85f   : > { %v1877_v26 = vmul.f32 %v1874_v25, %v1874_v25 }
 0x861   : > { %v1882_v57 = vsel %vm1044_vm1, %v1877_v26, 0.0  ;;  %v3564_v26 = vld [vmem:[%s4604_s0] ss:$0 sm:$0xff]  ;;  %s4605_s0 = sld [smem:[#allocation3_spill]] }
 0x862   : > { %1883 = vadd.xlane.f32.xlu2 %v1882_v57  ;;  %v1869_v27 = vpop.xlane.xlu2 %1868 }
 0x863   : > { %v1872_v28 = vmul.f32 %v1869_v27, %v3983_v31 }
 0x865   : > { %v4232_v29 = vsub.f32 %v4220_v19, %v1872_v28 }
 0x867   : > { %v1878_v30 = vmul.f32 %v4232_v29, %v4232_v29 }
 0x869   : > { %v1885_v33 = vsel %vm1051_vm2, %v1878_v30, 0.0 }
 0x86a   : > { %1886 = vadd.xlane.f32.xlu1 %v1885_v33 }
 0x8a6   : > { %v1881_v39 = vpop.xlane.xlu1 %1880 }
 0x8a7   : > { %v1888_v40 = vmul.f32 %v1881_v39, %v3983_v31 }
 0x8a9   : > { %v1891_v41 = vadd.f32 1e-12, %v1888_v40 }
 0x8ab   : > { %3633 = vrsqrt.f32 %v1891_v41  ;;  %vm1900_vm4 = vweird.f32 %v1891_v41 }
 0x8b1   : > { %v3634_v42 = vpop.eup %3633 }
 0x8b2   : > { %v1895_v43 = vmul.f32 %v3634_v42, %v1891_v41  ;;  %vm1901_vm3 = vweird.f32 %v3634_v42 }
 0x8b3   : > { %vm1902_vm5 = vmor %vm1900_vm4, %vm1901_vm3 }
 0x8b4   : > { %v1896_v44 = vmul.f32 %v3634_v42, %v1895_v43 }
 0x8b6   : > { %v1897_v32 = vmul.f32 0.5, %v1896_v44 }
 0x8b8   : > { %v1898_v45 = vsub.f32 1.5, %v1897_v32 }
 0x8ba   : > { %v1899_v46 = vmul.f32 %v3634_v42, %v1898_v45 }
 0x8bc   : > { %v1903_v48 = vsel %vm1902_vm5, %v3634_v42, %v1899_v46 }
 0x8bd   : > { %v1924_v49 = vmul.f32 %v1903_v48, %v1873_v21  ;;  %v2014_v21 = vld [vmem:[%s3855_s12 + $0x28] sm:$0xff] }
 0x8be   : > { %2037 = vmatpush.msrb.mxu2 %v2014_v21 }
 0x8bf   : > { %v1930_v52 = vmul.f32 %v3562_v47, %v1924_v49 }
 0x8c0   : > { %2038 = vmatpush.msrb.mxu2 %v2013_v22 }
 0x8c1   : > { %v1936_v53 = vadd.f32 %v3563_v50, %v1930_v52 }
 0x8c2   : > { %2039 = vmatpush.msrb.mxu2 %v2012_v24 }
 0x8c3   : > { %3392 = vmatmul.msk.f32.vlgmr.msrb.gmra.mxu0 %vm1044_vm1, %v1936_v53 }
 0x8c4   : > { %2040 = vmatpush.msrb.mxu2 %v2011_v51 }
 0x8c6   : > { %2041 = vmatpush.msrb.mxu2 %v2010_v23 }
 0x8d5   : > { %v1884_v54 = vpop.xlane.xlu2 %1883 }
 0x8d6   : > { %v1889_v55 = vmul.f32 %v1884_v54, %v3983_v31 }
 0x8d8   : > { %v1892_v56 = vadd.f32 1e-12, %v1889_v55 }
 0x8da   : > { %3635 = vrsqrt.f32 %v1892_v56  ;;  %vm1910_vm7 = vweird.f32 %v1892_v56 }
 0x8dd   : > { %v1887_v58 = vpop.xlane.xlu1 %1886 }
 0x8de   : > { %v1890_v59 = vmul.f32 %v1887_v58, %v3983_v31 }
 0x8e0   : > { %v3636_v60 = vpop.eup %3635  ;;  %v1893_v61 = vadd.f32 1e-12, %v1890_v59 }
 0x8e1   : > { %v1905_v1 = vmul.f32 %v3636_v60, %v1892_v56  ;;  %vm1911_vm6 = vweird.f32 %v3636_v60 }
 0x8e2   : > { %3637 = vrsqrt.f32 %v1893_v61  ;;  %vm1912_vm8 = vmor %vm1910_vm7, %vm1911_vm6  ;;  %vm1920_vm10 = vweird.f32 %v1893_v61 }
 0x8e3   : > { %v1906_v2 = vmul.f32 %v3636_v60, %v1905_v1 }
 0x8e5   : > { %v1907_v3 = vmul.f32 0.5, %v1906_v2  ;;  %v3565_v2 = vld [vmem:[%s4605_s0] ss:$0 sm:$0xff]  ;;  %s4606_s0 = sld [smem:[#allocation6_spill]] }
 0x8e7   : > { %v1908_v4 = vsub.f32 1.5, %v1907_v3 }
 0x8e8   : > { %v3638_v6 = vpop.eup %3637 }
 0x8e9   : > { %v1909_v7 = vmul.f32 %v3636_v60, %v1908_v4  ;;  %v1915_v9 = vmul.f32 %v3638_v6, %v1893_v61  ;;  %vm1921_vm9 = vweird.f32 %v3638_v6 }
 0x8ea   : > { %vm1922_vm11 = vmor %vm1920_vm10, %vm1921_vm9 }
 0x8eb   : > { %v1913_v10 = vsel %vm1912_vm8, %v3636_v60, %v1909_v7  ;;  %v1916_v11 = vmul.f32 %v3638_v6, %v1915_v9 }
 0x8ec   : > { %v1925_v12 = vmul.f32 %v1913_v10, %v1874_v25  ;;  %v2009_v25 = vld [vmem:[%s3855_s12] sm:$0xff] }
 0x8ed   : > { %v1917_v62 = vmul.f32 0.5, %v1916_v11  ;;  %2042 = vmatpush.msrb.mxu2 %v2009_v25  ;;  %v2146_v25 = vld [vmem:[%s4606_s0 + $0x18] sm:$0xff] }
 0x8ee   : > { %v1931_v14 = vmul.f32 %v3562_v47, %v1925_v12  ;;  %2172 = vmatpush.msra.mxu3 %v2146_v25 }
 0x8ef   : > { %v1918_v38 = vsub.f32 1.5, %v1917_v62 }
 0x8f0   : > { %v1937_v13 = vadd.f32 %v3563_v50, %v1931_v14 }
 0x8f1   : > { %v1919_v15 = vmul.f32 %v3638_v6, %v1918_v38 }
 0x8f2   : > { %3393 = vmatmul.msk.f32.gmra.mxu0 %vm1044_vm1, %v1937_v13 }
 0x8f3   : > { %v1923_v16 = vsel %vm1922_vm11, %v3638_v6, %v1919_v15 }
 0x8f4   : > { %v1926_v17 = vmul.f32 %v1923_v16, %v4232_v29 }
 0x8f6   : > { %v1932_v63 = vmul.f32 %v3562_v47, %v1926_v17 }
 0x8f8   : > { %v1938_v20 = vadd.f32 %v3563_v50, %v1932_v63 }
 0x8fa   : > { %3394 = vmatmul.msk.f32.gmra.mxu0 %vm1044_vm1, %v1938_v20 }
 0x940   : > { %v1973_v57 = vpop.f32.mrf.mxu0 }
 0x941   : > { %v1974_v27 = vadd.f32 %v3564_v26, %v1973_v57  ;;  %v2144_v57 = vld [vmem:[%s4606_s0 + $0x8] sm:$0xff] }
 0x943   : > { %v1985_v28 = vmul.f32 0.044715, %v1974_v27  ;;  %v1982_v36 = vmul.f32 0.5, %v1974_v27 }
 0x945   : > { %v1988_v29 = vmul.f32 %v1985_v28, %v1974_v27 }
 0x947   : > { %v1991_v30 = vmul.f32 %v1988_v29, %v1974_v27 }
 0x949   : > { %v1994_v33 = vadd.f32 %v1991_v30, %v1974_v27  ;;  %v2143_v27 = vld [vmem:[%s4606_s0] sm:$0xff] }
 0x94b   : > { %v1997_v34 = vmul.f32 0.7978846, %v1994_v33 }
 0x94d   : > { %3639 = vtanh.f32 %v1997_v34 }
 0x953   : > { %v3640_v35 = vpop.eup %3639 }
 0x954   : > { %v2003_v37 = vadd.f32 1.0, %v3640_v35 }
 0x956   : > { %v2006_v39 = vmul.f32 %v2003_v37, %v1982_v36 }
 0x958   : > { %3395 = vmatmul.msk.f32.vlgmr.msrb.gmra.mxu2 %vm2017_vm12, %v2006_v39 }
 0x96f   : > { %v1976_v40 = vpop.f32.mrf.mxu0 }
 0x970   : > { %v1977_v41 = vadd.f32 %v3564_v26, %v1976_v40  ;;  %v3566_v40 = vld [vmem:[%s4607_s2] ss:$0 sm:$0xff]  ;;  %s4618_s2 = sld [smem:[#allocation14_spill]] }
 0x972   : > { %v1986_v42 = vmul.f32 0.044715, %v1977_v41  ;;  %v1983_v55 = vmul.f32 0.5, %v1977_v41 }
 0x974   : > { %v1989_v43 = vmul.f32 %v1986_v42, %v1977_v41 }
 0x976   : > { %v1992_v44 = vmul.f32 %v1989_v43, %v1977_v41  ;;  %v3567_v43 = vld [vmem:[%s4608_s26] ss:$0 sm:$0xff]  ;;  %s4609_s26 = sld [smem:[#allocation7_spill]] }
 0x977   : > { %v1979_v32 = vpop.f32.mrf.mxu0 }
 0x978   : > { %v1980_v45 = vadd.f32 %v3564_v26, %v1979_v32  ;;  %v1995_v46 = vadd.f32 %v1992_v44, %v1977_v41  ;;  %v2145_v26 = vld [vmem:[%s4606_s0 + $0x10] sm:$0xff] }
 0x979   : > { %2173 = vmatpush.msra.mxu3 %v2145_v26 }
 0x97a   : > { %v1987_v47 = vmul.f32 0.044715, %v1980_v45  ;;  %v1998_v48 = vmul.f32 0.7978846, %v1995_v46  ;;  %v1984_v60 = vmul.f32 0.5, %v1980_v45 }
 0x97b   : > { %2174 = vmatpush.msra.mxu3 %v2144_v57 }
 0x97c   : > { %3641 = vtanh.f32 %v1998_v48  ;;  %v1990_v49 = vmul.f32 %v1987_v47, %v1980_v45 }
 0x97d   : > { %2175 = vmatpush.msra.mxu3 %v2143_v27 }
 0x97e   : > { %v1993_v50 = vmul.f32 %v1990_v49, %v1980_v45 }
 0x980   : > { %v1996_v52 = vadd.f32 %v1993_v50, %v1980_v45 }
 0x982   : > { %v3642_v53 = vpop.eup %3641  ;;  %v1999_v54 = vmul.f32 0.7978846, %v1996_v52 }
 0x983   : > { %v2004_v56 = vadd.f32 1.0, %v3642_v53 }
 0x984   : > { %3643 = vtanh.f32 %v1999_v54 }
 0x985   : > { %v2007_v58 = vmul.f32 %v2004_v56, %v1983_v55 }
 0x987   : > { %3396 = vmatmul.msk.f32.gmra.mxu2 %vm2017_vm12, %v2007_v58 }
 0x98a   : > { %v3644_v59 = vpop.eup %3643 }
 0x98b   : > { %v2005_v61 = vadd.f32 1.0, %v3644_v59 }
 0x98d   : > { %v2008_v1 = vmul.f32 %v2005_v61, %v1984_v60 }
 0x98f   : > { %3397 = vmatmul.msk.f32.gmra.mxu2 %vm2017_vm12, %v2008_v1 }
 0x9db   : > { %v2044_v3 = vpop.f32.mrf.mxu2 }
 0x9dc   : > { %v2053_v4 = vadd.f32 %v2044_v3, %v4208_v5 }
 0x9de   : > { %v4264_v6 = vadd.f32 %v3565_v2, %v2053_v4 }
 0x9e0   : > { %v2065_v7 = vsel %vm1044_vm1, %v4264_v6, 0.0 }
 0x9e1   : > { %2066 = vadd.xlane.f32.xlu2 %v2065_v7 }
 0xa0a   : > { %v2047_v9 = vpop.f32.mrf.mxu2 }
 0xa0b   : > { %v2054_v10 = vadd.f32 %v2047_v9, %v4215_v8 }
 0xa0d   : > { %v4269_v11 = vadd.f32 %v3565_v2, %v2054_v10 }
 0xa0f   : > { %v2068_v12 = vsel %vm1044_vm1, %v4269_v11, 0.0 }
 0xa10   : > { %2069 = vadd.xlane.f32.xlu1 %v2068_v12 }
 0xa12   : > { %v2050_v62 = vpop.f32.mrf.mxu2 }
 0xa13   : > { %v2055_v14 = vadd.f32 %v2050_v62, %v4220_v19 }
 0xa15   : > { %v4274_v38 = vadd.f32 %v3565_v2, %v2055_v14 }
 0xa17   : > { %v2071_v5 = vsel %vm1051_vm2, %v4274_v38, 0.0 }
 0xa18   : > { %2072 = vadd.xlane.f32.xlu0 %v2071_v5 }
 0xa54   : > { %v2067_v13 = vpop.xlane.xlu2 %2066 }
 0xa55   : > { %v2074_v15 = vmul.f32 %v2067_v13, %v3983_v31  ;;  %v3568_v13 = vld [vmem:[%s4609_s26] ss:$0 sm:$0xff]  ;;  %s4619_s26 = sld [smem:[#allocation13_spill]] }
 0xa57   : > { %v2077_v8 = vsub.f32 %v4264_v6, %v2074_v15 }
 0xa59   : > { %v2080_v16 = vmul.f32 %v2077_v8, %v2077_v8 }
 0xa5b   : > { %v2083_v17 = vsel %vm1044_vm1, %v2080_v16, 0.0 }
 0xa5c   : > { %2084 = vadd.xlane.f32.xlu2 %v2083_v17 }
 0xa83   : > { %v2070_v63 = vpop.xlane.xlu1 %2069 }
 0xa84   : > { %v2075_v19 = vmul.f32 %v2070_v63, %v3983_v31 }
 0xa86   : > { %v2078_v20 = vsub.f32 %v4269_v11, %v2075_v19 }
 0xa88   : > { %v2081_v18 = vmul.f32 %v2078_v20, %v2078_v20 }
 0xa8a   : > { %v2086_v0 = vsel %vm1044_vm1, %v2081_v18, 0.0 }
 0xa8b   : > { %2087 = vadd.xlane.f32.xlu1 %v2086_v0  ;;  %v2073_v21 = vpop.xlane.xlu0 %2072 }
 0xa8c   : > { %v2076_v22 = vmul.f32 %v2073_v21, %v3983_v31 }
 0xa8e   : > { %v4286_v24 = vsub.f32 %v4274_v38, %v2076_v22 }
 0xa90   : > { %v2082_v51 = vmul.f32 %v4286_v24, %v4286_v24 }
 0xa92   : > { %v2089_v23 = vsel %vm1051_vm2, %v2082_v51, 0.0 }
 0xa93   : > { %2090 = vadd.xlane.f32.xlu0 %v2089_v23 }
 0xacf   : > { %v2085_v28 = vpop.xlane.xlu2 %2084 }
 0xad0   : > { %v2092_v29 = vmul.f32 %v2085_v28, %v3983_v31 }
 0xad2   : > { %v2095_v30 = vadd.f32 1e-12, %v2092_v29 }
 0xad4   : > { %3645 = vrsqrt.f32 %v2095_v30  ;;  %vm2104_vm4 = vweird.f32 %v2095_v30 }
 0xada   : > { %v3646_v33 = vpop.eup %3645 }
 0xadb   : > { %v2099_v34 = vmul.f32 %v3646_v33, %v2095_v30  ;;  %vm2105_vm3 = vweird.f32 %v3646_v33 }
 0xadc   : > { %vm2106_vm5 = vmor %vm2104_vm4, %vm2105_vm3 }
 0xadd   : > { %v2100_v35 = vmul.f32 %v3646_v33, %v2099_v34 }
 0xadf   : > { %v2101_v36 = vmul.f32 0.5, %v2100_v35 }
 0xae1   : > { %v2102_v37 = vsub.f32 1.5, %v2101_v36 }
 0xae3   : > { %v2103_v39 = vmul.f32 %v3646_v33, %v2102_v37 }
 0xae5   : > { %v2107_v41 = vsel %vm2106_vm5, %v3646_v33, %v2103_v39 }
 0xae6   : > { %v2128_v42 = vmul.f32 %v2107_v41, %v2077_v8 }
 0xae8   : > { %v2134_v44 = vmul.f32 %v3566_v40, %v2128_v42 }
 0xaea   : > { %v2140_v32 = vadd.f32 %v3567_v43, %v2134_v44 }
 0xaec   : > { %3398 = vmatmul.msk.f32.vlgmr.msra.gmra.mxu3 %vm1044_vm1, %v2140_v32 }
 0xafe   : > { %v2088_v45 = vpop.xlane.xlu1 %2087 }
 0xaff   : > { %v2093_v46 = vmul.f32 %v2088_v45, %v3983_v31 }
 0xb01   : > { %v2096_v47 = vadd.f32 1e-12, %v2093_v46 }
 0xb03   : > { %3647 = vrsqrt.f32 %v2096_v47  ;;  %vm2114_vm7 = vweird.f32 %v2096_v47 }
 0xb06   : > { %v2091_v48 = vpop.xlane.xlu0 %2090 }
 0xb07   : > { %v2094_v49 = vmul.f32 %v2091_v48, %v3983_v31 }
 0xb09   : > { %v3648_v50 = vpop.eup %3647  ;;  %v2097_v52 = vadd.f32 1e-12, %v2094_v49 }
 0xb0a   : > { %v2109_v53 = vmul.f32 %v3648_v50, %v2096_v47  ;;  %vm2115_vm6 = vweird.f32 %v3648_v50 }
 0xb0b   : > { %3649 = vrsqrt.f32 %v2097_v52  ;;  %vm2116_vm8 = vmor %vm2114_vm7, %vm2115_vm6  ;;  %vm2124_vm10 = vweird.f32 %v2097_v52 }
 0xb0c   : > { %v2110_v54 = vmul.f32 %v3648_v50, %v2109_v53 }
 0xb0e   : > { %v2111_v55 = vmul.f32 0.5, %v2110_v54 }
 0xb10   : > { %v2112_v56 = vsub.f32 1.5, %v2111_v55 }
 0xb11   : > { %v3650_v58 = vpop.eup %3649 }
 0xb12   : > { %v2113_v59 = vmul.f32 %v3648_v50, %v2112_v56  ;;  %v2119_v60 = vmul.f32 %v3650_v58, %v2097_v52  ;;  %vm2125_vm9 = vweird.f32 %v3650_v58 }
 0xb13   : > { %vm2126_vm11 = vmor %vm2124_vm10, %vm2125_vm9 }
 0xb14   : > { %v2117_v61 = vsel %vm2116_vm8, %v3648_v50, %v2113_v59  ;;  %v2120_v1 = vmul.f32 %v3650_v58, %v2119_v60 }
 0xb15   : > { %v2129_v2 = vmul.f32 %v2117_v61, %v2078_v20 }
 0xb16   : > { %v2121_v3 = vmul.f32 0.5, %v2120_v1 }
 0xb17   : > { %v2135_v4 = vmul.f32 %v3566_v40, %v2129_v2 }
 0xb18   : > { %v2122_v7 = vsub.f32 1.5, %v2121_v3 }
 0xb19   : > { %v2141_v9 = vadd.f32 %v3567_v43, %v2135_v4 }
 0xb1a   : > { %v2123_v10 = vmul.f32 %v3650_v58, %v2122_v7 }
 0xb1b   : > { %3399 = vmatmul.msk.f32.gmra.mxu3 %vm1044_vm1, %v2141_v9 }
 0xb1c   : > { %v2127_v12 = vsel %vm2126_vm11, %v3650_v58, %v2123_v10 }
 0xb1d   : > { %v2130_v62 = vmul.f32 %v2127_v12, %v4286_v24 }
 0xb1f   : > { %v2136_v14 = vmul.f32 %v3566_v40, %v2130_v62 }
 0xb21   : > { %v2142_v5 = vadd.f32 %v3567_v43, %v2136_v14 }
 0xb23   : > { %3400 = vmatmul.msk.f32.gmra.mxu3 %vm1044_vm1, %v2142_v5 }
 0xb6f   : > { %v2177_v15 = vpop.f32.mrf.mxu3 }
 0xb70   : > { %v4305_v8 = vadd.f32 %v3568_v13, %v2177_v15 }
 0xb72   : > { %2193 = vrot.lane.b32.xlu0 %v4305_v8, %s3766_s7 }
 0xb9e   : > { %v2180_v16 = vpop.f32.mrf.mxu3 }
 0xb9f   : > { %v4309_v17 = vadd.f32 %v3568_v13, %v2180_v16 }
 0xba1   : > { %2195 = vrot.lane.b32.xlu1 %v4309_v17, %s3766_s7  ;;  %v4335_v28 = vpack.i.bf16 %v4305_v8, %v4309_v17 }
 0xba6   : > { %v2183_v63 = vpop.f32.mrf.mxu3 }
 0xba7   : > { %v4313_v19 = vadd.f32 %v3568_v13, %v2183_v63 }
 0xba9   : > { %2197 = vrot.lane.b32.xlu2 %v4313_v19, %s3766_s7  ;;  %s4610_s7 = sld [smem:[#allocation8_spill]] }
 0xbaf   : > { %v2186_v52 = vld [vmem:[%s4610_s7] sm:$0xff] }
 0xbe4   : > { %v2194_v0 = vpop.permute.xlu0 %2193 }
 0xc03   : > { %v2198_v20 = vpop.permute.xlu2 %2197 }
 0xc04   : > { %3401 = vmatpush.xpose.msk.msra.mxu1 %vm1187_vm13, %v2198_v20 }
 0xc13   : > { %v2196_v18 = vpop.permute.xlu1 %2195 }
 0xc14   : > { %3402 = vmatpush.xpose.msk.msra.mxu1 %vm1187_vm13, %v2196_v18 }
 0xc18   : > { %3403 = vmatpush.xpose.msk.msra.mxu1 %vm1187_vm13, %v2194_v0 }
 0xc1b   : > { %3404 = vmatmul.msk.f32.vlgmr.msra.gmra.mxu1 %vm1187_vm13, %v4305_v8 }
 0xc23   : > { %3405 = vmatmul.msk.f32.gmra.mxu1 %vm1187_vm13, %v4309_v17 }
 0xc2b   : > { %3406 = vmatmul.msk.f32.gmra.mxu1 %vm1187_vm13, %v4313_v19 }
 0xc98   : > { %v2228_v21 = vpop.f32.mrf.mxu1 }
 0xc99   : > { %v2237_v22 = vmul.f32 0.35355338, %v2228_v21 }
 0xc9b   : > { %v2240_v24 = vsel %vm1229_vm14, %v2237_v22, -inf }
 0xc9c   : > { %2241 = vmax.xlane.f32.xlu2 %v2240_v24 }
 0xca0   : > { %v2231_v51 = vpop.f32.mrf.mxu1 }
 0xca1   : > { %v2238_v23 = vmul.f32 0.35355338, %v2231_v51 }
 0xca3   : > { %v2243_v25 = vsel %vm1229_vm14, %v2238_v23, -inf }
 0xca4   : > { %2244 = vmax.xlane.f32.xlu0 %v2243_v25 }
 0xca8   : > { %v2234_v26 = vpop.f32.mrf.mxu1 }
 0xca9   : > { %v2239_v57 = vmul.f32 0.35355338, %v2234_v26 }
 0xcab   : > { %v2246_v27 = vsel %vm1236_vm15, %v2239_v57, -inf }
 0xcac   : > { %2247 = vmax.xlane.f32.xlu1 %v2246_v27 }
 0xcb8   : > { %2277 = vrot.lane.b32.xlu0 %v4313_v19, %s3767_s10 }
 0xcc0   : > { %2328 = vrot.lane.b32.xlu0 %v4313_v19, %s3768_s11 }
 0xcc5   : > { %3538 = vrot.lane.b32.xlu1 %v4335_v28, %s3767_s10  ;;  %s4611_s10 = smov 56  }
 0xcc8   : > { %2324 = vrot.lane.b32.xlu0 %v4305_v8, %s3768_s11 }
 0xccd   : > { %2318 = vrot.lane.b32.xlu1 %v4305_v8, %s3769_s15 }
 0xcd0   : > { %2320 = vrot.lane.b32.xlu0 %v4309_v17, %s3769_s15 }
 0xcd5   : > { %2529 = vrot.lane.b32.xlu1 %v4313_v19, %s3773_s23 }
 0xcd8   : > { %2698 = vrot.lane.b32.xlu0 %v4313_v19, %s3770_s16 }
 0xcdd   : > { %2527 = vrot.lane.b32.xlu1 %v4309_v17, %s3773_s23 }
 0xce0   : > { %2696 = vrot.lane.b32.xlu0 %v4309_v17, %s3770_s16 }
 0xce5   : > { %2694 = vrot.lane.b32.xlu1 %v4305_v8, %s3770_s16  ;;  %s4614_s16 = sld [smem:[#allocation9_spill]] }
 0xce8   : > { %2519 = vrot.lane.b32.xlu0 %v4305_v8, %s3772_s22 }
 0xced   : > { %2521 = vrot.lane.b32.xlu1 %v4309_v17, %s3772_s22 }
 0xcf0   : > { %2690 = vrot.lane.b32.xlu0 %v4309_v17, %s3771_s18 }
 0xcf5   : > { %2692 = vrot.lane.b32.xlu1 %v4313_v19, %s3771_s18 }
 0xd0f   : > { %v2242_v29 = vpop.xlane.xlu2 %2241 }
 0xd10   : > { %v2249_v30 = vsub.f32 %v2237_v22, %v2242_v29 }
 0xd12   : > { %v2252_v33 = vmul.f32 1.442695, %v2249_v30 }
 0xd14   : > { %3651 = vpow2.f32 %v2252_v33 }
 0xd17   : > { %v2245_v34 = vpop.xlane.xlu0 %2244 }
 0xd18   : > { %v2250_v35 = vsub.f32 %v2238_v23, %v2245_v34 }
 0xd1a   : > { %v3652_v36 = vpop.eup %3651  ;;  %v2254_v37 = vmul.f32 1.442695, %v2250_v35 }
 0xd1b   : > { %v2258_v39 = vsel %vm1229_vm14, %v3652_v36, 0.0 }
 0xd1c   : > { %3653 = vpow2.f32 %v2254_v37  ;;  %2259 = vadd.xlane.f32.xlu2 %v2258_v39 }
 0xd1f   : > { %v2248_v40 = vpop.xlane.xlu1 %2247 }
 0xd20   : > { %v2251_v41 = vsub.f32 %v2239_v57, %v2248_v40 }
 0xd22   : > { %v3654_v42 = vpop.eup %3653  ;;  %v2256_v43 = vmul.f32 1.442695, %v2251_v41 }
 0xd23   : > { %v2261_v44 = vsel %vm1229_vm14, %v3654_v42, 0.0 }
 0xd24   : > { %3655 = vpow2.f32 %v2256_v43  ;;  %2262 = vadd.xlane.f32.xlu2 %v2261_v44 }
 0xd2a   : > { %v3656_v32 = vpop.eup %3655  ;;  %v2278_v45 = vpop.permute.xlu0 %2277 }
 0xd2b   : > { %3407 = vmatpush.msk.msra.mxu0 %vm1281_vm0, %v2278_v45  ;;  %v2264_v46 = vsel %vm1236_vm15, %v3656_v32, 0.0 }
 0xd2c   : > { %2265 = vadd.xlane.f32.xlu2 %v2264_v46 }
 0xd32   : > { %v2329_v47 = vpop.permute.xlu0 %2328 }
 0xd33   : > { %3411 = vmatpush.xpose.msk.msra.mxu2 %vm1187_vm13, %v2329_v47 }
 0xd37   : > { %v3539_v48 = vpop.permute.xlu1 %3538 }
 0xd38   : > { %v3540_v49 = vunpack.i.l.bf16 %v3539_v48  ;;  %v3541_v50 = vunpack.i.h.bf16 %v3539_v48 }
 0xd3a   : > { %2306 = vmatpush.msra.mxu0 %v3540_v49  ;;  %v2325_v53 = vpop.permute.xlu0 %2324 }
 0xd3c   : > { %2307 = vmatpush.msra.mxu0 %v3541_v50 }
 0xd3e   : > { %2508 = vmatpush.msrb.mxu0 %v2186_v52 }
 0xd3f   : > { %v2319_v54 = vpop.permute.xlu1 %2318 }
 0xd42   : > { %v2321_v55 = vpop.permute.xlu0 %2320 }
 0xd44   : > { %2326 = vrot.lane.b32.xlu2 %v4309_v17, %s3768_s11  ;;  %s4612_s11 = smov 40  }
 0xd47   : > { %v2530_v56 = vpop.permute.xlu1 %2529 }
 0xd4a   : > { %v2699_v59 = vpop.permute.xlu0 %2698 }
 0xd4c   : > { %2322 = vrot.lane.b32.xlu2 %v4313_v19, %s3769_s15  ;;  %s4613_s15 = smov 48  }
 0xd4f   : > { %v2528_v61 = vpop.permute.xlu1 %2527 }
 0xd52   : > { %v2697_v3 = vpop.permute.xlu0 %2696 }
 0xd54   : > { %2525 = vrot.lane.b32.xlu2 %v4305_v8, %s3773_s23  ;;  %s4617_s23 = sld [smem:[#allocation11_spill]] }
 0xd57   : > { %v2695_v10 = vpop.permute.xlu1 %2694 }
 0xd5a   : > { %v2520_v15 = vpop.permute.xlu0 %2519 }
 0xd5c   : > { %2688 = vrot.lane.b32.xlu2 %v4305_v8, %s3771_s18  ;;  %s4615_s18 = sld [smem:[#allocation12_spill]] }
 0xd5f   : > { %v2522_v16 = vpop.permute.xlu1 %2521 }
 0xd62   : > { %v2691_v24 = vpop.permute.xlu0 %2690 }
 0xd64   : > { %2523 = vrot.lane.b32.xlu2 %v4313_v19, %s3772_s22  ;;  %s4616_s22 = sld [smem:[#allocation10_spill]] }
 0xd67   : > { %v2693_v26 = vpop.permute.xlu1 %2692 }
 0xd8f   : > { %v2260_v58 = vpop.xlane.xlu2 %2259 }
 0xd90   : > { %3657 = vrcp.f32 %v2260_v58 }
 0xd96   : > { %v3658_v60 = vpop.eup %3657 }
 0xd97   : > { %v2270_v1 = vmul.f32 %v3658_v60, %v3652_v36  ;;  %v2263_v2 = vpop.xlane.xlu2 %2262 }
 0xd98   : > { %3659 = vrcp.f32 %v2263_v2 }
 0xd99   : > { %3408 = vmatmul.msk.f32.vlgmr.msra.gmra.mxu0 %vm1229_vm14, %v2270_v1 }
 0xd9a   : > { %3440 = vmatpush.xpose.msk.msra.mxu0 %vm1187_vm13, %v2699_v59 }
 0xd9e   : > { %v3660_v4 = vpop.eup %3659  ;;  %3441 = vmatpush.xpose.msk.msra.mxu0 %vm1187_vm13, %v2697_v3 }
 0xd9f   : > { %v2266_v7 = vpop.xlane.xlu2 %2265  ;;  %v2271_v9 = vmul.f32 %v3660_v4, %v3654_v42 }
 0xda0   : > { %3661 = vrcp.f32 %v2266_v7 }
 0xda1   : > { %3409 = vmatmul.msk.f32.gmra.mxu0 %vm1229_vm14, %v2271_v9 }
 0xda2   : > { %3442 = vmatpush.xpose.msk.msra.mxu0 %vm1187_vm13, %v2695_v10 }
 0xda6   : > { %v3662_v12 = vpop.eup %3661 }
 0xda7   : > { %v2327_v62 = vpop.permute.xlu2 %2326  ;;  %v2272_v14 = vmul.f32 %v3662_v12, %v3656_v32 }
 0xda8   : > { %3412 = vmatpush.xpose.msk.msra.mxu2 %vm1187_vm13, %v2327_v62 }
 0xda9   : > { %3410 = vmatmul.msk.f32.gmra.mxu0 %vm1229_vm14, %v2272_v14 }
 0xdac   : > { %3413 = vmatpush.xpose.msk.msra.mxu2 %vm1187_vm13, %v2325_v53 }
 0xdaf   : > { %v2323_v5 = vpop.permute.xlu2 %2322  ;;  %3414 = vmatmul.msk.f32.vlgmr.msra.gmra.mxu2 %vm1187_vm13, %v2319_v54 }
 0xdb0   : > { %3427 = vmatpush.xpose.msk.msrb.mxu2 %vm1187_vm13, %v2530_v56 }
 0xdb4   : > { %3428 = vmatpush.xpose.msk.msrb.mxu2 %vm1187_vm13, %v2528_v61 }
 0xdb7   : > { %v2526_v13 = vpop.permute.xlu2 %2525  ;;  %3415 = vmatmul.msk.f32.gmra.mxu2 %vm1187_vm13, %v2321_v55 }
 0xdb8   : > { %3429 = vmatpush.xpose.msk.msrb.mxu2 %vm1187_vm13, %v2526_v13 }
 0xdbf   : > { %3416 = vmatmul.msk.f32.gmra.mxu2 %vm1187_vm13, %v2323_v5  ;;  %v2689_v8 = vpop.permute.xlu2 %2688 }
 0xdc7   : > { %3430 = vmatmul.msk.f32.vlgmr.msrb.gmra.mxu2 %vm1187_vm13, %v2520_v15  ;;  %v2524_v17 = vpop.permute.xlu2 %2523 }
 0xdcf   : > { %3431 = vmatmul.msk.f32.gmra.mxu2 %vm1187_vm13, %v2522_v16 }
 0xdd7   : > { %3432 = vmatmul.msk.f32.gmra.mxu2 %vm1187_vm13, %v2524_v17 }
 0xe16   : > { %v2309_v63 = vpop.f32.mrf.mxu0 }
 0xe17   : > { %3424 = vmatmul.msk.f32.vlgmr.msrb.gmra.mxu0 %vm1187_vm13, %v2309_v63 }
 0xe1e   : > { %v2312_v20 = vpop.f32.mrf.mxu0 }
 0xe1f   : > { %3425 = vmatmul.msk.f32.gmra.mxu0 %vm1187_vm13, %v2312_v20 }
 0xe26   : > { %v2315_v18 = vpop.f32.mrf.mxu0 }
 0xe27   : > { %3426 = vmatmul.msk.f32.gmra.mxu0 %vm1187_vm13, %v2315_v18 }
 0xe2f   : > { %3443 = vmatmul.msk.f32.vlgmr.msra.gmra.mxu0 %vm1187_vm13, %v2689_v8 }
 0xe32   : > { %v2359_v0 = vpop.f32.mrf.mxu2 }
 0xe33   : > { %v2368_v21 = vmul.f32 0.35355338, %v2359_v0 }
 0xe35   : > { %v2371_v22 = vsel %vm1229_vm14, %v2368_v21, -inf }
 0xe36   : > { %2372 = vmax.xlane.f32.xlu0 %v2371_v22 }
 0xe37   : > { %3444 = vmatmul.msk.f32.gmra.mxu0 %vm1187_vm13, %v2691_v24 }
 0xe3a   : > { %v2362_v51 = vpop.f32.mrf.mxu2 }
 0xe3b   : > { %v2369_v23 = vmul.f32 0.35355338, %v2362_v51 }
 0xe3d   : > { %v2374_v25 = vsel %vm1229_vm14, %v2369_v23, -inf }
 0xe3e   : > { %2375 = vmax.xlane.f32.xlu2 %v2374_v25 }
 0xe3f   : > { %3445 = vmatmul.msk.f32.gmra.mxu0 %vm1187_vm13, %v2693_v26 }
 0xe42   : > { %v2365_v57 = vpop.f32.mrf.mxu2 }
 0xe43   : > { %v2370_v27 = vmul.f32 0.35355338, %v2365_v57 }
 0xe45   : > { %v2377_v29 = vsel %vm1236_vm15, %v2370_v27, -inf }
 0xe46   : > { %2378 = vmax.xlane.f32.xlu1 %v2377_v29 }
 0xe4a   : > { %v2560_v30 = vpop.f32.mrf.mxu2 }
 0xe4b   : > { %v2569_v33 = vmul.f32 0.35355338, %v2560_v30 }
 0xe4d   : > { %v2572_v34 = vsel %vm1229_vm14, %v2569_v33, -inf }
 0xe4e   : > { %2573 = vmax.xlane.f32.xlu0 %v2572_v34 }
 0xe52   : > { %v2563_v35 = vpop.f32.mrf.mxu2 }
 0xe53   : > { %v4406_v36 = vmul.f32 0.35355338, %v2563_v35 }
 0xe55   : > { %v2575_v37 = vsel %vm1229_vm14, %v4406_v36, -inf }
 0xe56   : > { %2576 = vmax.xlane.f32.xlu2 %v2575_v37 }
 0xe5a   : > { %v2566_v39 = vpop.f32.mrf.mxu2 }
 0xe5b   : > { %v4410_v40 = vmul.f32 0.35355338, %v2566_v39 }
 0xe5d   : > { %v2578_v41 = vsel %vm1236_vm15, %v4410_v40, -inf }
 0xe5e   : > { %2579 = vmax.xlane.f32.xlu1 %v2578_v41 }
 0xe62   : > { %2408 = vrot.lane.b32.xlu0 %v4313_v19, %s4611_s10 }
 0xe77   : > { %3543 = vrot.lane.b32.xlu1 %v4335_v28, %s4611_s10  ;;  %s4620_s10 = sld [smem:[#allocation15_spill]] }
 0xe94   : > { %v4418_v42 = vpop.f32.mrf.mxu0 }
 0xe9c   : > { %v4420_v43 = vpop.f32.mrf.mxu0 }
 0xea4   : > { %v4422_v44 = vpop.f32.mrf.mxu0 }
 0xea9   : > { %v2373_v32 = vpop.xlane.xlu0 %2372 }
 0xeaa   : > { %v2380_v45 = vsub.f32 %v2368_v21, %v2373_v32 }
 0xeac   : > { %v2383_v46 = vmul.f32 1.442695, %v2380_v45  ;;  %v2729_v47 = vpop.f32.mrf.mxu0 }
 0xead   : > { %v2738_v13 = vmul.f32 0.35355338, %v2729_v47 }
 0xeae   : > { %3663 = vpow2.f32 %v2383_v46 }
 0xeaf   : > { %v2741_v8 = vsel %vm1229_vm14, %v2738_v13, -inf }
 0xeb1   : > { %v2376_v48 = vpop.xlane.xlu2 %2375 }
 0xeb2   : > { %v2381_v49 = vsub.f32 %v2369_v23, %v2376_v48 }
 0xeb4   : > { %v3664_v50 = vpop.eup %3663  ;;  %v2385_v52 = vmul.f32 1.442695, %v2381_v49  ;;  %v2732_v53 = vpop.f32.mrf.mxu0 }
 0xeb5   : > { %v2739_v54 = vmul.f32 0.35355338, %v2732_v53  ;;  %v2389_v55 = vsel %vm1229_vm14, %v3664_v50, 0.0 }
 0xeb6   : > { %3665 = vpow2.f32 %v2385_v52  ;;  %2390 = vadd.xlane.f32.xlu2 %v2389_v55 }
 0xeb7   : > { %v2744_v56 = vsel %vm1229_vm14, %v2739_v54, -inf }
 0xeb8   : > { %2745 = vmax.xlane.f32.xlu1 %v2744_v56 }
 0xeb9   : > { %v2379_v58 = vpop.xlane.xlu1 %2378 }
 0xeba   : > { %v2382_v59 = vsub.f32 %v2370_v27, %v2379_v58 }
 0xebc   : > { %v3666_v60 = vpop.eup %3665  ;;  %v2387_v61 = vmul.f32 1.442695, %v2382_v59  ;;  %v2735_v1 = vpop.f32.mrf.mxu0 }
 0xebd   : > { %v2740_v2 = vmul.f32 0.35355338, %v2735_v1  ;;  %v2392_v3 = vsel %vm1229_vm14, %v3666_v60, 0.0 }
 0xebe   : > { %3667 = vpow2.f32 %v2387_v61  ;;  %2393 = vadd.xlane.f32.xlu2 %v2392_v3  ;;  %v2187_v3 = vld [vmem:[%s4610_s7 + $0x8] sm:$0xff] }
 0xebf   : > { %v2747_v4 = vsel %vm1236_vm15, %v2740_v2, -inf  ;;  %2473 = vmatpush.msrb.mxu1 %v2187_v3 }
 0xec0   : > { %2748 = vmax.xlane.f32.xlu0 %v2747_v4 }
 0xec1   : > { %v2574_v7 = vpop.xlane.xlu0 %2573 }
 0xec2   : > { %v2581_v9 = vsub.f32 %v2569_v33, %v2574_v7 }
 0xec4   : > { %v3668_v10 = vpop.eup %3667  ;;  %v2584_v12 = vmul.f32 1.442695, %v2581_v9 }
 0xec5   : > { %v2395_v62 = vsel %vm1236_vm15, %v3668_v10, 0.0 }
 0xec6   : > { %3669 = vpow2.f32 %v2584_v12  ;;  %2396 = vadd.xlane.f32.xlu2 %v2395_v62 }
 0xec9   : > { %v2577_v18 = vpop.xlane.xlu2 %2576 }
 0xeca   : > { %v2582_v0 = vsub.f32 %v4406_v36, %v2577_v18 }
 0xecc   : > { %v4429_v14 = vpop.eup %3669  ;;  %v2586_v21 = vmul.f32 1.442695, %v2582_v0 }
 0xecd   : > { %v2590_v5 = vsel %vm1229_vm14, %v4429_v14, 0.0 }
 0xece   : > { %2591 = vadd.xlane.f32.xlu2 %v2590_v5  ;;  %3671 = vpow2.f32 %v2586_v21 }
 0xed1   : > { %2778 = vrot.lane.b32.xlu1 %v4313_v19, %s4612_s11  ;;  %v4437_v16 = vpop.xlane.xlu1 %2579 }
 0xed4   : > { %v2409_v15 = vpop.permute.xlu0 %2408  ;;  %v4444_v22 = vpop.eup %3671 }
 0xed5   : > { %3417 = vmatpush.msk.msrb.mxu3 %vm1281_vm0, %v2409_v15  ;;  %v2593_v24 = vsel %vm1229_vm14, %v4444_v22, 0.0 }
 0xed6   : > { %2742 = vmax.xlane.f32.xlu2 %v2741_v8 }
 0xee9   : > { %v3544_v17 = vpop.permute.xlu1 %3543 }
 0xeea   : > { %v3545_v63 = vunpack.i.l.bf16 %v3544_v17  ;;  %v3546_v20 = vunpack.i.h.bf16 %v3544_v17 }
 0xeec   : > { %2437 = vmatpush.msrb.mxu3 %v3545_v63 }
 0xeee   : > { %2438 = vmatpush.msrb.mxu3 %v3546_v20  ;;  %3548 = vrot.lane.b32.xlu2 %v4335_v28, %s4612_s11  ;;  %s4621_s11 = sld [smem:[#allocation16_spill]] }
 0xef6   : > { %2609 = vrot.lane.b32.xlu2 %v4313_v19, %s4613_s15 }
 0xf1f   : > { %2594 = vadd.xlane.f32.xlu2 %v2593_v24 }
 0xf29   : > { %v2391_v51 = vpop.xlane.xlu2 %2390 }
 0xf2a   : > { %3673 = vrcp.f32 %v2391_v51 }
 0xf2b   : > { %v2746_v23 = vpop.xlane.xlu1 %2745 }
 0xf2c   : > { %v2751_v25 = vsub.f32 %v2739_v54, %v2746_v23 }
 0xf2e   : > { %v2755_v26 = vmul.f32 1.442695, %v2751_v25 }
 0xf30   : > { %v3674_v57 = vpop.eup %3673  ;;  %3675 = vpow2.f32 %v2755_v26  ;;  %v2189_v26 = vld [vmem:[%s4610_s7 + $0x18] sm:$0xff] }
 0xf31   : > { %v2401_v27 = vmul.f32 %v3674_v57, %v3664_v50  ;;  %v2394_v19 = vpop.xlane.xlu2 %2393 }
 0xf32   : > { %3677 = vrcp.f32 %v2394_v19 }
 0xf33   : > { %3418 = vmatmul.msk.f32.vlgmr.msrb.gmra.mxu3 %vm1229_vm14, %v2401_v27  ;;  %v2749_v29 = vpop.xlane.xlu0 %2748 }
 0xf34   : > { %v2752_v30 = vsub.f32 %v2740_v2, %v2749_v29 }
 0xf36   : > { %v3676_v33 = vpop.eup %3675  ;;  %v2757_v34 = vmul.f32 1.442695, %v2752_v30 }
 0xf37   : > { %v2762_v35 = vsel %vm1229_vm14, %v3676_v33, 0.0 }
 0xf38   : > { %v3678_v36 = vpop.eup %3677  ;;  %3679 = vpow2.f32 %v2757_v34  ;;  %2763 = vadd.xlane.f32.xlu1 %v2762_v35 }
 0xf39   : > { %v2397_v37 = vpop.xlane.xlu2 %2396  ;;  %v2402_v39 = vmul.f32 %v3678_v36, %v3666_v60  ;;  %v2583_v60 = vsub.f32 %v4410_v40, %v4437_v16 }
 0xf3a   : > { %3681 = vrcp.f32 %v2397_v37 }
 0xf3b   : > { %3419 = vmatmul.msk.f32.gmra.mxu3 %vm1229_vm14, %v2402_v39  ;;  %v2588_v61 = vmul.f32 1.442695, %v2583_v60 }
 0xf3e   : > { %v3680_v41 = vpop.eup %3679 }
 0xf3f   : > { %v2765_v32 = vsel %vm1236_vm15, %v3680_v41, 0.0 }
 0xf40   : > { %v3682_v45 = vpop.eup %3681  ;;  %2766 = vadd.xlane.f32.xlu1 %v2765_v32 }
 0xf41   : > { %v2592_v46 = vpop.xlane.xlu2 %2591  ;;  %v2403_v47 = vmul.f32 %v3682_v45, %v3668_v10  ;;  %v3569_v45 = vld [vmem:[%s4614_s16] ss:$0 sm:$0xff] }
 0xf43   : > { %3420 = vmatmul.msk.f32.gmra.mxu3 %vm1229_vm14, %v2403_v47  ;;  %v2779_v48 = vpop.permute.xlu1 %2778 }
 0xf44   : > { %3446 = vmatpush.msk.msra.mxu2 %vm1281_vm0, %v2779_v48 }
 0xf49   : > { %v2743_v49 = vpop.xlane.xlu2 %2742 }
 0xf4a   : > { %v2750_v50 = vsub.f32 %v2738_v13, %v2743_v49 }
 0xf4c   : > { %v2753_v52 = vmul.f32 1.442695, %v2750_v50 }
 0xf4e   : > { %3683 = vpow2.f32 %v2753_v52 }
 0xf4f   : > { %3685 = vpow2.f32 %v2588_v61 }
 0xf51   : > { %v3549_v53 = vpop.permute.xlu2 %3548 }
 0xf52   : > { %v3550_v54 = vunpack.i.l.bf16 %v3549_v53  ;;  %v3551_v56 = vunpack.i.h.bf16 %v3549_v53 }
 0xf54   : > { %v3684_v55 = vpop.eup %3683  ;;  %2807 = vmatpush.msra.mxu2 %v3550_v54 }
 0xf55   : > { %v2759_v58 = vsel %vm1229_vm14, %v3684_v55, 0.0  ;;  %v3686_v1 = vpop.eup %3685 }
 0xf56   : > { %2808 = vmatpush.msra.mxu2 %v3551_v56  ;;  %2760 = vadd.xlane.f32.xlu0 %v2759_v58  ;;  %v2596_v2 = vsel %vm1236_vm15, %v3686_v1, 0.0 }
 0xf59   : > { %v2610_v59 = vpop.permute.xlu2 %2609 }
 0xf5a   : > { %3433 = vmatpush.msk.msra.mxu3 %vm1281_vm0, %v2610_v59 }
 0xf6a   : > { %3553 = vrot.lane.b32.xlu0 %v4335_v28, %s4613_s15  ;;  %s4622_s15 = smul.u32 24, %s4624_s1 }
 0xf6c   : > { %s986_s16 = scalar_lea.vmem %s3945_s27, %s4622_s15 }
 0xf92   : > { %v2595_v15 = vpop.xlane.xlu2 %2594 }
 0xf94   : > { %2597 = vadd.xlane.f32.xlu0 %v2596_v2 }
 0xfab   : > { %v2764_v40 = vpop.xlane.xlu1 %2763 }
 0xfb3   : > { %v2767_v62 = vpop.xlane.xlu1 %2766 }
 0xfb6   : > { %v2440_v4 = vpop.f32.mrf.mxu3 }
 0xfb7   : > { %3421 = vmatmul.msk.f32.vlgmr.msrb.gmra.mxu1 %vm1187_vm13, %v2440_v4 }
 0xfbe   : > { %v2443_v7 = vpop.f32.mrf.mxu3 }
 0xfbf   : > { %3422 = vmatmul.msk.f32.gmra.mxu1 %vm1187_vm13, %v2443_v7 }
 0xfc6   : > { %v2446_v9 = vpop.f32.mrf.mxu3 }
 0xfc7   : > { %3423 = vmatmul.msk.f32.gmra.mxu1 %vm1187_vm13, %v2446_v9 }
 0xfc9   : > { %v2761_v28 = vpop.xlane.xlu0 %2760 }
 0xfca   : > { %3687 = vrcp.f32 %v2761_v28 }
 0xfcb   : > { %3689 = vrcp.f32 %v2764_v40 }
 0xfcc   : > { %3691 = vrcp.f32 %v2592_v46 }
 0xfcd   : > { %3693 = vrcp.f32 %v2767_v62 }
 0xfce   : > { %3695 = vrcp.f32 %v2595_v15 }
 0xfd0   : > { %v3688_v10 = vpop.eup %3687 }
 0xfd1   : > { %v2771_v12 = vmul.f32 %v3688_v10, %v3684_v55  ;;  %v3690_v5 = vpop.eup %3689 }
 0xfd2   : > { %v2772_v13 = vmul.f32 %v3690_v5, %v3676_v33  ;;  %v3692_v16 = vpop.eup %3691 }
 0xfd3   : > { %3447 = vmatmul.msk.f32.vlgmr.msra.gmra.mxu2 %vm1229_vm14, %v2771_v12  ;;  %v3694_v63 = vpop.eup %3693  ;;  %v2602_v18 = vmul.f32 %v3692_v16, %v4429_v14  ;;  %v2188_v14 = vld [vmem:[%s4610_s7 + $0x10] sm:$0xff] }
 0xfd4   : > { %v2773_v0 = vmul.f32 %v3694_v63, %v3680_v41  ;;  %v3696_v21 = vpop.eup %3695  ;;  %2674 = vmatpush.msra.mxu1 %v2188_v14  ;;  %v2949_v16 = vld [vmem:[%s4615_s18 + $0x10] sm:$0xff]  ;;  %v2947_v63 = vld [vmem:[%s4615_s18] sm:$0xff] }
 0xfd5   : > { %v2603_v24 = vmul.f32 %v3696_v21, %v4444_v22 }
 0xfdb   : > { %3448 = vmatmul.msk.f32.gmra.mxu2 %vm1229_vm14, %v2772_v13 }
 0xfdc   : > { %v3554_v8 = vpop.permute.xlu0 %3553 }
 0xfdd   : > { %v3555_v17 = vunpack.i.l.bf16 %v3554_v8  ;;  %v3556_v20 = vunpack.i.h.bf16 %v3554_v8  ;;  %v2950_v8 = vld [vmem:[%s4615_s18 + $0x18] sm:$0xff] }
 0xfde   : > { %2976 = vmatpush.msrb.mxu1 %v2950_v8 }
 0xfdf   : > { %2638 = vmatpush.msra.mxu3 %v3555_v17  ;;  %v2948_v17 = vld [vmem:[%s4615_s18 + $0x8] sm:$0xff] }
 0xfe0   : > { %2977 = vmatpush.msrb.mxu1 %v2949_v16 }
 0xfe1   : > { %2639 = vmatpush.msra.mxu3 %v3556_v20 }
 0xfe2   : > { %3434 = vmatmul.msk.f32.vlgmr.msra.gmra.mxu3 %vm1229_vm14, %v2602_v18  ;;  %2978 = vmatpush.msrb.mxu1 %v2948_v17 }
 0xfe3   : > { %3449 = vmatmul.msk.f32.gmra.mxu2 %vm1229_vm14, %v2773_v0  ;;  %2843 = vmatpush.msrb.mxu3 %v2189_v26 }
 0xfe4   : > { %2979 = vmatpush.msrb.mxu1 %v2947_v63 }
 0xfea   : > { %3435 = vmatmul.msk.f32.gmra.mxu3 %vm1229_vm14, %v2603_v24 }
0x1007   : > { %v2598_v51 = vpop.xlane.xlu0 %2597 }
0x1008   : > { %3697 = vrcp.f32 %v2598_v51 }
0x100e   : > { %v3698_v23 = vpop.eup %3697 }
0x100f   : > { %v2604_v25 = vmul.f32 %v3698_v23, %v3686_v1 }
0x1011   : > { %3436 = vmatmul.msk.f32.gmra.mxu3 %vm1229_vm14, %v2604_v25 }
0x1034   : > { %v2475_v33 = vpop.f32.mrf.mxu1 }
0x1035   : > { %v2511_v36 = vadd.f32 %v4418_v42, %v2475_v33 }
0x103c   : > { %v2478_v34 = vpop.f32.mrf.mxu1 }
0x103d   : > { %v2514_v47 = vadd.f32 %v4420_v43, %v2478_v34 }
0x1044   : > { %v2481_v35 = vpop.f32.mrf.mxu1 }
0x1056   : > { %v2810_v57 = vpop.f32.mrf.mxu2 }
0x1057   : > { %3450 = vmatmul.msk.f32.vlgmr.msrb.gmra.mxu3 %vm1187_vm13, %v2810_v57 }
0x105e   : > { %v2813_v27 = vpop.f32.mrf.mxu2 }
0x105f   : > { %3451 = vmatmul.msk.f32.gmra.mxu3 %vm1187_vm13, %v2813_v27 }
0x1065   : > { %v2641_v19 = vpop.f32.mrf.mxu3 }
0x1066   : > { %3437 = vmatmul.msk.f32.vlgmr.msra.gmra.mxu1 %vm1187_vm13, %v2641_v19  ;;  %v2816_v22 = vpop.f32.mrf.mxu2 }
0x1067   : > { %3452 = vmatmul.msk.f32.gmra.mxu3 %vm1187_vm13, %v2816_v22 }
0x106d   : > { %v2644_v29 = vpop.f32.mrf.mxu3 }
0x106e   : > { %3438 = vmatmul.msk.f32.gmra.mxu1 %vm1187_vm13, %v2644_v29  ;;  %v3570_v29 = vld [vmem:[%s4616_s22] ss:$0 sm:$0xff] }
0x1094   : > { %v2647_v30 = vpop.f32.mrf.mxu3 }
0x1095   : > { %3439 = vmatmul.msk.f32.gmra.mxu1 %vm1187_vm13, %v2647_v30 }
0x10da   : > { %v2845_v37 = vpop.f32.mrf.mxu3 }
0x10e2   : > { %v2848_v53 = vpop.f32.mrf.mxu3 }
0x10e3   : > { %v2676_v39 = vpop.f32.mrf.mxu1 }
0x10e4   : > { %v2685_v41 = vadd.f32 %v2676_v39, %v2511_v36 }
0x10e6   : > { %v2854_v32 = vadd.f32 %v2845_v37, %v2685_v41 }
0x10e8   : > { %v2857_v46 = vadd.f32 %v2854_v32, %v4264_v6  ;;  %v2517_v6 = vadd.f32 %v4422_v44, %v2481_v35  ;;  %v3571_v35 = vld [vmem:[%s4617_s23] ss:$0 sm:$0xff] }
0x10ea   : > { %v4485_v48 = vadd.f32 %v3569_v45, %v2857_v46  ;;  %v2851_v59 = vpop.f32.mrf.mxu3 }
0x10eb   : > { %v2679_v49 = vpop.f32.mrf.mxu1 }
0x10ec   : > { %v2686_v50 = vadd.f32 %v2679_v49, %v2514_v47  ;;  %v2869_v52 = vsel %vm1044_vm1, %v4485_v48, 0.0 }
0x10ed   : > { %2870 = vadd.xlane.f32.xlu1 %v2869_v52 }
0x10ee   : > { %v2855_v54 = vadd.f32 %v2848_v53, %v2686_v50 }
0x10f0   : > { %v2858_v42 = vadd.f32 %v2855_v54, %v4269_v11 }
0x10f2   : > { %v4490_v55 = vadd.f32 %v3569_v45, %v2858_v42 }
0x10f4   : > { %v2872_v56 = vsel %vm1044_vm1, %v4490_v55, 0.0 }
0x10f5   : > { %2873 = vadd.xlane.f32.xlu1 %v2872_v56 }
0x1112   : > { %v2682_v43 = vpop.f32.mrf.mxu1 }
0x1113   : > { %v2687_v58 = vadd.f32 %v2682_v43, %v2517_v6 }
0x1115   : > { %v2856_v60 = vadd.f32 %v2851_v59, %v2687_v58 }
0x1117   : > { %v2859_v61 = vadd.f32 %v2856_v60, %v4274_v38 }
0x1119   : > { %v4496_v1 = vadd.f32 %v3569_v45, %v2859_v61 }
0x111b   : > { %v2875_v2 = vsel %vm1051_vm2, %v4496_v1, 0.0 }
0x111c   : > { %2876 = vadd.xlane.f32.xlu1 %v2875_v2 }
0x1160   : > { %v2871_v11 = vpop.xlane.xlu1 %2870 }
0x1161   : > { %v2878_v3 = vmul.f32 %v2871_v11, %v3983_v31  ;;  %v3024_v11 = vld [vmem:[%s4618_s2 + $0x38] sm:$0xff] }
0x1162   : > { %3042 = vmatpush.msrb.mxu0 %v3024_v11 }
0x1163   : > { %v2881_v4 = vsub.f32 %v4485_v48, %v2878_v3  ;;  %v3023_v3 = vld [vmem:[%s4618_s2 + $0x30] sm:$0xff] }
0x1164   : > { %3043 = vmatpush.msrb.mxu0 %v3023_v3 }
0x1165   : > { %v2884_v7 = vmul.f32 %v2881_v4, %v2881_v4 }
0x1167   : > { %v2887_v44 = vsel %vm1044_vm1, %v2884_v7, 0.0  ;;  %v3021_v7 = vld [vmem:[%s4618_s2 + $0x20] sm:$0xff] }
0x1168   : > { %2888 = vadd.xlane.f32.xlu2 %v2887_v44  ;;  %v2874_v9 = vpop.xlane.xlu1 %2873  ;;  %v3020_v44 = vld [vmem:[%s4618_s2 + $0x18] sm:$0xff] }
0x1169   : > { %v2879_v38 = vmul.f32 %v2874_v9, %v3983_v31  ;;  %v3019_v9 = vld [vmem:[%s4618_s2 + $0x10] sm:$0xff] }
0x116b   : > { %v2882_v28 = vsub.f32 %v4490_v55, %v2879_v38  ;;  %v3018_v38 = vld [vmem:[%s4618_s2 + $0x8] sm:$0xff] }
0x116d   : > { %v2885_v40 = vmul.f32 %v2882_v28, %v2882_v28 }
0x116f   : > { %v2890_v10 = vsel %vm1044_vm1, %v2885_v40, 0.0  ;;  %v3572_v40 = vld [vmem:[%s4619_s26] ss:$0 sm:$0xff] }
0x1170   : > { %2891 = vadd.xlane.f32.xlu1 %v2890_v10 }
0x118f   : > { %v2877_v12 = vpop.xlane.xlu1 %2876 }
0x1190   : > { %v2880_v62 = vmul.f32 %v2877_v12, %v3983_v31 }
0x1192   : > { %v4508_v5 = vsub.f32 %v4496_v1, %v2880_v62 }
0x1194   : > { %v2886_v13 = vmul.f32 %v4508_v5, %v4508_v5 }
0x1196   : > { %v2893_v15 = vsel %vm1051_vm2, %v2886_v13, 0.0 }
0x1197   : > { %2894 = vadd.xlane.f32.xlu2 %v2893_v15 }
0x11db   : > { %v2889_v20 = vpop.xlane.xlu2 %2888 }
0x11dc   : > { %v2896_v18 = vmul.f32 %v2889_v20, %v3983_v31 }
0x11de   : > { %v2899_v0 = vadd.f32 1e-12, %v2896_v18 }
0x11e0   : > { %3699 = vrsqrt.f32 %v2899_v0  ;;  %vm2908_vm14 = vweird.f32 %v2899_v0 }
0x11e3   : > { %v2892_v21 = vpop.xlane.xlu1 %2891 }
0x11e4   : > { %v2897_v24 = vmul.f32 %v2892_v21, %v3983_v31 }
0x11e6   : > { %v3700_v51 = vpop.eup %3699  ;;  %v2900_v23 = vadd.f32 1e-12, %v2897_v24 }
0x11e7   : > { %v2903_v25 = vmul.f32 %v3700_v51, %v2899_v0  ;;  %vm2909_vm13 = vweird.f32 %v3700_v51 }
0x11e8   : > { %3701 = vrsqrt.f32 %v2900_v23  ;;  %vm2910_vm15 = vmor %vm2908_vm14, %vm2909_vm13  ;;  %vm2918_vm4 = vweird.f32 %v2900_v23 }
0x11e9   : > { %v2904_v26 = vmul.f32 %v3700_v51, %v2903_v25 }
0x11eb   : > { %v2905_v14 = vmul.f32 0.5, %v2904_v26 }
0x11ed   : > { %v2906_v57 = vsub.f32 1.5, %v2905_v14 }
0x11ee   : > { %v3702_v27 = vpop.eup %3701 }
0x11ef   : > { %v2907_v19 = vmul.f32 %v3700_v51, %v2906_v57  ;;  %v2913_v22 = vmul.f32 %v3702_v27, %v2900_v23  ;;  %vm2919_vm3 = vweird.f32 %v3702_v27 }
0x11f0   : > { %vm2920_vm5 = vmor %vm2918_vm4, %vm2919_vm3 }
0x11f1   : > { %v2911_v30 = vsel %vm2910_vm15, %v3700_v51, %v2907_v19  ;;  %v2914_v33 = vmul.f32 %v3702_v27, %v2913_v22 }
0x11f2   : > { %v2932_v34 = vmul.f32 %v2911_v30, %v2881_v4  ;;  %v3022_v4 = vld [vmem:[%s4618_s2 + $0x28] sm:$0xff] }
0x11f3   : > { %v2915_v36 = vmul.f32 0.5, %v2914_v33  ;;  %3044 = vmatpush.msrb.mxu0 %v3022_v4 }
0x11f4   : > { %v2938_v37 = vmul.f32 %v3570_v29, %v2932_v34 }
0x11f5   : > { %v2916_v39 = vsub.f32 1.5, %v2915_v36  ;;  %3045 = vmatpush.msrb.mxu0 %v3021_v7 }
0x11f6   : > { %v2944_v41 = vadd.f32 %v3571_v35, %v2938_v37 }
0x11f7   : > { %v2917_v32 = vmul.f32 %v3702_v27, %v2916_v39  ;;  %3046 = vmatpush.msrb.mxu0 %v3020_v44 }
0x11f8   : > { %3453 = vmatmul.msk.f32.vlgmr.msrb.gmra.mxu1 %vm1044_vm1, %v2944_v41 }
0x11f9   : > { %v2921_v45 = vsel %vm2920_vm5, %v3702_v27, %v2917_v32  ;;  %3047 = vmatpush.msrb.mxu0 %v3019_v9  ;;  %v3573_v32 = vld [vmem:[%s4620_s10] ss:$0 sm:$0xff] }
0x11fa   : > { %v2933_v46 = vmul.f32 %v2921_v45, %v2882_v28  ;;  %v3017_v28 = vld [vmem:[%s4618_s2] sm:$0xff] }
0x11fb   : > { %3048 = vmatpush.msrb.mxu0 %v3018_v38 }
0x11fc   : > { %v2939_v47 = vmul.f32 %v3570_v29, %v2933_v46 }
0x11fd   : > { %3049 = vmatpush.msrb.mxu0 %v3017_v28  ;;  %v3153_v28 = vld [vmem:[%s3935_s6 + $0x18] sm:$0xff] }
0x11fe   : > { %v2945_v49 = vadd.f32 %v3571_v35, %v2939_v47  ;;  %3179 = vmatpush.msrb.mxu2 %v3153_v28 }
0x1200   : > { %3454 = vmatmul.msk.f32.gmra.mxu1 %vm1044_vm1, %v2945_v49 }
0x120a   : > { %v2895_v50 = vpop.xlane.xlu2 %2894 }
0x120b   : > { %v2898_v52 = vmul.f32 %v2895_v50, %v3983_v31 }
0x120d   : > { %v2901_v53 = vadd.f32 1e-12, %v2898_v52 }
0x120f   : > { %3703 = vrsqrt.f32 %v2901_v53  ;;  %vm2928_vm7 = vweird.f32 %v2901_v53 }
0x1215   : > { %v3704_v54 = vpop.eup %3703 }
0x1216   : > { %v2923_v42 = vmul.f32 %v3704_v54, %v2901_v53  ;;  %vm2929_vm6 = vweird.f32 %v3704_v54 }
0x1217   : > { %vm2930_vm8 = vmor %vm2928_vm7, %vm2929_vm6 }
0x1218   : > { %v2924_v56 = vmul.f32 %v3704_v54, %v2923_v42 }
0x121a   : > { %v2925_v6 = vmul.f32 0.5, %v2924_v56 }
0x121c   : > { %v2926_v43 = vsub.f32 1.5, %v2925_v6 }
0x121e   : > { %v2927_v58 = vmul.f32 %v3704_v54, %v2926_v43 }
0x1220   : > { %v2931_v59 = vsel %vm2930_vm8, %v3704_v54, %v2927_v58 }
0x1221   : > { %v2934_v60 = vmul.f32 %v2931_v59, %v4508_v5 }
0x1223   : > { %v2940_v61 = vmul.f32 %v3570_v29, %v2934_v60 }
0x1225   : > { %v2946_v2 = vadd.f32 %v3571_v35, %v2940_v61 }
0x1227   : > { %3455 = vmatmul.msk.f32.gmra.mxu1 %vm1044_vm1, %v2946_v2 }
0x1275   : > { %v2981_v10 = vpop.f32.mrf.mxu1 }
0x1276   : > { %v2982_v12 = vadd.f32 %v3572_v40, %v2981_v10  ;;  %v3151_v10 = vld [vmem:[%s3935_s6 + $0x8] sm:$0xff] }
0x1278   : > { %v2993_v62 = vmul.f32 0.044715, %v2982_v12  ;;  %v2990_v51 = vmul.f32 0.5, %v2982_v12 }
0x127a   : > { %v2996_v5 = vmul.f32 %v2993_v62, %v2982_v12 }
0x127c   : > { %v2999_v13 = vmul.f32 %v2996_v5, %v2982_v12 }
0x127d   : > { %v2984_v15 = vpop.f32.mrf.mxu1 }
0x127e   : > { %v3002_v8 = vadd.f32 %v2999_v13, %v2982_v12  ;;  %v2985_v16 = vadd.f32 %v3572_v40, %v2984_v15  ;;  %v3150_v12 = vld [vmem:[%s3935_s6] sm:$0xff] }
0x1280   : > { %v3005_v17 = vmul.f32 0.7978846, %v3002_v8  ;;  %v2994_v63 = vmul.f32 0.044715, %v2985_v16  ;;  %v2991_v14 = vmul.f32 0.5, %v2985_v16 }
0x1282   : > { %3705 = vtanh.f32 %v3005_v17  ;;  %v2997_v20 = vmul.f32 %v2994_v63, %v2985_v16 }
0x1284   : > { %v3000_v18 = vmul.f32 %v2997_v20, %v2985_v16 }
0x1286   : > { %v3003_v0 = vadd.f32 %v3000_v18, %v2985_v16 }
0x1288   : > { %v3706_v21 = vpop.eup %3705  ;;  %v3006_v24 = vmul.f32 0.7978846, %v3003_v0 }
0x1289   : > { %v3011_v23 = vadd.f32 1.0, %v3706_v21 }
0x128a   : > { %3707 = vtanh.f32 %v3006_v24 }
0x128b   : > { %v3014_v25 = vmul.f32 %v3011_v23, %v2990_v51  ;;  %v3574_v23 = vld [vmem:[%s4621_s11] ss:$0 sm:$0xff] }
0x128d   : > { %3456 = vmatmul.msk.f32.vlgmr.msrb.gmra.mxu0 %vm2017_vm12, %v3014_v25 }
0x1290   : > { %v3708_v26 = vpop.eup %3707 }
0x1291   : > { %v3012_v57 = vadd.f32 1.0, %v3708_v26 }
0x1293   : > { %v3015_v27 = vmul.f32 %v3012_v57, %v2991_v14  ;;  %v3575_v57 = vld [vmem:[%s3930_s4] ss:$0 sm:$0xff] }
0x1295   : > { %3457 = vmatmul.msk.f32.gmra.mxu0 %vm2017_vm12, %v3015_v27 }
0x12a4   : > { %v2987_v19 = vpop.f32.mrf.mxu1 }
0x12a5   : > { %v2988_v22 = vadd.f32 %v3572_v40, %v2987_v19  ;;  %v3152_v40 = vld [vmem:[%s3935_s6 + $0x10] sm:$0xff] }
0x12a6   : > { %3180 = vmatpush.msrb.mxu2 %v3152_v40 }
0x12a7   : > { %v2995_v29 = vmul.f32 0.044715, %v2988_v22  ;;  %v2992_v37 = vmul.f32 0.5, %v2988_v22 }
0x12a8   : > { %3181 = vmatpush.msrb.mxu2 %v3151_v10 }
0x12a9   : > { %v2998_v30 = vmul.f32 %v2995_v29, %v2988_v22 }
0x12aa   : > { %3182 = vmatpush.msrb.mxu2 %v3150_v12 }
0x12ab   : > { %v3001_v33 = vmul.f32 %v2998_v30, %v2988_v22 }
0x12ad   : > { %v3004_v34 = vadd.f32 %v3001_v33, %v2988_v22 }
0x12af   : > { %v3007_v35 = vmul.f32 0.7978846, %v3004_v34 }
0x12b1   : > { %3709 = vtanh.f32 %v3007_v35 }
0x12b7   : > { %v3710_v36 = vpop.eup %3709 }
0x12b8   : > { %v3013_v39 = vadd.f32 1.0, %v3710_v36 }
0x12ba   : > { %v3016_v41 = vmul.f32 %v3013_v39, %v2992_v37 }
0x12bc   : > { %3458 = vmatmul.msk.f32.gmra.mxu0 %vm2017_vm12, %v3016_v41 }
0x130a   : > { %v3051_v45 = vpop.f32.mrf.mxu0 }
0x130b   : > { %v3060_v46 = vadd.f32 %v3051_v45, %v4485_v48 }
0x130d   : > { %v3067_v47 = vadd.f32 %v3573_v32, %v3060_v46 }
0x130f   : > { %v3072_v49 = vsel %vm1044_vm1, %v3067_v47, 0.0 }
0x1310   : > { %3073 = vadd.xlane.f32.xlu1 %v3072_v49 }
0x1312   : > { %v3054_v50 = vpop.f32.mrf.mxu0 }
0x1313   : > { %v3061_v52 = vadd.f32 %v3054_v50, %v4490_v55 }
0x1315   : > { %v3068_v53 = vadd.f32 %v3573_v32, %v3061_v52 }
0x1317   : > { %v3075_v54 = vsel %vm1044_vm1, %v3068_v53, 0.0 }
0x1318   : > { %3076 = vadd.xlane.f32.xlu2 %v3075_v54 }
0x1339   : > { %v3057_v42 = vpop.f32.mrf.mxu0 }
0x133a   : > { %v3062_v56 = vadd.f32 %v3057_v42, %v4496_v1 }
0x133c   : > { %v3069_v6 = vadd.f32 %v3573_v32, %v3062_v56 }
0x133e   : > { %v3078_v43 = vsel %vm1051_vm2, %v3069_v6, 0.0 }
0x133f   : > { %3079 = vadd.xlane.f32.xlu0 %v3078_v43 }
0x1383   : > { %v3074_v58 = vpop.xlane.xlu1 %3073 }
0x1384   : > { %v3081_v48 = vmul.f32 %v3074_v58, %v3983_v31 }
0x1386   : > { %v3084_v59 = vsub.f32 %v3067_v47, %v3081_v48 }
0x1388   : > { %v3087_v60 = vmul.f32 %v3084_v59, %v3084_v59 }
0x138a   : > { %v3090_v61 = vsel %vm1044_vm1, %v3087_v60, 0.0 }
0x138b   : > { %v3077_v55 = vpop.xlane.xlu2 %3076  ;;  %3091 = vadd.xlane.f32.xlu1 %v3090_v61 }
0x138c   : > { %v3082_v2 = vmul.f32 %v3077_v55, %v3983_v31 }
0x138e   : > { %v3085_v11 = vsub.f32 %v3068_v53, %v3082_v2 }
0x1390   : > { %v3088_v1 = vmul.f32 %v3085_v11, %v3085_v11 }
0x1392   : > { %v3093_v3 = vsel %vm1044_vm1, %v3088_v1, 0.0 }
0x1393   : > { %3094 = vadd.xlane.f32.xlu2 %v3093_v3 }
0x13b2   : > { %v3080_v4 = vpop.xlane.xlu0 %3079 }
0x13b3   : > { %v3083_v7 = vmul.f32 %v3080_v4, %v3983_v31 }
0x13b5   : > { %v4550_v44 = vsub.f32 %v3069_v6, %v3083_v7  ;;  %v3576_v6 = vld [vmem:[%s3940_s20] ss:$0 sm:$0xff] }
0x13b7   : > { %v3089_v9 = vmul.f32 %v4550_v44, %v4550_v44 }
0x13b9   : > { %v3096_v38 = vsel %vm1051_vm2, %v3089_v9, 0.0 }
0x13ba   : > { %3097 = vadd.xlane.f32.xlu0 %v3096_v38 }
0x13fe   : > { %v3092_v62 = vpop.xlane.xlu1 %3091 }
0x13ff   : > { %v3099_v5 = vmul.f32 %v3092_v62, %v3983_v31 }
0x1401   : > { %v3102_v13 = vadd.f32 1e-12, %v3099_v5 }
0x1403   : > { %3711 = vrsqrt.f32 %v3102_v13  ;;  %vm3111_vm12 = vweird.f32 %v3102_v13 }
0x1406   : > { %v3095_v15 = vpop.xlane.xlu2 %3094 }
0x1407   : > { %v3100_v8 = vmul.f32 %v3095_v15, %v3983_v31 }
0x1409   : > { %v3712_v16 = vpop.eup %3711  ;;  %v3103_v17 = vadd.f32 1e-12, %v3100_v8 }
0x140a   : > { %v3106_v63 = vmul.f32 %v3712_v16, %v3102_v13  ;;  %vm3112_vm2 = vweird.f32 %v3712_v16 }
0x140b   : > { %3713 = vrsqrt.f32 %v3103_v17  ;;  %vm3113_vm9 = vmor %vm3111_vm12, %vm3112_vm2  ;;  %vm3121_vm11 = vweird.f32 %v3103_v17 }
0x140c   : > { %v3107_v20 = vmul.f32 %v3712_v16, %v3106_v63 }
0x140e   : > { %v3108_v18 = vmul.f32 0.5, %v3107_v20 }
0x1410   : > { %v3109_v0 = vsub.f32 1.5, %v3108_v18 }
0x1411   : > { %v3714_v21 = vpop.eup %3713 }
0x1412   : > { %v3110_v24 = vmul.f32 %v3712_v16, %v3109_v0  ;;  %v3116_v51 = vmul.f32 %v3714_v21, %v3103_v17  ;;  %vm3122_vm10 = vweird.f32 %v3714_v21 }
0x1413   : > { %vm3123_vm13 = vmor %vm3121_vm11, %vm3122_vm10 }
0x1414   : > { %v3114_v25 = vsel %vm3113_vm9, %v3712_v16, %v3110_v24  ;;  %v3117_v26 = vmul.f32 %v3714_v21, %v3116_v51 }
0x1415   : > { %v3135_v14 = vmul.f32 %v3114_v25, %v3084_v59 }
0x1416   : > { %v3118_v27 = vmul.f32 0.5, %v3117_v26 }
0x1417   : > { %v3141_v19 = vmul.f32 %v3574_v23, %v3135_v14 }
0x1418   : > { %v3119_v22 = vsub.f32 1.5, %v3118_v27 }
0x1419   : > { %v3147_v29 = vadd.f32 %v3575_v57, %v3141_v19 }
0x141a   : > { %v3120_v30 = vmul.f32 %v3714_v21, %v3119_v22 }
0x141b   : > { %3459 = vmatmul.msk.f32.vlgmr.msrb.gmra.mxu2 %vm1044_vm1, %v3147_v29 }
0x141c   : > { %v3124_v33 = vsel %vm3123_vm13, %v3714_v21, %v3120_v30 }
0x141d   : > { %v3136_v34 = vmul.f32 %v3124_v33, %v3085_v11 }
0x141f   : > { %v3142_v35 = vmul.f32 %v3574_v23, %v3136_v34 }
0x1421   : > { %v3148_v36 = vadd.f32 %v3575_v57, %v3142_v35 }
0x1423   : > { %3460 = vmatmul.msk.f32.gmra.mxu2 %vm1044_vm1, %v3148_v36 }
0x142d   : > { %v3098_v37 = vpop.xlane.xlu0 %3097 }
0x142e   : > { %v3101_v39 = vmul.f32 %v3098_v37, %v3983_v31 }
0x1430   : > { %v3104_v41 = vadd.f32 1e-12, %v3101_v39 }
0x1432   : > { %3715 = vrsqrt.f32 %v3104_v41  ;;  %vm3131_vm15 = vweird.f32 %v3104_v41 }
0x1438   : > { %v3716_v32 = vpop.eup %3715 }
0x1439   : > { %v3126_v45 = vmul.f32 %v3716_v32, %v3104_v41  ;;  %vm3132_vm14 = vweird.f32 %v3716_v32 }
0x143a   : > { %vm3133_vm3 = vmor %vm3131_vm15, %vm3132_vm14 }
0x143b   : > { %v3127_v46 = vmul.f32 %v3716_v32, %v3126_v45 }
0x143d   : > { %v3128_v47 = vmul.f32 0.5, %v3127_v46 }
0x143f   : > { %v3129_v49 = vsub.f32 1.5, %v3128_v47 }
0x1441   : > { %v3130_v50 = vmul.f32 %v3716_v32, %v3129_v49 }
0x1443   : > { %v3134_v52 = vsel %vm3133_vm3, %v3716_v32, %v3130_v50 }
0x1444   : > { %v3137_v53 = vmul.f32 %v3134_v52, %v4550_v44 }
0x1446   : > { %v3143_v54 = vmul.f32 %v3574_v23, %v3137_v53 }
0x1448   : > { %v3149_v42 = vadd.f32 %v3575_v57, %v3143_v54 }
0x144a   : > { %3461 = vmatmul.msk.f32.gmra.mxu2 %vm1044_vm1, %v3149_v42 }
0x149e   : > { %v3184_v31 = vpop.f32.mrf.mxu2 }
0x149f   : > { %v3185_v58 = vadd.f32 %v3576_v6, %v3184_v31 }
0x14a6   : > { %v3187_v56 = vpop.f32.mrf.mxu2 }
0x14a7   : > { %v3188_v43 = vadd.f32 %v3576_v6, %v3187_v56 }
0x14a9   : > { %v3194_v60 = vmax.f32 %v3185_v58, %v3188_v43 }
0x14cd   : > { %v3190_v48 = vpop.f32.mrf.mxu2 }
0x14ce   : > { %v3191_v59 = vadd.f32 %v3576_v6, %v3190_v48 }
0x14d0   : > { %v3193_v61 = vsel %vm1281_vm0, %v3191_v59, -inf }
0x14d1   : > { %v3195_v55 = vmax.f32 %v3194_v60, %v3193_v61 }
0x14d3   : > { %v3196_v2 = vrot.slane %v3195_v55, 4 }
0x14d5   : > { %v3197_v11 = vmax.f32 %v3195_v55, %v3196_v2 }
0x14d7   : > { %v3198_v1 = vrot.slane %v3197_v11, 2 }
0x14d9   : > { %v3199_v3 = vmax.f32 %v3197_v11, %v3198_v1 }
0x14db   : > { %v3200_v4 = vrot.slane %v3199_v3, 1 }
0x14dd   : > { %v3201_v7 = vmax.f32 %v3199_v3, %v3200_v4 }
0x14df   : > { %v3202_v44 = vsub.f32 %v3185_v58, %v3201_v7  ;;  %v3203_v9 = vsub.f32 %v3188_v43, %v3201_v7  ;;  %v3204_v38 = vsub.f32 %v3191_v59, %v3201_v7 }
0x14e1   : > { %v3205_v28 = vmul.f32 1.442695, %v3202_v44  ;;  %v3207_v40 = vmul.f32 1.442695, %v3203_v9  ;;  %v3209_v10 = vmul.f32 1.442695, %v3204_v38 }
0x14e3   : > { %3717 = vpow2.f32 %v3205_v28 }
0x14e4   : > { %3719 = vpow2.f32 %v3207_v40 }
0x14e5   : > { %3721 = vpow2.f32 %v3209_v10 }
0x14e9   : > { %v3718_v12 = vpop.eup %3717 }
0x14ea   : > { %v3720_v62 = vpop.eup %3719 }
0x14eb   : > { %v3722_v5 = vpop.eup %3721  ;;  %v3211_v13 = vadd.f32 %v3720_v62, %v3718_v12 }
0x14ec   : > { %v3212_v15 = vsel %vm1281_vm0, %v3722_v5, 0.0 }
0x14ed   : > { %v3213_v8 = vadd.f32 %v3212_v15, %v3211_v13 }
0x14ef   : > { %v3214_v16 = vrot.slane %v3213_v8, 4 }
0x14f1   : > { %v3215_v17 = vadd.f32 %v3214_v16, %v3213_v8 }
0x14f3   : > { %v3216_v63 = vrot.slane %v3215_v17, 2 }
0x14f5   : > { %v3217_v20 = vadd.f32 %v3216_v63, %v3215_v17 }
0x14f7   : > { %v3218_v18 = vrot.slane %v3217_v20, 1 }
0x14f9   : > { %v3219_v0 = vadd.f32 %v3218_v18, %v3217_v20 }
0x14fb   : > { %3723 = vrcp.f32 %v3219_v0  ;;  %v3231_v23 = vand.u32 2147483648, %v3219_v0  ;;  %v3229_v26 = vand.u32 2147483647, %v3219_v0  ;;  %vm3225_vm4 = vweird.f32 %v3219_v0 }
0x14fd   : > { %v3232_v57 = vor.u32 1.1754944e-38, %v3231_v23  ;;  %vm3230_vm5 = vcmp.eq.f32.partialorder %v3229_v26, 8.507059e+37 }
0x1501   : > { %v3724_v21 = vpop.eup %3723 }
0x1502   : > { %v3221_v24 = vmul.f32 %v3724_v21, %v3219_v0  ;;  %vm3226_vm1 = vweird.f32 %v3724_v21 }
0x1503   : > { %vm3227_vm0 = vmor %vm3225_vm4, %vm3226_vm1 }
0x1504   : > { %v3222_v51 = vsub.f32 1.0, %v3221_v24 }
0x1506   : > { %v3223_v25 = vmul.f32 %v3724_v21, %v3222_v51 }
0x1508   : > { %v3224_v14 = vadd.f32 %v3724_v21, %v3223_v25 }
0x150a   : > { %v3228_v27 = vsel %vm3227_vm0, %v3724_v21, %v3224_v14 }
0x150b   : > { %v3233_v19 = vsel %vm3230_vm5, %v3232_v57, %v3228_v27 }
0x150c   : > { %v3234_v22 = vmul.f32 %v3718_v12, %v3233_v19  ;;  %v3235_v29 = vmul.f32 %v3720_v62, %v3233_v19  ;;  %v3236_v30 = vmul.f32 %v3722_v5, %v3233_v19 }
0x150e   : > { %3237 = vst [vmem:[%s986_s16] sm:$0xff] %v3234_v22 }
0x150f   : > { %3238 = vst [vmem:[%s986_s16 + $0x8] sm:$0xff] %v3235_v29 }
0x1510   : > { %3239 = vst [vmem:[%s986_s16 + $0x10] sm:$0x1] %v3236_v30 }
0x1511 PF: > { %s75_s28 = sadd.s32 1, %s3731_s28  }
0x1512   : > { %p72_p4 = scmp.ge.s32.totalorder %s75_s28, 4  }
0x1514   :  { %74 = sbr.rel (!%p72_p4) target bundleno = 53 (0x35), region = 210 }

</bundles_post_ra>
